<compile_context>
chip_gen: v5e
topology: v5e:2x2
jax: 0.10.0
libtpu: 0.0.40
codegen_flags: <defaults>
</compile_context>

<pallas_src>
import functools
import math

import jax
import jax.numpy as jnp
from jax import lax
from jax.experimental import pallas as pl
from jax.experimental.pallas import tpu as pltpu

EPS = 1e-5
LANE = 128  # lane width: feature dims are zero-padded up to a multiple of this

# Compat shim: CompilerParams was called TPUCompilerParams in some older releases.
_CompilerParams = getattr(pltpu, "CompilerParams", None) or getattr(
    pltpu, "TPUCompilerParams", None)


# --------------------------------------------------------------------------
# Small host-side helpers
# --------------------------------------------------------------------------
def _round_up(n, m):
    return ((n + m - 1) // m) * m


def _pad2(a, rows, cols):
    return jnp.pad(a, ((0, rows - a.shape[0]), (0, cols - a.shape[1])))


def _vmem_limit_bytes():
    # Derive the scoped-VMEM budget from the actual chip (v5e/v6e: 128 MiB,
    # v7x: 64 MiB) instead of hard-coding a v6e-sized number.
    try:
        cap = int(pltpu.get_tpu_info().vmem_capacity_bytes)
        return max(16 << 20, min((cap * 3) // 4, 96 << 20))
    except Exception:
        return 32 << 20


def _rel_err(a, b):
    a = a.astype(jnp.float32)
    b = b.astype(jnp.float32)
    return float(jnp.linalg.norm(a - b) / (jnp.linalg.norm(b) + 1e-12))


# --------------------------------------------------------------------------
# In-kernel GraphNorm helpers (f32 math)
# --------------------------------------------------------------------------
def _gn_relu_nodes_axis0(h, alpha, gamma, beta):
    # GraphNorm over the node axis = rows; per-feature params are [1, F] rows.
    mean = jnp.mean(h, axis=0, keepdims=True)
    c = h - alpha * mean
    var = jnp.mean(c * c, axis=0, keepdims=True)
    return jnp.maximum(gamma * c * lax.rsqrt(var + EPS) + beta, 0.0)


def _gn_relu_nodes_axis1(h, alpha, gamma, beta):
    # Same GraphNorm in the transposed layout: nodes along the lane axis
    # (columns); per-feature params are [F, 1] column vectors.
    mean = jnp.mean(h, axis=1, keepdims=True)
    c = h - alpha * mean
    var = jnp.mean(c * c, axis=1, keepdims=True)
    return jnp.maximum(gamma * c * lax.rsqrt(var + EPS) + beta, 0.0)


# --------------------------------------------------------------------------
# Kernel 1: fully fused GCN forward (both branches + res = x + x_t.T)
# --------------------------------------------------------------------------
def ae_gcn_fused_kernel(
        # cell branch
        x_ref, adjT_ref,
        w1_ref, b1_ref, al1_ref, g1_ref, be1_ref,
        w2_ref, b2_ref, al2_ref, g2_ref, be2_ref,
        # gene branch (pre-transposed layouts)
        xtT_ref, adjt_ref,
        w3t_ref, b3_ref, al3_ref, g3_ref, be3_ref,
        w4t_ref, b4_ref, al4_ref, g4_ref, be4_ref,
        # output
        o_ref, *, n_genes):
    f32, bf16 = jnp.float32, jnp.bfloat16

    # ---------------- cell branch (natural [cells, features] layout) ----------
    #   h = relu(GN2(adj.T @ (relu(GN1(adj.T @ (x @ W1) + b1)) @ W2) + b2))
    # adj.T was taken once outside; it stays VMEM-resident across both layers.
    a_c = adjT_ref[...]                                                # bf16 [Nc,Nc]
    xw = jnp.dot(x_ref[...], w1_ref[...], preferred_element_type=f32)  # [Nc,F2]
    h = jnp.dot(a_c, xw.astype(bf16), preferred_element_type=f32)
    h = _gn_relu_nodes_axis0(h + b1_ref[...], al1_ref[...], g1_ref[...], be1_ref[...])
    # dropout1 == identity
    hw = jnp.dot(h.astype(bf16), w2_ref[...], preferred_element_type=f32)  # [Nc,F1]
    h = jnp.dot(a_c, hw.astype(bf16), preferred_element_type=f32)
    h_cell = _gn_relu_nodes_axis0(h + b2_ref[...], al2_ref[...], g2_ref[...], be2_ref[...])
    # h_cell: f32 [Nc, F1pad], valid feature columns = n_genes

    # ------------- gene branch, evaluated entirely in transposed layout -------
    # Natural:   g = relu(GN4(adj_t.T @ (relu(GN3(adj_t.T @ (x_t@W3)+b3)) @ W4)+b4))
    # We need g.T for `res = x + x_t.T`, so every step is computed transposed:
    #   g.T = relu(GN4_T( W4.T @ (relu(GN3_T((W3.T @ x_t.T) @ adj_t + b3)) @ adj_t) + b4 ))
    # -> no in-kernel transpose, adj_t used un-transposed, GraphNorm reduces
    #    along the lane (gene) axis, result lands natively in [cells, genes].
    a_g = adjt_ref[...]                                                # bf16 [Ng,Ng]
    wx = jnp.dot(w3t_ref[...], xtT_ref[...], preferred_element_type=f32)      # [F3,Ng]
    g = jnp.dot(wx.astype(bf16), a_g, preferred_element_type=f32)             # [F3,Ng]
    g = _gn_relu_nodes_axis1(g + b3_ref[...], al3_ref[...], g3_ref[...], be3_ref[...])
    # dropout2 == identity
    ga = jnp.dot(g.astype(bf16), a_g, preferred_element_type=f32)             # [F3,Ng]
    g = jnp.dot(w4t_ref[...], ga.astype(bf16), preferred_element_type=f32)    # [Nc,Ng]
    h_gene_t = _gn_relu_nodes_axis1(g + b4_ref[...], al4_ref[...], g4_ref[...], be4_ref[...])

    # ---------------------- res = x + x_t.T (fused) ---------------------------
    o_ref[...] = (h_cell[:, :n_genes] + h_gene_t).astype(o_ref.dtype)


# --------------------------------------------------------------------------
# Kernel 2: clustering branch   res = BN1(data) + BN2(data.T).T
# --------------------------------------------------------------------------
def dual_bn_kernel(d_ref, g1_ref, b1_ref, g2_ref, b2_ref, o_ref, *, n_valid):
    d = d_ref[...]                                        # f32 [Nc, Fp] (zero-padded cols)

    # batch_norm1(data): per-gene stats over the cell axis.  Padded gene columns
    # stay zero because their gamma/beta padding is zero.
    mu_c = jnp.mean(d, axis=0, keepdims=True)
    var_c = jnp.mean((d - mu_c) ** 2, axis=0, keepdims=True)
    bn1 = g1_ref[...] * (d - mu_c) * lax.rsqrt(var_c + EPS) + b1_ref[...]

    # batch_norm2(data.T).T: per-cell stats over the gene axis.  Padded gene
    # columns must not bias the row statistics -> mask them out of the moments.
    valid = (lax.broadcasted_iota(jnp.int32, d.shape, 1) < n_valid).astype(d.dtype)
    inv_n = 1.0 / float(n_valid)
    mu_r = jnp.sum(d * valid, axis=1, keepdims=True) * inv_n
    cent = (d - mu_r) * valid
    var_r = jnp.sum(cent * cent, axis=1, keepdims=True) * inv_n
    bn2 = g2_ref[...] * (d - mu_r) * lax.rsqrt(var_r + EPS) + b2_ref[...]

    o_ref[...] = (bn1 + bn2).astype(o_ref.dtype)


# --------------------------------------------------------------------------
# Shared whole-array pallas_call wrapper (grid=(1,))
# --------------------------------------------------------------------------
def _whole_spec(shape, single_buffer):
    nd = len(shape)
    idx = lambda i: (0,) * nd
    if single_buffer and hasattr(pl, "Buffered"):
        return pl.BlockSpec(shape, idx, pipeline_mode=pl.Buffered(1))
    return pl.BlockSpec(shape, idx)


def _whole_array_call(kernel, inputs, out_shape, *, flops=0, transcendentals=0):
    bytes_accessed = (sum(int(t.size) * t.dtype.itemsize for t in inputs)
                      + math.prod(out_shape.shape) * jnp.dtype(out_shape.dtype).itemsize)

    cparams = None
    if _CompilerParams is not None:
        cparams = _CompilerParams(dimension_semantics=("arbitrary",),
                                  vmem_limit_bytes=_vmem_limit_bytes())

    def build(single_buffer):
        kwargs = {}
        if cparams is not None:
            kwargs["compiler_params"] = cparams
        if hasattr(pl, "CostEstimate"):
            kwargs["cost_estimate"] = pl.CostEstimate(
                flops=int(flops), transcendentals=int(transcendentals),
                bytes_accessed=int(bytes_accessed))
        return pl.pallas_call(
            kernel,
            out_shape=out_shape,
            grid=(1,),
            in_specs=[_whole_spec(t.shape, single_buffer) for t in inputs],
            out_specs=_whole_spec(out_shape.shape, False),
            **kwargs,
        )(*inputs)

    if hasattr(pl, "Buffered"):
        # grid=(1,): nothing to pipeline, so single-buffer the resident inputs
        # (halves the N x N adjacency VMEM footprint — matters on v7x's 64 MiB).
        try:
            return build(True)
        except Exception:
            pass
    return build(False)


# --------------------------------------------------------------------------
# One-time layout preparation (hoisted casts / padding / transposes)
# --------------------------------------------------------------------------
def prepare_params(p, *, n_cells, n_genes):
    """Cast/pad/transpose weights & norm params into kernel layouts. Call once."""
    h1, h2 = p["w1"].shape          # hidden1, hidden2
    h0, h3 = p["w3"].shape          # hidden0, hidden3
    if h1 != n_genes or h0 != n_cells:
        raise ValueError(
            "res = x + x_t.T requires hidden1 == n_genes and hidden0 == n_cells; "
            f"got hidden1={h1}, n_genes={n_genes}, hidden0={h0}, n_cells={n_cells}")
    f1, f2, f3 = _round_up(h1, LANE), _round_up(h2, LANE), _round_up(h3, LANE)

    row = lambda t, f: _pad2(t.astype(jnp.float32), 1, f)              # [1, f]
    col = lambda t, f: _pad2(t.reshape(-1, 1).astype(jnp.float32), f, 1)  # [f, 1]

    return {
        "F1": f1, "F2": f2, "F3": f3,
        # cell branch (natural layout)
        "w1": _pad2(p["w1"], f1, f2).astype(jnp.bfloat16),
        "b1": row(p["b1"], f2), "gn1_a": row(p["gn1_a"], f2),
        "gn1_g": row(p["gn1_g"], f2), "gn1_b": row(p["gn1_b"], f2),
        "w2": _pad2(p["w2"], f2, f1).astype(jnp.bfloat16),
        "b2": row(p["b2"], f1), "gn2_a": row(p["gn2_a"], f1),
        "gn2_g": row(p["gn2_g"], f1), "gn2_b": row(p["gn2_b"], f1),
        # gene branch (transposed layout): pre-transposed weights, column params
        "w3t": _pad2(p["w3"].T, f3, h0).astype(jnp.bfloat16),
        "b3": col(p["b3"], f3), "gn3_a": col(p["gn3_a"], f3),
        "gn3_g": col(p["gn3_g"], f3), "gn3_b": col(p["gn3_b"], f3),
        "w4t": _pad2(p["w4"].T, h0, f3).astype(jnp.bfloat16),
        "b4": col(p["b4"], h0), "gn4_a": col(p["gn4_a"], h0),
        "gn4_g": col(p["gn4_g"], h0), "gn4_b": col(p["gn4_b"], h0),
        # dual BatchNorm
        "bn1_g": row(p["bn1_g"], f1), "bn1_b": row(p["bn1_b"], f1),
        "bn2_g": p["bn2_g"].reshape(-1, 1).astype(jnp.float32),
        "bn2_b": p["bn2_b"].reshape(-1, 1).astype(jnp.float32),
    }


def prepare_inputs(data, x, adj, x_t, adj_t):
    """Cast/pad/transpose graph data into kernel layouts. Call once per graph."""
    n_cells, n_genes = x.shape
    if x_t.shape != (n_genes, n_cells):
        raise ValueError(f"x_t must be [n_genes, n_cells]; got {x_t.shape}")
    if adj.shape != (n_cells, n_cells) or adj_t.shape != (n_genes, n_genes):
        raise ValueError("adj / adj_t shapes inconsistent with x")
    if data.shape != (n_cells, n_genes):
        raise ValueError(f"data must be [n_cells, n_genes]; got {data.shape}")
    f1 = _round_up(n_genes, LANE)
    return {
        "n_cells": n_cells, "n_genes": n_genes,
        "xp": _pad2(x, n_cells, f1).astype(jnp.bfloat16),        # [Nc, F1]
        "adjT": adj.T.astype(jnp.bfloat16),                       # adj.t(), taken once
        "xtT": x_t.T.astype(jnp.bfloat16),                        # [Nc, Ng]
        "adjt": adj_t.astype(jnp.bfloat16),                       # used un-transposed
        "datap": _pad2(data.astype(jnp.float32), n_cells, f1),    # [Nc, F1]
    }


# --------------------------------------------------------------------------
# Forward-pass wrappers
# --------------------------------------------------------------------------
def gcn_fused(pp, px):
    n_cells, n_genes = px["n_cells"], px["n_genes"]
    f1, f2, f3 = pp["F1"], pp["F2"], pp["F3"]
    inputs = [
        px["xp"], px["adjT"],
        pp["w1"], pp["b1"], pp["gn1_a"], pp["gn1_g"], pp["gn1_b"],
        pp["w2"], pp["b2"], pp["gn2_a"], pp["gn2_g"], pp["gn2_b"],
        px["xtT"], px["adjt"],
        pp["w3t"], pp["b3"], pp["gn3_a"], pp["gn3_g"], pp["gn3_b"],
        pp["w4t"], pp["b4"], pp["gn4_a"], pp["gn4_g"], pp["gn4_b"],
    ]
    flops = 2 * (n_cells * f1 * f2 + n_cells * n_cells * f2            # cell layer 1
                 + n_cells * f2 * f1 + n_cells * n_cells * f1          # cell layer 2
                 + f3 * n_cells * n_genes + f3 * n_genes * n_genes     # gene layer 1
                 + f3 * n_genes * n_genes + n_cells * f3 * n_genes)    # gene layer 2
    kernel = functools.partial(ae_gcn_fused_kernel, n_genes=n_genes)
    return _whole_array_call(
        kernel, inputs,
        jax.ShapeDtypeStruct((n_cells, n_genes), jnp.float32),
        flops=flops, transcendentals=2 * (f1 + f2 + f3 + n_cells))


def dual_bn(pp, px):
    n_cells, f_pad = px["datap"].shape
    h1 = px["n_genes"]
    inputs = [px["datap"], pp["bn1_g"], pp["bn1_b"], pp["bn2_g"], pp["bn2_b"]]
    kernel = functools.partial(dual_bn_kernel, n_valid=h1)
    out = _whole_array_call(
        kernel, inputs,
        jax.ShapeDtypeStruct((n_cells, f_pad), jnp.float32),
        flops=14 * n_cells * f_pad)
    return out if f_pad == h1 else out[:, :h1]


def ae_gcn_forward(pp, px, *, clustering):
    if clustering:
        # In the reference, `res = batch_norm1(data) + batch_norm2(data.T).T`
        # unconditionally overwrites the GCN result, so the GCN branch is dead
        # work in this mode; skipping it is output-identical.
        return dual_bn(pp, px)
    return gcn_fused(pp, px)


# --------------------------------------------------------------------------
# Pure-JAX f32 reference (for validation)
# --------------------------------------------------------------------------
def reference_forward(p, data, x, adj, x_t, adj_t, *, clustering):
    def gcn(h, a, w, b):
        return a @ h @ w + b

    def gn(h, alpha, gamma, beta):
        mean = h.mean(axis=0, keepdims=True)
        c = h - alpha * mean
        var = (c * c).mean(axis=0, keepdims=True)
        return gamma * c / jnp.sqrt(var + EPS) + beta

    relu = lambda v: jnp.maximum(v, 0.0)
    h = relu(gn(gcn(x, adj.T, p["w1"], p["b1"]), p["gn1_a"], p["gn1_g"], p["gn1_b"]))
    h = relu(gn(gcn(h, adj.T, p["w2"], p["b2"]), p["gn2_a"], p["gn2_g"], p["gn2_b"]))
    g = relu(gn(gcn(x_t, adj_t.T, p["w3"], p["b3"]), p["gn3_a"], p["gn3_g"], p["gn3_b"]))
    g = relu(gn(gcn(g, adj_t.T, p["w4"], p["b4"]), p["gn4_a"], p["gn4_g"], p["gn4_b"]))
    res = h + g.T
    if clustering:
        def bn(d, gamma, beta):
            mu = d.mean(axis=0, keepdims=True)
            var = d.var(axis=0, keepdims=True)
            return gamma * (d - mu) / jnp.sqrt(var + EPS) + beta
        res = bn(data, p["bn1_g"], p["bn1_b"]) + bn(data.T, p["bn2_g"], p["bn2_b"]).T
    return res


# --------------------------------------------------------------------------
# Parameter construction (deterministic, synthetic)
# --------------------------------------------------------------------------
def init_params(key, hidden0, hidden1, hidden2, hidden3):
    ks = jax.random.split(key, 4)
    row = lambda f: jnp.ones((1, f), jnp.float32)        # gamma / alpha init = 1
    zrow = lambda f: jnp.zeros((1, f), jnp.float32)      # beta / bias init = 0
    w = lambda k, fi, fo: jax.random.normal(k, (fi, fo), jnp.float32) * 0.1
    return {
        # gcn1: hidden1 -> hidden2 ; gcn2: hidden2 -> hidden1
        "w1": w(ks[0], hidden1, hidden2), "b1": zrow(hidden2),
        "w2": w(ks[1], hidden2, hidden1), "b2": zrow(hidden1),
        # gcn3: hidden0 -> hidden3 ; gcn4: hidden3 -> hidden0
        "w3": w(ks[2], hidden0, hidden3), "b3": zrow(hidden3),
        "w4": w(ks[3], hidden3, hidden0), "b4": zrow(hidden0),
        # GraphNorms (alpha = mean_scale, gamma = weight, beta = bias)
        "gn1_a": row(hidden2), "gn1_g": row(hidden2), "gn1_b": zrow(hidden2),
        "gn2_a": row(hidden1), "gn2_g": row(hidden1), "gn2_b": zrow(hidden1),
        "gn3_a": row(hidden3), "gn3_g": row(hidden3), "gn3_b": zrow(hidden3),
        "gn4_a": row(hidden0), "gn4_g": row(hidden0), "gn4_b": zrow(hidden0),
        # BatchNorms
        "bn1_g": row(hidden1), "bn1_b": zrow(hidden1),
        "bn2_g": row(hidden0), "bn2_b": zrow(hidden0),
    }


if __name__ == "__main__":
    # Small synthetic shapes consistent with the forward semantics:
    #   res = x + x_t.T  requires  hidden0 == n_cells  and  hidden1 == n_genes
    hidden0 = 16   # number of cells
    hidden1 = 32   # number of genes
    hidden2 = 8
    hidden3 = 8

    key = jax.random.PRNGKey(0)
    k_data, k_x, k_adj, k_adjt, k_param = jax.random.split(key, 5)

    data = jax.random.normal(k_data, (hidden0, hidden1), jnp.float32)
    x = jax.random.normal(k_x, (hidden0, hidden1), jnp.float32)
    x_t = x.T
    adj = jax.nn.softmax(
        jax.random.normal(k_adj, (hidden0, hidden0), jnp.float32), axis=-1)
    adj_t = jax.nn.softmax(
        jax.random.normal(k_adjt, (hidden1, hidden1), jnp.float32), axis=-1)

    params = init_params(k_param, hidden0, hidden1, hidden2, hidden3)

    # One-time layout prep (bf16 casts, lane padding, adj / x_t / weight
    # transposes, norm-param reshapes) — reused by every forward pass.
    pp = prepare_params(params, n_cells=hidden0, n_genes=hidden1)
    px = prepare_inputs(data, x, adj, x_t, adj_t)

    out_gcn = ae_gcn_forward(pp, px, clustering=False)
    out_clu = ae_gcn_forward(pp, px, clustering=True)
    jax.block_until_ready(out_gcn)
    jax.block_until_ready(out_clu)

    assert out_gcn.shape == (hidden0, hidden1)
    assert out_clu.shape == (hidden0, hidden1)
    assert bool(jnp.all(jnp.isfinite(out_gcn)))
    assert bool(jnp.all(jnp.isfinite(out_clu)))

    # Validate against a pure-JAX f32 reference (bf16 MXU feeds -> loose tol on
    # the GCN path; the clustering path is all-f32 -> tight tol).
    ref_gcn = reference_forward(params, data, x, adj, x_t, adj_t, clustering=False)
    ref_clu = reference_forward(params, data, x, adj, x_t, adj_t, clustering=True)
    assert _rel_err(out_gcn, ref_gcn) < 0.15, _rel_err(out_gcn, ref_gcn)
    assert _rel_err(out_clu, ref_clu) < 1e-3, _rel_err(out_clu, ref_clu)

    print("KERNEL_OK")
</pallas_src>

<mosaic_0001>
module attributes {stable_mosaic.version = 11 : i64} {
  func.func @ae_gcn_fused_kernel(%arg0: i32, %arg1: memref<16x128xbf16, #tpu.memory_space<vmem>>, %arg2: memref<16x16xbf16, #tpu.memory_space<vmem>>, %arg3: memref<128x128xbf16, #tpu.memory_space<vmem>>, %arg4: memref<1x128xf32, #tpu.memory_space<vmem>>, %arg5: memref<1x128xf32, #tpu.memory_space<vmem>>, %arg6: memref<1x128xf32, #tpu.memory_space<vmem>>, %arg7: memref<1x128xf32, #tpu.memory_space<vmem>>, %arg8: memref<128x128xbf16, #tpu.memory_space<vmem>>, %arg9: memref<1x128xf32, #tpu.memory_space<vmem>>, %arg10: memref<1x128xf32, #tpu.memory_space<vmem>>, %arg11: memref<1x128xf32, #tpu.memory_space<vmem>>, %arg12: memref<1x128xf32, #tpu.memory_space<vmem>>, %arg13: memref<16x32xbf16, #tpu.memory_space<vmem>>, %arg14: memref<32x32xbf16, #tpu.memory_space<vmem>>, %arg15: memref<128x16xbf16, #tpu.memory_space<vmem>>, %arg16: memref<128x1xf32, #tpu.memory_space<vmem>>, %arg17: memref<128x1xf32, #tpu.memory_space<vmem>>, %arg18: memref<128x1xf32, #tpu.memory_space<vmem>>, %arg19: memref<128x1xf32, #tpu.memory_space<vmem>>, %arg20: memref<16x128xbf16, #tpu.memory_space<vmem>>, %arg21: memref<16x1xf32, #tpu.memory_space<vmem>>, %arg22: memref<16x1xf32, #tpu.memory_space<vmem>>, %arg23: memref<16x1xf32, #tpu.memory_space<vmem>>, %arg24: memref<16x1xf32, #tpu.memory_space<vmem>>, %arg25: memref<16x32xf32, #tpu.memory_space<vmem>>) attributes {dimension_semantics = [#tpu.dimension_semantics<arbitrary>], iteration_bounds = array<i64: 1>, scalar_prefetch = 0 : i64, scratch_operands = 0 : i64, tpu.core_type = #tpu.core_type<tc>, window_params = [{pipeline_mode = #tpu.pipeline_mode<synchronous>, transform_indices = @transform_0, window_bounds = array<i64: 16, 128>}, {pipeline_mode = #tpu.pipeline_mode<synchronous>, transform_indices = @transform_1, window_bounds = array<i64: 16, 16>}, {pipeline_mode = #tpu.pipeline_mode<synchronous>, transform_indices = @transform_2, window_bounds = array<i64: 128, 128>}, {pipeline_mode = #tpu.pipeline_mode<synchronous>, transform_indices = @transform_3, window_bounds = array<i64: 1, 128>}, {pipeline_mode = #tpu.pipeline_mode<synchronous>, transform_indices = @transform_4, window_bounds = array<i64: 1, 128>}, {pipeline_mode = #tpu.pipeline_mode<synchronous>, transform_indices = @transform_5, window_bounds = array<i64: 1, 128>}, {pipeline_mode = #tpu.pipeline_mode<synchronous>, transform_indices = @transform_6, window_bounds = array<i64: 1, 128>}, {pipeline_mode = #tpu.pipeline_mode<synchronous>, transform_indices = @transform_7, window_bounds = array<i64: 128, 128>}, {pipeline_mode = #tpu.pipeline_mode<synchronous>, transform_indices = @transform_8, window_bounds = array<i64: 1, 128>}, {pipeline_mode = #tpu.pipeline_mode<synchronous>, transform_indices = @transform_9, window_bounds = array<i64: 1, 128>}, {pipeline_mode = #tpu.pipeline_mode<synchronous>, transform_indices = @transform_10, window_bounds = array<i64: 1, 128>}, {pipeline_mode = #tpu.pipeline_mode<synchronous>, transform_indices = @transform_11, window_bounds = array<i64: 1, 128>}, {pipeline_mode = #tpu.pipeline_mode<synchronous>, transform_indices = @transform_12, window_bounds = array<i64: 16, 32>}, {pipeline_mode = #tpu.pipeline_mode<synchronous>, transform_indices = @transform_13, window_bounds = array<i64: 32, 32>}, {pipeline_mode = #tpu.pipeline_mode<synchronous>, transform_indices = @transform_14, window_bounds = array<i64: 128, 16>}, {pipeline_mode = #tpu.pipeline_mode<synchronous>, transform_indices = @transform_15, window_bounds = array<i64: 128, 1>}, {pipeline_mode = #tpu.pipeline_mode<synchronous>, transform_indices = @transform_16, window_bounds = array<i64: 128, 1>}, {pipeline_mode = #tpu.pipeline_mode<synchronous>, transform_indices = @transform_17, window_bounds = array<i64: 128, 1>}, {pipeline_mode = #tpu.pipeline_mode<synchronous>, transform_indices = @transform_18, window_bounds = array<i64: 128, 1>}, {pipeline_mode = #tpu.pipeline_mode<synchronous>, transform_indices = @transform_19, window_bounds = array<i64: 16, 128>}, {pipeline_mode = #tpu.pipeline_mode<synchronous>, transform_indices = @transform_20, window_bounds = array<i64: 16, 1>}, {pipeline_mode = #tpu.pipeline_mode<synchronous>, transform_indices = @transform_21, window_bounds = array<i64: 16, 1>}, {pipeline_mode = #tpu.pipeline_mode<synchronous>, transform_indices = @transform_22, window_bounds = array<i64: 16, 1>}, {pipeline_mode = #tpu.pipeline_mode<synchronous>, transform_indices = @transform_23, window_bounds = array<i64: 16, 1>}, {pipeline_mode = #tpu.pipeline_mode<synchronous>, transform_indices = @transform_24, window_bounds = array<i64: 16, 32>}]} {
    %c0 = arith.constant 0 : index
    %c0_0 = arith.constant 0 : index
    %0 = vector.load %arg2[%c0, %c0_0] : memref<16x16xbf16, #tpu.memory_space<vmem>>, vector<16x16xbf16>
    %c0_1 = arith.constant 0 : index
    %c0_2 = arith.constant 0 : index
    %1 = vector.load %arg1[%c0_1, %c0_2] : memref<16x128xbf16, #tpu.memory_space<vmem>>, vector<16x128xbf16>
    %c0_3 = arith.constant 0 : index
    %c0_4 = arith.constant 0 : index
    %2 = vector.load %arg3[%c0_3, %c0_4] : memref<128x128xbf16, #tpu.memory_space<vmem>>, vector<128x128xbf16>
    %cst = arith.constant dense<0.000000e+00> : vector<16x128xf32>
    %3 = tpu.matmul %1, %2, %cst {dimension_numbers = #tpu.dot_dimension_numbers<[1], [0], [0], [1], [0, 0, 1, 1], [], []>} : vector<16x128xbf16>, vector<128x128xbf16>, vector<16x128xf32> -> vector<16x128xf32>
    %4 = arith.truncf %3 : vector<16x128xf32> to vector<16x128xbf16>
    %cst_5 = arith.constant dense<0.000000e+00> : vector<16x128xf32>
    %5 = tpu.matmul %0, %4, %cst_5 {dimension_numbers = #tpu.dot_dimension_numbers<[1], [0], [0], [1], [0, 0, 1, 1], [], []>} : vector<16x16xbf16>, vector<16x128xbf16>, vector<16x128xf32> -> vector<16x128xf32>
    %c0_6 = arith.constant 0 : index
    %c0_7 = arith.constant 0 : index
    %6 = vector.load %arg4[%c0_6, %c0_7] : memref<1x128xf32, #tpu.memory_space<vmem>>, vector<1x128xf32>
    %7 = vector.broadcast %6 : vector<1x128xf32> to vector<16x128xf32>
    %8 = arith.addf %5, %7 : vector<16x128xf32>
    %c0_8 = arith.constant 0 : index
    %c0_9 = arith.constant 0 : index
    %9 = vector.load %arg5[%c0_8, %c0_9] : memref<1x128xf32, #tpu.memory_space<vmem>>, vector<1x128xf32>
    %c0_10 = arith.constant 0 : index
    %c0_11 = arith.constant 0 : index
    %10 = vector.load %arg6[%c0_10, %c0_11] : memref<1x128xf32, #tpu.memory_space<vmem>>, vector<1x128xf32>
    %c0_12 = arith.constant 0 : index
    %c0_13 = arith.constant 0 : index
    %11 = vector.load %arg7[%c0_12, %c0_13] : memref<1x128xf32, #tpu.memory_space<vmem>>, vector<1x128xf32>
    %cst_14 = arith.constant dense<0.000000e+00> : vector<128xf32>
    %12 = vector.multi_reduction <add>, %8, %cst_14 [0] : vector<16x128xf32> to vector<128xf32>
    %13 = vector.shape_cast %12 : vector<128xf32> to vector<1x128xf32>
    %cst_15 = arith.constant 1.600000e+01 : f32
    %14 = vector.broadcast %cst_15 : f32 to vector<1x128xf32>
    %15 = arith.divf %13, %14 : vector<1x128xf32>
    %16 = arith.mulf %9, %15 : vector<1x128xf32>
    %17 = vector.broadcast %16 : vector<1x128xf32> to vector<16x128xf32>
    %18 = arith.subf %8, %17 : vector<16x128xf32>
    %19 = arith.mulf %18, %18 : vector<16x128xf32>
    %cst_16 = arith.constant dense<0.000000e+00> : vector<128xf32>
    %20 = vector.multi_reduction <add>, %19, %cst_16 [0] : vector<16x128xf32> to vector<128xf32>
    %21 = vector.shape_cast %20 : vector<128xf32> to vector<1x128xf32>
    %cst_17 = arith.constant 1.600000e+01 : f32
    %22 = vector.broadcast %cst_17 : f32 to vector<1x128xf32>
    %23 = arith.divf %21, %22 : vector<1x128xf32>
    %24 = vector.broadcast %10 : vector<1x128xf32> to vector<16x128xf32>
    %25 = arith.mulf %24, %18 : vector<16x128xf32>
    %cst_18 = arith.constant 9.99999974E-6 : f32
    %26 = vector.broadcast %cst_18 : f32 to vector<1x128xf32>
    %27 = arith.addf %23, %26 : vector<1x128xf32>
    %28 = math.rsqrt %27 : vector<1x128xf32>
    %29 = vector.broadcast %28 : vector<1x128xf32> to vector<16x128xf32>
    %30 = arith.mulf %25, %29 : vector<16x128xf32>
    %31 = vector.broadcast %11 : vector<1x128xf32> to vector<16x128xf32>
    %32 = arith.addf %30, %31 : vector<16x128xf32>
    %cst_19 = arith.constant 0.000000e+00 : f32
    %33 = vector.broadcast %cst_19 : f32 to vector<16x128xf32>
    %34 = arith.maximumf %32, %33 : vector<16x128xf32>
    %35 = arith.truncf %34 : vector<16x128xf32> to vector<16x128xbf16>
    %c0_20 = arith.constant 0 : index
    %c0_21 = arith.constant 0 : index
    %36 = vector.load %arg8[%c0_20, %c0_21] : memref<128x128xbf16, #tpu.memory_space<vmem>>, vector<128x128xbf16>
    %cst_22 = arith.constant dense<0.000000e+00> : vector<16x128xf32>
    %37 = tpu.matmul %35, %36, %cst_22 {dimension_numbers = #tpu.dot_dimension_numbers<[1], [0], [0], [1], [0, 0, 1, 1], [], []>} : vector<16x128xbf16>, vector<128x128xbf16>, vector<16x128xf32> -> vector<16x128xf32>
    %38 = arith.truncf %37 : vector<16x128xf32> to vector<16x128xbf16>
    %cst_23 = arith.constant dense<0.000000e+00> : vector<16x128xf32>
    %39 = tpu.matmul %0, %38, %cst_23 {dimension_numbers = #tpu.dot_dimension_numbers<[1], [0], [0], [1], [0, 0, 1, 1], [], []>} : vector<16x16xbf16>, vector<16x128xbf16>, vector<16x128xf32> -> vector<16x128xf32>
    %c0_24 = arith.constant 0 : index
    %c0_25 = arith.constant 0 : index
    %40 = vector.load %arg9[%c0_24, %c0_25] : memref<1x128xf32, #tpu.memory_space<vmem>>, vector<1x128xf32>
    %41 = vector.broadcast %40 : vector<1x128xf32> to vector<16x128xf32>
    %42 = arith.addf %39, %41 : vector<16x128xf32>
    %c0_26 = arith.constant 0 : index
    %c0_27 = arith.constant 0 : index
    %43 = vector.load %arg10[%c0_26, %c0_27] : memref<1x128xf32, #tpu.memory_space<vmem>>, vector<1x128xf32>
    %c0_28 = arith.constant 0 : index
    %c0_29 = arith.constant 0 : index
    %44 = vector.load %arg11[%c0_28, %c0_29] : memref<1x128xf32, #tpu.memory_space<vmem>>, vector<1x128xf32>
    %c0_30 = arith.constant 0 : index
    %c0_31 = arith.constant 0 : index
    %45 = vector.load %arg12[%c0_30, %c0_31] : memref<1x128xf32, #tpu.memory_space<vmem>>, vector<1x128xf32>
    %cst_32 = arith.constant dense<0.000000e+00> : vector<128xf32>
    %46 = vector.multi_reduction <add>, %42, %cst_32 [0] : vector<16x128xf32> to vector<128xf32>
    %47 = vector.shape_cast %46 : vector<128xf32> to vector<1x128xf32>
    %cst_33 = arith.constant 1.600000e+01 : f32
    %48 = vector.broadcast %cst_33 : f32 to vector<1x128xf32>
    %49 = arith.divf %47, %48 : vector<1x128xf32>
    %50 = arith.mulf %43, %49 : vector<1x128xf32>
    %51 = vector.broadcast %50 : vector<1x128xf32> to vector<16x128xf32>
    %52 = arith.subf %42, %51 : vector<16x128xf32>
    %53 = arith.mulf %52, %52 : vector<16x128xf32>
    %cst_34 = arith.constant dense<0.000000e+00> : vector<128xf32>
    %54 = vector.multi_reduction <add>, %53, %cst_34 [0] : vector<16x128xf32> to vector<128xf32>
    %55 = vector.shape_cast %54 : vector<128xf32> to vector<1x128xf32>
    %cst_35 = arith.constant 1.600000e+01 : f32
    %56 = vector.broadcast %cst_35 : f32 to vector<1x128xf32>
    %57 = arith.divf %55, %56 : vector<1x128xf32>
    %58 = vector.broadcast %44 : vector<1x128xf32> to vector<16x128xf32>
    %59 = arith.mulf %58, %52 : vector<16x128xf32>
    %cst_36 = arith.constant 9.99999974E-6 : f32
    %60 = vector.broadcast %cst_36 : f32 to vector<1x128xf32>
    %61 = arith.addf %57, %60 : vector<1x128xf32>
    %62 = math.rsqrt %61 : vector<1x128xf32>
    %63 = vector.broadcast %62 : vector<1x128xf32> to vector<16x128xf32>
    %64 = arith.mulf %59, %63 : vector<16x128xf32>
    %65 = vector.broadcast %45 : vector<1x128xf32> to vector<16x128xf32>
    %66 = arith.addf %64, %65 : vector<16x128xf32>
    %cst_37 = arith.constant 0.000000e+00 : f32
    %67 = vector.broadcast %cst_37 : f32 to vector<16x128xf32>
    %68 = arith.maximumf %66, %67 : vector<16x128xf32>
    %c0_38 = arith.constant 0 : index
    %c0_39 = arith.constant 0 : index
    %69 = vector.load %arg14[%c0_38, %c0_39] : memref<32x32xbf16, #tpu.memory_space<vmem>>, vector<32x32xbf16>
    %c0_40 = arith.constant 0 : index
    %c0_41 = arith.constant 0 : index
    %70 = vector.load %arg15[%c0_40, %c0_41] : memref<128x16xbf16, #tpu.memory_space<vmem>>, vector<128x16xbf16>
    %c0_42 = arith.constant 0 : index
    %c0_43 = arith.constant 0 : index
    %71 = vector.load %arg13[%c0_42, %c0_43] : memref<16x32xbf16, #tpu.memory_space<vmem>>, vector<16x32xbf16>
    %cst_44 = arith.constant dense<0.000000e+00> : vector<128x32xf32>
    %72 = tpu.matmul %70, %71, %cst_44 {dimension_numbers = #tpu.dot_dimension_numbers<[1], [0], [0], [1], [0, 0, 1, 1], [], []>} : vector<128x16xbf16>, vector<16x32xbf16>, vector<128x32xf32> -> vector<128x32xf32>
    %73 = arith.truncf %72 : vector<128x32xf32> to vector<128x32xbf16>
    %cst_45 = arith.constant dense<0.000000e+00> : vector<128x32xf32>
    %74 = tpu.matmul %73, %69, %cst_45 {dimension_numbers = #tpu.dot_dimension_numbers<[1], [0], [0], [1], [0, 0, 1, 1], [], []>} : vector<128x32xbf16>, vector<32x32xbf16>, vector<128x32xf32> -> vector<128x32xf32>
    %c0_46 = arith.constant 0 : index
    %c0_47 = arith.constant 0 : index
    %75 = vector.load %arg16[%c0_46, %c0_47] : memref<128x1xf32, #tpu.memory_space<vmem>>, vector<128x1xf32>
    %76 = vector.broadcast %75 : vector<128x1xf32> to vector<128x32xf32>
    %77 = arith.addf %74, %76 : vector<128x32xf32>
    %c0_48 = arith.constant 0 : index
    %c0_49 = arith.constant 0 : index
    %78 = vector.load %arg17[%c0_48, %c0_49] : memref<128x1xf32, #tpu.memory_space<vmem>>, vector<128x1xf32>
    %c0_50 = arith.constant 0 : index
    %c0_51 = arith.constant 0 : index
    %79 = vector.load %arg18[%c0_50, %c0_51] : memref<128x1xf32, #tpu.memory_space<vmem>>, vector<128x1xf32>
    %c0_52 = arith.constant 0 : index
    %c0_53 = arith.constant 0 : index
    %80 = vector.load %arg19[%c0_52, %c0_53] : memref<128x1xf32, #tpu.memory_space<vmem>>, vector<128x1xf32>
    %cst_54 = arith.constant dense<0.000000e+00> : vector<128xf32>
    %81 = vector.multi_reduction <add>, %77, %cst_54 [1] : vector<128x32xf32> to vector<128xf32>
    %82 = vector.shape_cast %81 : vector<128xf32> to vector<128x1xf32>
    %cst_55 = arith.constant 3.200000e+01 : f32
    %83 = vector.broadcast %cst_55 : f32 to vector<128x1xf32>
    %84 = arith.divf %82, %83 : vector<128x1xf32>
    %85 = arith.mulf %78, %84 : vector<128x1xf32>
    %86 = vector.broadcast %85 : vector<128x1xf32> to vector<128x32xf32>
    %87 = arith.subf %77, %86 : vector<128x32xf32>
    %88 = arith.mulf %87, %87 : vector<128x32xf32>
    %cst_56 = arith.constant dense<0.000000e+00> : vector<128xf32>
    %89 = vector.multi_reduction <add>, %88, %cst_56 [1] : vector<128x32xf32> to vector<128xf32>
    %90 = vector.shape_cast %89 : vector<128xf32> to vector<128x1xf32>
    %cst_57 = arith.constant 3.200000e+01 : f32
    %91 = vector.broadcast %cst_57 : f32 to vector<128x1xf32>
    %92 = arith.divf %90, %91 : vector<128x1xf32>
    %93 = vector.broadcast %79 : vector<128x1xf32> to vector<128x32xf32>
    %94 = arith.mulf %93, %87 : vector<128x32xf32>
    %cst_58 = arith.constant 9.99999974E-6 : f32
    %95 = vector.broadcast %cst_58 : f32 to vector<128x1xf32>
    %96 = arith.addf %92, %95 : vector<128x1xf32>
    %97 = math.rsqrt %96 : vector<128x1xf32>
    %98 = vector.broadcast %97 : vector<128x1xf32> to vector<128x32xf32>
    %99 = arith.mulf %94, %98 : vector<128x32xf32>
    %100 = vector.broadcast %80 : vector<128x1xf32> to vector<128x32xf32>
    %101 = arith.addf %99, %100 : vector<128x32xf32>
    %cst_59 = arith.constant 0.000000e+00 : f32
    %102 = vector.broadcast %cst_59 : f32 to vector<128x32xf32>
    %103 = arith.maximumf %101, %102 : vector<128x32xf32>
    %104 = arith.truncf %103 : vector<128x32xf32> to vector<128x32xbf16>
    %cst_60 = arith.constant dense<0.000000e+00> : vector<128x32xf32>
    %105 = tpu.matmul %104, %69, %cst_60 {dimension_numbers = #tpu.dot_dimension_numbers<[1], [0], [0], [1], [0, 0, 1, 1], [], []>} : vector<128x32xbf16>, vector<32x32xbf16>, vector<128x32xf32> -> vector<128x32xf32>
    %c0_61 = arith.constant 0 : index
    %c0_62 = arith.constant 0 : index
    %106 = vector.load %arg20[%c0_61, %c0_62] : memref<16x128xbf16, #tpu.memory_space<vmem>>, vector<16x128xbf16>
    %107 = arith.truncf %105 : vector<128x32xf32> to vector<128x32xbf16>
    %cst_63 = arith.constant dense<0.000000e+00> : vector<16x32xf32>
    %108 = tpu.matmul %106, %107, %cst_63 {dimension_numbers = #tpu.dot_dimension_numbers<[1], [0], [0], [1], [0, 0, 1, 1], [], []>} : vector<16x128xbf16>, vector<128x32xbf16>, vector<16x32xf32> -> vector<16x32xf32>
    %c0_64 = arith.constant 0 : index
    %c0_65 = arith.constant 0 : index
    %109 = vector.load %arg21[%c0_64, %c0_65] : memref<16x1xf32, #tpu.memory_space<vmem>>, vector<16x1xf32>
    %110 = vector.broadcast %109 : vector<16x1xf32> to vector<16x32xf32>
    %111 = arith.addf %108, %110 : vector<16x32xf32>
    %c0_66 = arith.constant 0 : index
    %c0_67 = arith.constant 0 : index
    %112 = vector.load %arg22[%c0_66, %c0_67] : memref<16x1xf32, #tpu.memory_space<vmem>>, vector<16x1xf32>
    %c0_68 = arith.constant 0 : index
    %c0_69 = arith.constant 0 : index
    %113 = vector.load %arg23[%c0_68, %c0_69] : memref<16x1xf32, #tpu.memory_space<vmem>>, vector<16x1xf32>
    %c0_70 = arith.constant 0 : index
    %c0_71 = arith.constant 0 : index
    %114 = vector.load %arg24[%c0_70, %c0_71] : memref<16x1xf32, #tpu.memory_space<vmem>>, vector<16x1xf32>
    %cst_72 = arith.constant dense<0.000000e+00> : vector<16xf32>
    %115 = vector.multi_reduction <add>, %111, %cst_72 [1] : vector<16x32xf32> to vector<16xf32>
    %116 = vector.shape_cast %115 : vector<16xf32> to vector<16x1xf32>
    %cst_73 = arith.constant 3.200000e+01 : f32
    %117 = vector.broadcast %cst_73 : f32 to vector<16x1xf32>
    %118 = arith.divf %116, %117 : vector<16x1xf32>
    %119 = arith.mulf %112, %118 : vector<16x1xf32>
    %120 = vector.broadcast %119 : vector<16x1xf32> to vector<16x32xf32>
    %121 = arith.subf %111, %120 : vector<16x32xf32>
    %122 = arith.mulf %121, %121 : vector<16x32xf32>
    %cst_74 = arith.constant dense<0.000000e+00> : vector<16xf32>
    %123 = vector.multi_reduction <add>, %122, %cst_74 [1] : vector<16x32xf32> to vector<16xf32>
    %124 = vector.shape_cast %123 : vector<16xf32> to vector<16x1xf32>
    %cst_75 = arith.constant 3.200000e+01 : f32
    %125 = vector.broadcast %cst_75 : f32 to vector<16x1xf32>
    %126 = arith.divf %124, %125 : vector<16x1xf32>
    %127 = vector.broadcast %113 : vector<16x1xf32> to vector<16x32xf32>
    %128 = arith.mulf %127, %121 : vector<16x32xf32>
    %cst_76 = arith.constant 9.99999974E-6 : f32
    %129 = vector.broadcast %cst_76 : f32 to vector<16x1xf32>
    %130 = arith.addf %126, %129 : vector<16x1xf32>
    %131 = math.rsqrt %130 : vector<16x1xf32>
    %132 = vector.broadcast %131 : vector<16x1xf32> to vector<16x32xf32>
    %133 = arith.mulf %128, %132 : vector<16x32xf32>
    %134 = vector.broadcast %114 : vector<16x1xf32> to vector<16x32xf32>
    %135 = arith.addf %133, %134 : vector<16x32xf32>
    %cst_77 = arith.constant 0.000000e+00 : f32
    %136 = vector.broadcast %cst_77 : f32 to vector<16x32xf32>
    %137 = arith.maximumf %135, %136 : vector<16x32xf32>
    %138 = vector.extract_strided_slice %68 {offsets = [0, 0], sizes = [16, 32], strides = [1, 1]} : vector<16x128xf32> to vector<16x32xf32>
    %139 = arith.addf %138, %137 : vector<16x32xf32>
    %c0_78 = arith.constant 0 : index
    %c0_79 = arith.constant 0 : index
    %140 = vector.load %arg25[%c0_78, %c0_79] : memref<16x32xf32, #tpu.memory_space<vmem>>, vector<16x32xf32>
    tpu.vector_store %arg25[%c0_78, %c0_79], %139 {strides = array<i32>} : memref<16x32xf32, #tpu.memory_space<vmem>>, vector<16x32xf32>,
    return
  }
  func.func @transform_0(%arg0: i32) -> (i32, i32) {
    %c0_i32 = arith.constant 0 : i32
    %c0_i32_0 = arith.constant 0 : i32
    %c0_i32_1 = arith.constant 0 : i32
    return %c0_i32, %c0_i32_0 : i32, i32
  }
  func.func @transform_1(%arg0: i32) -> (i32, i32) {
    %c0_i32 = arith.constant 0 : i32
    %c0_i32_0 = arith.constant 0 : i32
    %c0_i32_1 = arith.constant 0 : i32
    return %c0_i32, %c0_i32_0 : i32, i32
  }
  func.func @transform_2(%arg0: i32) -> (i32, i32) {
    %c0_i32 = arith.constant 0 : i32
    %c0_i32_0 = arith.constant 0 : i32
    %c0_i32_1 = arith.constant 0 : i32
    return %c0_i32, %c0_i32_0 : i32, i32
  }
  func.func @transform_3(%arg0: i32) -> (i32, i32) {
    %c0_i32 = arith.constant 0 : i32
    %c0_i32_0 = arith.constant 0 : i32
    %c0_i32_1 = arith.constant 0 : i32
    return %c0_i32, %c0_i32_0 : i32, i32
  }
  func.func @transform_4(%arg0: i32) -> (i32, i32) {
    %c0_i32 = arith.constant 0 : i32
    %c0_i32_0 = arith.constant 0 : i32
    %c0_i32_1 = arith.constant 0 : i32
    return %c0_i32, %c0_i32_0 : i32, i32
  }
  func.func @transform_5(%arg0: i32) -> (i32, i32) {
    %c0_i32 = arith.constant 0 : i32
    %c0_i32_0 = arith.constant 0 : i32
    %c0_i32_1 = arith.constant 0 : i32
    return %c0_i32, %c0_i32_0 : i32, i32
  }
  func.func @transform_6(%arg0: i32) -> (i32, i32) {
    %c0_i32 = arith.constant 0 : i32
    %c0_i32_0 = arith.constant 0 : i32
    %c0_i32_1 = arith.constant 0 : i32
    return %c0_i32, %c0_i32_0 : i32, i32
  }
  func.func @transform_7(%arg0: i32) -> (i32, i32) {
    %c0_i32 = arith.constant 0 : i32
    %c0_i32_0 = arith.constant 0 : i32
    %c0_i32_1 = arith.constant 0 : i32
    return %c0_i32, %c0_i32_0 : i32, i32
  }
  func.func @transform_8(%arg0: i32) -> (i32, i32) {
    %c0_i32 = arith.constant 0 : i32
    %c0_i32_0 = arith.constant 0 : i32
    %c0_i32_1 = arith.constant 0 : i32
    return %c0_i32, %c0_i32_0 : i32, i32
  }
  func.func @transform_9(%arg0: i32) -> (i32, i32) {
    %c0_i32 = arith.constant 0 : i32
    %c0_i32_0 = arith.constant 0 : i32
    %c0_i32_1 = arith.constant 0 : i32
    return %c0_i32, %c0_i32_0 : i32, i32
  }
  func.func @transform_10(%arg0: i32) -> (i32, i32) {
    %c0_i32 = arith.constant 0 : i32
    %c0_i32_0 = arith.constant 0 : i32
    %c0_i32_1 = arith.constant 0 : i32
    return %c0_i32, %c0_i32_0 : i32, i32
  }
  func.func @transform_11(%arg0: i32) -> (i32, i32) {
    %c0_i32 = arith.constant 0 : i32
    %c0_i32_0 = arith.constant 0 : i32
    %c0_i32_1 = arith.constant 0 : i32
    return %c0_i32, %c0_i32_0 : i32, i32
  }
  func.func @transform_12(%arg0: i32) -> (i32, i32) {
    %c0_i32 = arith.constant 0 : i32
    %c0_i32_0 = arith.constant 0 : i32
    %c0_i32_1 = arith.constant 0 : i32
    return %c0_i32, %c0_i32_0 : i32, i32
  }
  func.func @transform_13(%arg0: i32) -> (i32, i32) {
    %c0_i32 = arith.constant 0 : i32
    %c0_i32_0 = arith.constant 0 : i32
    %c0_i32_1 = arith.constant 0 : i32
    return %c0_i32, %c0_i32_0 : i32, i32
  }
  func.func @transform_14(%arg0: i32) -> (i32, i32) {
    %c0_i32 = arith.constant 0 : i32
    %c0_i32_0 = arith.constant 0 : i32
    %c0_i32_1 = arith.constant 0 : i32
    return %c0_i32, %c0_i32_0 : i32, i32
  }
  func.func @transform_15(%arg0: i32) -> (i32, i32) {
    %c0_i32 = arith.constant 0 : i32
    %c0_i32_0 = arith.constant 0 : i32
    %c0_i32_1 = arith.constant 0 : i32
    return %c0_i32, %c0_i32_0 : i32, i32
  }
  func.func @transform_16(%arg0: i32) -> (i32, i32) {
    %c0_i32 = arith.constant 0 : i32
    %c0_i32_0 = arith.constant 0 : i32
    %c0_i32_1 = arith.constant 0 : i32
    return %c0_i32, %c0_i32_0 : i32, i32
  }
  func.func @transform_17(%arg0: i32) -> (i32, i32) {
    %c0_i32 = arith.constant 0 : i32
    %c0_i32_0 = arith.constant 0 : i32
    %c0_i32_1 = arith.constant 0 : i32
    return %c0_i32, %c0_i32_0 : i32, i32
  }
  func.func @transform_18(%arg0: i32) -> (i32, i32) {
    %c0_i32 = arith.constant 0 : i32
    %c0_i32_0 = arith.constant 0 : i32
    %c0_i32_1 = arith.constant 0 : i32
    return %c0_i32, %c0_i32_0 : i32, i32
  }
  func.func @transform_19(%arg0: i32) -> (i32, i32) {
    %c0_i32 = arith.constant 0 : i32
    %c0_i32_0 = arith.constant 0 : i32
    %c0_i32_1 = arith.constant 0 : i32
    return %c0_i32, %c0_i32_0 : i32, i32
  }
  func.func @transform_20(%arg0: i32) -> (i32, i32) {
    %c0_i32 = arith.constant 0 : i32
    %c0_i32_0 = arith.constant 0 : i32
    %c0_i32_1 = arith.constant 0 : i32
    return %c0_i32, %c0_i32_0 : i32, i32
  }
  func.func @transform_21(%arg0: i32) -> (i32, i32) {
    %c0_i32 = arith.constant 0 : i32
    %c0_i32_0 = arith.constant 0 : i32
    %c0_i32_1 = arith.constant 0 : i32
    return %c0_i32, %c0_i32_0 : i32, i32
  }
  func.func @transform_22(%arg0: i32) -> (i32, i32) {
    %c0_i32 = arith.constant 0 : i32
    %c0_i32_0 = arith.constant 0 : i32
    %c0_i32_1 = arith.constant 0 : i32
    return %c0_i32, %c0_i32_0 : i32, i32
  }
  func.func @transform_23(%arg0: i32) -> (i32, i32) {
    %c0_i32 = arith.constant 0 : i32
    %c0_i32_0 = arith.constant 0 : i32
    %c0_i32_1 = arith.constant 0 : i32
    return %c0_i32, %c0_i32_0 : i32, i32
  }
  func.func @transform_24(%arg0: i32) -> (i32, i32) {
    %c0_i32 = arith.constant 0 : i32
    %c0_i32_0 = arith.constant 0 : i32
    %c0_i32_1 = arith.constant 0 : i32
    return %c0_i32, %c0_i32_0 : i32, i32
  }
}

module attributes {stable_mosaic.version = 11 : i64} {
  func.func @ae_gcn_fused_kernel(%arg0: i32, %arg1: memref<16x128xbf16, #tpu.memory_space<vmem>>, %arg2: memref<16x16xbf16, #tpu.memory_space<vmem>>, %arg3: memref<128x128xbf16, #tpu.memory_space<vmem>>, %arg4: memref<1x128xf32, #tpu.memory_space<vmem>>, %arg5: memref<1x128xf32, #tpu.memory_space<vmem>>, %arg6: memref<1x128xf32, #tpu.memory_space<vmem>>, %arg7: memref<1x128xf32, #tpu.memory_space<vmem>>, %arg8: memref<128x128xbf16, #tpu.memory_space<vmem>>, %arg9: memref<1x128xf32, #tpu.memory_space<vmem>>, %arg10: memref<1x128xf32, #tpu.memory_space<vmem>>, %arg11: memref<1x128xf32, #tpu.memory_space<vmem>>, %arg12: memref<1x128xf32, #tpu.memory_space<vmem>>, %arg13: memref<16x32xbf16, #tpu.memory_space<vmem>>, %arg14: memref<32x32xbf16, #tpu.memory_space<vmem>>, %arg15: memref<128x16xbf16, #tpu.memory_space<vmem>>, %arg16: memref<128x1xf32, #tpu.memory_space<vmem>>, %arg17: memref<128x1xf32, #tpu.memory_space<vmem>>, %arg18: memref<128x1xf32, #tpu.memory_space<vmem>>, %arg19: memref<128x1xf32, #tpu.memory_space<vmem>>, %arg20: memref<16x128xbf16, #tpu.memory_space<vmem>>, %arg21: memref<16x1xf32, #tpu.memory_space<vmem>>, %arg22: memref<16x1xf32, #tpu.memory_space<vmem>>, %arg23: memref<16x1xf32, #tpu.memory_space<vmem>>, %arg24: memref<16x1xf32, #tpu.memory_space<vmem>>, %arg25: memref<16x32xf32, #tpu.memory_space<vmem>>) attributes {dimension_semantics = [#tpu.dimension_semantics<arbitrary>], iteration_bounds = array<i64: 1>, scalar_prefetch = 0 : i64, scratch_operands = 0 : i64, tpu.core_type = #tpu.core_type<tc>, window_params = [{pipeline_mode = #tpu.pipeline_mode<synchronous>, transform_indices = @transform_0, window_bounds = array<i64: 16, 128>}, {pipeline_mode = #tpu.pipeline_mode<synchronous>, transform_indices = @transform_1, window_bounds = array<i64: 16, 16>}, {pipeline_mode = #tpu.pipeline_mode<synchronous>, transform_indices = @transform_2, window_bounds = array<i64: 128, 128>}, {pipeline_mode = #tpu.pipeline_mode<synchronous>, transform_indices = @transform_3, window_bounds = array<i64: 1, 128>}, {pipeline_mode = #tpu.pipeline_mode<synchronous>, transform_indices = @transform_4, window_bounds = array<i64: 1, 128>}, {pipeline_mode = #tpu.pipeline_mode<synchronous>, transform_indices = @transform_5, window_bounds = array<i64: 1, 128>}, {pipeline_mode = #tpu.pipeline_mode<synchronous>, transform_indices = @transform_6, window_bounds = array<i64: 1, 128>}, {pipeline_mode = #tpu.pipeline_mode<synchronous>, transform_indices = @transform_7, window_bounds = array<i64: 128, 128>}, {pipeline_mode = #tpu.pipeline_mode<synchronous>, transform_indices = @transform_8, window_bounds = array<i64: 1, 128>}, {pipeline_mode = #tpu.pipeline_mode<synchronous>, transform_indices = @transform_9, window_bounds = array<i64: 1, 128>}, {pipeline_mode = #tpu.pipeline_mode<synchronous>, transform_indices = @transform_10, window_bounds = array<i64: 1, 128>}, {pipeline_mode = #tpu.pipeline_mode<synchronous>, transform_indices = @transform_11, window_bounds = array<i64: 1, 128>}, {pipeline_mode = #tpu.pipeline_mode<synchronous>, transform_indices = @transform_12, window_bounds = array<i64: 16, 32>}, {pipeline_mode = #tpu.pipeline_mode<synchronous>, transform_indices = @transform_13, window_bounds = array<i64: 32, 32>}, {pipeline_mode = #tpu.pipeline_mode<synchronous>, transform_indices = @transform_14, window_bounds = array<i64: 128, 16>}, {pipeline_mode = #tpu.pipeline_mode<synchronous>, transform_indices = @transform_15, window_bounds = array<i64: 128, 1>}, {pipeline_mode = #tpu.pipeline_mode<synchronous>, transform_indices = @transform_16, window_bounds = array<i64: 128, 1>}, {pipeline_mode = #tpu.pipeline_mode<synchronous>, transform_indices = @transform_17, window_bounds = array<i64: 128, 1>}, {pipeline_mode = #tpu.pipeline_mode<synchronous>, transform_indices = @transform_18, window_bounds = array<i64: 128, 1>}, {pipeline_mode = #tpu.pipeline_mode<synchronous>, transform_indices = @transform_19, window_bounds = array<i64: 16, 128>}, {pipeline_mode = #tpu.pipeline_mode<synchronous>, transform_indices = @transform_20, window_bounds = array<i64: 16, 1>}, {pipeline_mode = #tpu.pipeline_mode<synchronous>, transform_indices = @transform_21, window_bounds = array<i64: 16, 1>}, {pipeline_mode = #tpu.pipeline_mode<synchronous>, transform_indices = @transform_22, window_bounds = array<i64: 16, 1>}, {pipeline_mode = #tpu.pipeline_mode<synchronous>, transform_indices = @transform_23, window_bounds = array<i64: 16, 1>}, {pipeline_mode = #tpu.pipeline_mode<synchronous>, transform_indices = @transform_24, window_bounds = array<i64: 16, 32>}]} {
    %c0 = arith.constant 0 : index
    %c0_0 = arith.constant 0 : index
    %0 = vector.load %arg2[%c0, %c0_0] : memref<16x16xbf16, #tpu.memory_space<vmem>>, vector<16x16xbf16>
    %c0_1 = arith.constant 0 : index
    %c0_2 = arith.constant 0 : index
    %1 = vector.load %arg1[%c0_1, %c0_2] : memref<16x128xbf16, #tpu.memory_space<vmem>>, vector<16x128xbf16>
    %c0_3 = arith.constant 0 : index
    %c0_4 = arith.constant 0 : index
    %2 = vector.load %arg3[%c0_3, %c0_4] : memref<128x128xbf16, #tpu.memory_space<vmem>>, vector<128x128xbf16>
    %cst = arith.constant dense<0.000000e+00> : vector<16x128xf32>
    %3 = tpu.matmul %1, %2, %cst {dimension_numbers = #tpu.dot_dimension_numbers<[1], [0], [0], [1], [0, 0, 1, 1], [], []>} : vector<16x128xbf16>, vector<128x128xbf16>, vector<16x128xf32> -> vector<16x128xf32>
    %4 = arith.truncf %3 : vector<16x128xf32> to vector<16x128xbf16>
    %cst_5 = arith.constant dense<0.000000e+00> : vector<16x128xf32>
    %5 = tpu.matmul %0, %4, %cst_5 {dimension_numbers = #tpu.dot_dimension_numbers<[1], [0], [0], [1], [0, 0, 1, 1], [], []>} : vector<16x16xbf16>, vector<16x128xbf16>, vector<16x128xf32> -> vector<16x128xf32>
    %c0_6 = arith.constant 0 : index
    %c0_7 = arith.constant 0 : index
    %6 = vector.load %arg4[%c0_6, %c0_7] : memref<1x128xf32, #tpu.memory_space<vmem>>, vector<1x128xf32>
    %7 = vector.broadcast %6 : vector<1x128xf32> to vector<16x128xf32>
    %8 = arith.addf %5, %7 : vector<16x128xf32>
    %c0_8 = arith.constant 0 : index
    %c0_9 = arith.constant 0 : index
    %9 = vector.load %arg5[%c0_8, %c0_9] : memref<1x128xf32, #tpu.memory_space<vmem>>, vector<1x128xf32>
    %c0_10 = arith.constant 0 : index
    %c0_11 = arith.constant 0 : index
    %10 = vector.load %arg6[%c0_10, %c0_11] : memref<1x128xf32, #tpu.memory_space<vmem>>, vector<1x128xf32>
    %c0_12 = arith.constant 0 : index
    %c0_13 = arith.constant 0 : index
    %11 = vector.load %arg7[%c0_12, %c0_13] : memref<1x128xf32, #tpu.memory_space<vmem>>, vector<1x128xf32>
    %cst_14 = arith.constant dense<0.000000e+00> : vector<128xf32>
    %12 = vector.multi_reduction <add>, %8, %cst_14 [0] : vector<16x128xf32> to vector<128xf32>
    %13 = vector.shape_cast %12 : vector<128xf32> to vector<1x128xf32>
    %cst_15 = arith.constant 1.600000e+01 : f32
    %14 = vector.broadcast %cst_15 : f32 to vector<1x128xf32>
    %15 = arith.divf %13, %14 : vector<1x128xf32>
    %16 = arith.mulf %9, %15 : vector<1x128xf32>
    %17 = vector.broadcast %16 : vector<1x128xf32> to vector<16x128xf32>
    %18 = arith.subf %8, %17 : vector<16x128xf32>
    %19 = arith.mulf %18, %18 : vector<16x128xf32>
    %cst_16 = arith.constant dense<0.000000e+00> : vector<128xf32>
    %20 = vector.multi_reduction <add>, %19, %cst_16 [0] : vector<16x128xf32> to vector<128xf32>
    %21 = vector.shape_cast %20 : vector<128xf32> to vector<1x128xf32>
    %cst_17 = arith.constant 1.600000e+01 : f32
    %22 = vector.broadcast %cst_17 : f32 to vector<1x128xf32>
    %23 = arith.divf %21, %22 : vector<1x128xf32>
    %24 = vector.broadcast %10 : vector<1x128xf32> to vector<16x128xf32>
    %25 = arith.mulf %24, %18 : vector<16x128xf32>
    %cst_18 = arith.constant 9.99999974E-6 : f32
    %26 = vector.broadcast %cst_18 : f32 to vector<1x128xf32>
    %27 = arith.addf %23, %26 : vector<1x128xf32>
    %28 = math.rsqrt %27 : vector<1x128xf32>
    %29 = vector.broadcast %28 : vector<1x128xf32> to vector<16x128xf32>
    %30 = arith.mulf %25, %29 : vector<16x128xf32>
    %31 = vector.broadcast %11 : vector<1x128xf32> to vector<16x128xf32>
    %32 = arith.addf %30, %31 : vector<16x128xf32>
    %cst_19 = arith.constant 0.000000e+00 : f32
    %33 = vector.broadcast %cst_19 : f32 to vector<16x128xf32>
    %34 = arith.maximumf %32, %33 : vector<16x128xf32>
    %35 = arith.truncf %34 : vector<16x128xf32> to vector<16x128xbf16>
    %c0_20 = arith.constant 0 : index
    %c0_21 = arith.constant 0 : index
    %36 = vector.load %arg8[%c0_20, %c0_21] : memref<128x128xbf16, #tpu.memory_space<vmem>>, vector<128x128xbf16>
    %cst_22 = arith.constant dense<0.000000e+00> : vector<16x128xf32>
    %37 = tpu.matmul %35, %36, %cst_22 {dimension_numbers = #tpu.dot_dimension_numbers<[1], [0], [0], [1], [0, 0, 1, 1], [], []>} : vector<16x128xbf16>, vector<128x128xbf16>, vector<16x128xf32> -> vector<16x128xf32>
    %38 = arith.truncf %37 : vector<16x128xf32> to vector<16x128xbf16>
    %cst_23 = arith.constant dense<0.000000e+00> : vector<16x128xf32>
    %39 = tpu.matmul %0, %38, %cst_23 {dimension_numbers = #tpu.dot_dimension_numbers<[1], [0], [0], [1], [0, 0, 1, 1], [], []>} : vector<16x16xbf16>, vector<16x128xbf16>, vector<16x128xf32> -> vector<16x128xf32>
    %c0_24 = arith.constant 0 : index
    %c0_25 = arith.constant 0 : index
    %40 = vector.load %arg9[%c0_24, %c0_25] : memref<1x128xf32, #tpu.memory_space<vmem>>, vector<1x128xf32>
    %41 = vector.broadcast %40 : vector<1x128xf32> to vector<16x128xf32>
    %42 = arith.addf %39, %41 : vector<16x128xf32>
    %c0_26 = arith.constant 0 : index
    %c0_27 = arith.constant 0 : index
    %43 = vector.load %arg10[%c0_26, %c0_27] : memref<1x128xf32, #tpu.memory_space<vmem>>, vector<1x128xf32>
    %c0_28 = arith.constant 0 : index
    %c0_29 = arith.constant 0 : index
    %44 = vector.load %arg11[%c0_28, %c0_29] : memref<1x128xf32, #tpu.memory_space<vmem>>, vector<1x128xf32>
    %c0_30 = arith.constant 0 : index
    %c0_31 = arith.constant 0 : index
    %45 = vector.load %arg12[%c0_30, %c0_31] : memref<1x128xf32, #tpu.memory_space<vmem>>, vector<1x128xf32>
    %cst_32 = arith.constant dense<0.000000e+00> : vector<128xf32>
    %46 = vector.multi_reduction <add>, %42, %cst_32 [0] : vector<16x128xf32> to vector<128xf32>
    %47 = vector.shape_cast %46 : vector<128xf32> to vector<1x128xf32>
    %cst_33 = arith.constant 1.600000e+01 : f32
    %48 = vector.broadcast %cst_33 : f32 to vector<1x128xf32>
    %49 = arith.divf %47, %48 : vector<1x128xf32>
    %50 = arith.mulf %43, %49 : vector<1x128xf32>
    %51 = vector.broadcast %50 : vector<1x128xf32> to vector<16x128xf32>
    %52 = arith.subf %42, %51 : vector<16x128xf32>
    %53 = arith.mulf %52, %52 : vector<16x128xf32>
    %cst_34 = arith.constant dense<0.000000e+00> : vector<128xf32>
    %54 = vector.multi_reduction <add>, %53, %cst_34 [0] : vector<16x128xf32> to vector<128xf32>
    %55 = vector.shape_cast %54 : vector<128xf32> to vector<1x128xf32>
    %cst_35 = arith.constant 1.600000e+01 : f32
    %56 = vector.broadcast %cst_35 : f32 to vector<1x128xf32>
    %57 = arith.divf %55, %56 : vector<1x128xf32>
    %58 = vector.broadcast %44 : vector<1x128xf32> to vector<16x128xf32>
    %59 = arith.mulf %58, %52 : vector<16x128xf32>
    %cst_36 = arith.constant 9.99999974E-6 : f32
    %60 = vector.broadcast %cst_36 : f32 to vector<1x128xf32>
    %61 = arith.addf %57, %60 : vector<1x128xf32>
    %62 = math.rsqrt %61 : vector<1x128xf32>
    %63 = vector.broadcast %62 : vector<1x128xf32> to vector<16x128xf32>
    %64 = arith.mulf %59, %63 : vector<16x128xf32>
    %65 = vector.broadcast %45 : vector<1x128xf32> to vector<16x128xf32>
    %66 = arith.addf %64, %65 : vector<16x128xf32>
    %cst_37 = arith.constant 0.000000e+00 : f32
    %67 = vector.broadcast %cst_37 : f32 to vector<16x128xf32>
    %68 = arith.maximumf %66, %67 : vector<16x128xf32>
    %c0_38 = arith.constant 0 : index
    %c0_39 = arith.constant 0 : index
    %69 = vector.load %arg14[%c0_38, %c0_39] : memref<32x32xbf16, #tpu.memory_space<vmem>>, vector<32x32xbf16>
    %c0_40 = arith.constant 0 : index
    %c0_41 = arith.constant 0 : index
    %70 = vector.load %arg15[%c0_40, %c0_41] : memref<128x16xbf16, #tpu.memory_space<vmem>>, vector<128x16xbf16>
    %c0_42 = arith.constant 0 : index
    %c0_43 = arith.constant 0 : index
    %71 = vector.load %arg13[%c0_42, %c0_43] : memref<16x32xbf16, #tpu.memory_space<vmem>>, vector<16x32xbf16>
    %cst_44 = arith.constant dense<0.000000e+00> : vector<128x32xf32>
    %72 = tpu.matmul %70, %71, %cst_44 {dimension_numbers = #tpu.dot_dimension_numbers<[1], [0], [0], [1], [0, 0, 1, 1], [], []>} : vector<128x16xbf16>, vector<16x32xbf16>, vector<128x32xf32> -> vector<128x32xf32>
    %73 = arith.truncf %72 : vector<128x32xf32> to vector<128x32xbf16>
    %cst_45 = arith.constant dense<0.000000e+00> : vector<128x32xf32>
    %74 = tpu.matmul %73, %69, %cst_45 {dimension_numbers = #tpu.dot_dimension_numbers<[1], [0], [0], [1], [0, 0, 1, 1], [], []>} : vector<128x32xbf16>, vector<32x32xbf16>, vector<128x32xf32> -> vector<128x32xf32>
    %c0_46 = arith.constant 0 : index
    %c0_47 = arith.constant 0 : index
    %75 = vector.load %arg16[%c0_46, %c0_47] : memref<128x1xf32, #tpu.memory_space<vmem>>, vector<128x1xf32>
    %76 = vector.broadcast %75 : vector<128x1xf32> to vector<128x32xf32>
    %77 = arith.addf %74, %76 : vector<128x32xf32>
    %c0_48 = arith.constant 0 : index
    %c0_49 = arith.constant 0 : index
    %78 = vector.load %arg17[%c0_48, %c0_49] : memref<128x1xf32, #tpu.memory_space<vmem>>, vector<128x1xf32>
    %c0_50 = arith.constant 0 : index
    %c0_51 = arith.constant 0 : index
    %79 = vector.load %arg18[%c0_50, %c0_51] : memref<128x1xf32, #tpu.memory_space<vmem>>, vector<128x1xf32>
    %c0_52 = arith.constant 0 : index
    %c0_53 = arith.constant 0 : index
    %80 = vector.load %arg19[%c0_52, %c0_53] : memref<128x1xf32, #tpu.memory_space<vmem>>, vector<128x1xf32>
    %cst_54 = arith.constant dense<0.000000e+00> : vector<128xf32>
    %81 = vector.multi_reduction <add>, %77, %cst_54 [1] : vector<128x32xf32> to vector<128xf32>
    %82 = vector.shape_cast %81 : vector<128xf32> to vector<128x1xf32>
    %cst_55 = arith.constant 3.200000e+01 : f32
    %83 = vector.broadcast %cst_55 : f32 to vector<128x1xf32>
    %84 = arith.divf %82, %83 : vector<128x1xf32>
    %85 = arith.mulf %78, %84 : vector<128x1xf32>
    %86 = vector.broadcast %85 : vector<128x1xf32> to vector<128x32xf32>
    %87 = arith.subf %77, %86 : vector<128x32xf32>
    %88 = arith.mulf %87, %87 : vector<128x32xf32>
    %cst_56 = arith.constant dense<0.000000e+00> : vector<128xf32>
    %89 = vector.multi_reduction <add>, %88, %cst_56 [1] : vector<128x32xf32> to vector<128xf32>
    %90 = vector.shape_cast %89 : vector<128xf32> to vector<128x1xf32>
    %cst_57 = arith.constant 3.200000e+01 : f32
    %91 = vector.broadcast %cst_57 : f32 to vector<128x1xf32>
    %92 = arith.divf %90, %91 : vector<128x1xf32>
    %93 = vector.broadcast %79 : vector<128x1xf32> to vector<128x32xf32>
    %94 = arith.mulf %93, %87 : vector<128x32xf32>
    %cst_58 = arith.constant 9.99999974E-6 : f32
    %95 = vector.broadcast %cst_58 : f32 to vector<128x1xf32>
    %96 = arith.addf %92, %95 : vector<128x1xf32>
    %97 = math.rsqrt %96 : vector<128x1xf32>
    %98 = vector.broadcast %97 : vector<128x1xf32> to vector<128x32xf32>
    %99 = arith.mulf %94, %98 : vector<128x32xf32>
    %100 = vector.broadcast %80 : vector<128x1xf32> to vector<128x32xf32>
    %101 = arith.addf %99, %100 : vector<128x32xf32>
    %cst_59 = arith.constant 0.000000e+00 : f32
    %102 = vector.broadcast %cst_59 : f32 to vector<128x32xf32>
    %103 = arith.maximumf %101, %102 : vector<128x32xf32>
    %104 = arith.truncf %103 : vector<128x32xf32> to vector<128x32xbf16>
    %cst_60 = arith.constant dense<0.000000e+00> : vector<128x32xf32>
    %105 = tpu.matmul %104, %69, %cst_60 {dimension_numbers = #tpu.dot_dimension_numbers<[1], [0], [0], [1], [0, 0, 1, 1], [], []>} : vector<128x32xbf16>, vector<32x32xbf16>, vector<128x32xf32> -> vector<128x32xf32>
    %c0_61 = arith.constant 0 : index
    %c0_62 = arith.constant 0 : index
    %106 = vector.load %arg20[%c0_61, %c0_62] : memref<16x128xbf16, #tpu.memory_space<vmem>>, vector<16x128xbf16>
    %107 = arith.truncf %105 : vector<128x32xf32> to vector<128x32xbf16>
    %cst_63 = arith.constant dense<0.000000e+00> : vector<16x32xf32>
    %108 = tpu.matmul %106, %107, %cst_63 {dimension_numbers = #tpu.dot_dimension_numbers<[1], [0], [0], [1], [0, 0, 1, 1], [], []>} : vector<16x128xbf16>, vector<128x32xbf16>, vector<16x32xf32> -> vector<16x32xf32>
    %c0_64 = arith.constant 0 : index
    %c0_65 = arith.constant 0 : index
    %109 = vector.load %arg21[%c0_64, %c0_65] : memref<16x1xf32, #tpu.memory_space<vmem>>, vector<16x1xf32>
    %110 = vector.broadcast %109 : vector<16x1xf32> to vector<16x32xf32>
    %111 = arith.addf %108, %110 : vector<16x32xf32>
    %c0_66 = arith.constant 0 : index
    %c0_67 = arith.constant 0 : index
    %112 = vector.load %arg22[%c0_66, %c0_67] : memref<16x1xf32, #tpu.memory_space<vmem>>, vector<16x1xf32>
    %c0_68 = arith.constant 0 : index
    %c0_69 = arith.constant 0 : index
    %113 = vector.load %arg23[%c0_68, %c0_69] : memref<16x1xf32, #tpu.memory_space<vmem>>, vector<16x1xf32>
    %c0_70 = arith.constant 0 : index
    %c0_71 = arith.constant 0 : index
    %114 = vector.load %arg24[%c0_70, %c0_71] : memref<16x1xf32, #tpu.memory_space<vmem>>, vector<16x1xf32>
    %cst_72 = arith.constant dense<0.000000e+00> : vector<16xf32>
    %115 = vector.multi_reduction <add>, %111, %cst_72 [1] : vector<16x32xf32> to vector<16xf32>
    %116 = vector.shape_cast %115 : vector<16xf32> to vector<16x1xf32>
    %cst_73 = arith.constant 3.200000e+01 : f32
    %117 = vector.broadcast %cst_73 : f32 to vector<16x1xf32>
    %118 = arith.divf %116, %117 : vector<16x1xf32>
    %119 = arith.mulf %112, %118 : vector<16x1xf32>
    %120 = vector.broadcast %119 : vector<16x1xf32> to vector<16x32xf32>
    %121 = arith.subf %111, %120 : vector<16x32xf32>
    %122 = arith.mulf %121, %121 : vector<16x32xf32>
    %cst_74 = arith.constant dense<0.000000e+00> : vector<16xf32>
    %123 = vector.multi_reduction <add>, %122, %cst_74 [1] : vector<16x32xf32> to vector<16xf32>
    %124 = vector.shape_cast %123 : vector<16xf32> to vector<16x1xf32>
    %cst_75 = arith.constant 3.200000e+01 : f32
    %125 = vector.broadcast %cst_75 : f32 to vector<16x1xf32>
    %126 = arith.divf %124, %125 : vector<16x1xf32>
    %127 = vector.broadcast %113 : vector<16x1xf32> to vector<16x32xf32>
    %128 = arith.mulf %127, %121 : vector<16x32xf32>
    %cst_76 = arith.constant 9.99999974E-6 : f32
    %129 = vector.broadcast %cst_76 : f32 to vector<16x1xf32>
    %130 = arith.addf %126, %129 : vector<16x1xf32>
    %131 = math.rsqrt %130 : vector<16x1xf32>
    %132 = vector.broadcast %131 : vector<16x1xf32> to vector<16x32xf32>
    %133 = arith.mulf %128, %132 : vector<16x32xf32>
    %134 = vector.broadcast %114 : vector<16x1xf32> to vector<16x32xf32>
    %135 = arith.addf %133, %134 : vector<16x32xf32>
    %cst_77 = arith.constant 0.000000e+00 : f32
    %136 = vector.broadcast %cst_77 : f32 to vector<16x32xf32>
    %137 = arith.maximumf %135, %136 : vector<16x32xf32>
    %138 = vector.extract_strided_slice %68 {offsets = [0, 0], sizes = [16, 32], strides = [1, 1]} : vector<16x128xf32> to vector<16x32xf32>
    %139 = arith.addf %138, %137 : vector<16x32xf32>
    %c0_78 = arith.constant 0 : index
    %c0_79 = arith.constant 0 : index
    %140 = vector.load %arg25[%c0_78, %c0_79] : memref<16x32xf32, #tpu.memory_space<vmem>>, vector<16x32xf32>
    tpu.vector_store %arg25[%c0_78, %c0_79], %139 {strides = array<i32>} : memref<16x32xf32, #tpu.memory_space<vmem>>, vector<16x32xf32>,
    return
  }
  func.func @transform_0(%arg0: i32) -> (i32, i32) {
    %c0_i32 = arith.constant 0 : i32
    %c0_i32_0 = arith.constant 0 : i32
    %c0_i32_1 = arith.constant 0 : i32
    return %c0_i32, %c0_i32_0 : i32, i32
  }
  func.func @transform_1(%arg0: i32) -> (i32, i32) {
    %c0_i32 = arith.constant 0 : i32
    %c0_i32_0 = arith.constant 0 : i32
    %c0_i32_1 = arith.constant 0 : i32
    return %c0_i32, %c0_i32_0 : i32, i32
  }
  func.func @transform_2(%arg0: i32) -> (i32, i32) {
    %c0_i32 = arith.constant 0 : i32
    %c0_i32_0 = arith.constant 0 : i32
    %c0_i32_1 = arith.constant 0 : i32
    return %c0_i32, %c0_i32_0 : i32, i32
  }
  func.func @transform_3(%arg0: i32) -> (i32, i32) {
    %c0_i32 = arith.constant 0 : i32
    %c0_i32_0 = arith.constant 0 : i32
    %c0_i32_1 = arith.constant 0 : i32
    return %c0_i32, %c0_i32_0 : i32, i32
  }
  func.func @transform_4(%arg0: i32) -> (i32, i32) {
    %c0_i32 = arith.constant 0 : i32
    %c0_i32_0 = arith.constant 0 : i32
    %c0_i32_1 = arith.constant 0 : i32
    return %c0_i32, %c0_i32_0 : i32, i32
  }
  func.func @transform_5(%arg0: i32) -> (i32, i32) {
    %c0_i32 = arith.constant 0 : i32
    %c0_i32_0 = arith.constant 0 : i32
    %c0_i32_1 = arith.constant 0 : i32
    return %c0_i32, %c0_i32_0 : i32, i32
  }
  func.func @transform_6(%arg0: i32) -> (i32, i32) {
    %c0_i32 = arith.constant 0 : i32
    %c0_i32_0 = arith.constant 0 : i32
    %c0_i32_1 = arith.constant 0 : i32
    return %c0_i32, %c0_i32_0 : i32, i32
  }
  func.func @transform_7(%arg0: i32) -> (i32, i32) {
    %c0_i32 = arith.constant 0 : i32
    %c0_i32_0 = arith.constant 0 : i32
    %c0_i32_1 = arith.constant 0 : i32
    return %c0_i32, %c0_i32_0 : i32, i32
  }
  func.func @transform_8(%arg0: i32) -> (i32, i32) {
    %c0_i32 = arith.constant 0 : i32
    %c0_i32_0 = arith.constant 0 : i32
    %c0_i32_1 = arith.constant 0 : i32
    return %c0_i32, %c0_i32_0 : i32, i32
  }
  func.func @transform_9(%arg0: i32) -> (i32, i32) {
    %c0_i32 = arith.constant 0 : i32
    %c0_i32_0 = arith.constant 0 : i32
    %c0_i32_1 = arith.constant 0 : i32
    return %c0_i32, %c0_i32_0 : i32, i32
  }
  func.func @transform_10(%arg0: i32) -> (i32, i32) {
    %c0_i32 = arith.constant 0 : i32
    %c0_i32_0 = arith.constant 0 : i32
    %c0_i32_1 = arith.constant 0 : i32
    return %c0_i32, %c0_i32_0 : i32, i32
  }
  func.func @transform_11(%arg0: i32) -> (i32, i32) {
    %c0_i32 = arith.constant 0 : i32
    %c0_i32_0 = arith.constant 0 : i32
    %c0_i32_1 = arith.constant 0 : i32
    return %c0_i32, %c0_i32_0 : i32, i32
  }
  func.func @transform_12(%arg0: i32) -> (i32, i32) {
    %c0_i32 = arith.constant 0 : i32
    %c0_i32_0 = arith.constant 0 : i32
    %c0_i32_1 = arith.constant 0 : i32
    return %c0_i32, %c0_i32_0 : i32, i32
  }
  func.func @transform_13(%arg0: i32) -> (i32, i32) {
    %c0_i32 = arith.constant 0 : i32
    %c0_i32_0 = arith.constant 0 : i32
    %c0_i32_1 = arith.constant 0 : i32
    return %c0_i32, %c0_i32_0 : i32, i32
  }
  func.func @transform_14(%arg0: i32) -> (i32, i32) {
    %c0_i32 = arith.constant 0 : i32
    %c0_i32_0 = arith.constant 0 : i32
    %c0_i32_1 = arith.constant 0 : i32
    return %c0_i32, %c0_i32_0 : i32, i32
  }
  func.func @transform_15(%arg0: i32) -> (i32, i32) {
    %c0_i32 = arith.constant 0 : i32
    %c0_i32_0 = arith.constant 0 : i32
    %c0_i32_1 = arith.constant 0 : i32
    return %c0_i32, %c0_i32_0 : i32, i32
  }
  func.func @transform_16(%arg0: i32) -> (i32, i32) {
    %c0_i32 = arith.constant 0 : i32
    %c0_i32_0 = arith.constant 0 : i32
    %c0_i32_1 = arith.constant 0 : i32
    return %c0_i32, %c0_i32_0 : i32, i32
  }
  func.func @transform_17(%arg0: i32) -> (i32, i32) {
    %c0_i32 = arith.constant 0 : i32
    %c0_i32_0 = arith.constant 0 : i32
    %c0_i32_1 = arith.constant 0 : i32
    return %c0_i32, %c0_i32_0 : i32, i32
  }
  func.func @transform_18(%arg0: i32) -> (i32, i32) {
    %c0_i32 = arith.constant 0 : i32
    %c0_i32_0 = arith.constant 0 : i32
    %c0_i32_1 = arith.constant 0 : i32
    return %c0_i32, %c0_i32_0 : i32, i32
  }
  func.func @transform_19(%arg0: i32) -> (i32, i32) {
    %c0_i32 = arith.constant 0 : i32
    %c0_i32_0 = arith.constant 0 : i32
    %c0_i32_1 = arith.constant 0 : i32
    return %c0_i32, %c0_i32_0 : i32, i32
  }
  func.func @transform_20(%arg0: i32) -> (i32, i32) {
    %c0_i32 = arith.constant 0 : i32
    %c0_i32_0 = arith.constant 0 : i32
    %c0_i32_1 = arith.constant 0 : i32
    return %c0_i32, %c0_i32_0 : i32, i32
  }
  func.func @transform_21(%arg0: i32) -> (i32, i32) {
    %c0_i32 = arith.constant 0 : i32
    %c0_i32_0 = arith.constant 0 : i32
    %c0_i32_1 = arith.constant 0 : i32
    return %c0_i32, %c0_i32_0 : i32, i32
  }
  func.func @transform_22(%arg0: i32) -> (i32, i32) {
    %c0_i32 = arith.constant 0 : i32
    %c0_i32_0 = arith.constant 0 : i32
    %c0_i32_1 = arith.constant 0 : i32
    return %c0_i32, %c0_i32_0 : i32, i32
  }
  func.func @transform_23(%arg0: i32) -> (i32, i32) {
    %c0_i32 = arith.constant 0 : i32
    %c0_i32_0 = arith.constant 0 : i32
    %c0_i32_1 = arith.constant 0 : i32
    return %c0_i32, %c0_i32_0 : i32, i32
  }
  func.func @transform_24(%arg0: i32) -> (i32, i32) {
    %c0_i32 = arith.constant 0 : i32
    %c0_i32_0 = arith.constant 0 : i32
    %c0_i32_1 = arith.constant 0 : i32
    return %c0_i32, %c0_i32_0 : i32, i32
  }
}

</mosaic_0001>

<bundles_post_ra>
// kernel: tpu_custom_call.1
= control target key start
LH: loop header
LB: loop body
LE: loop exit
PB: predicated region body
PF: predicated region fallthrough
CT: control target
= control target key end

     0   :  { %s2855_s0 = inlined_call_operand.vmem [shape: bf16[16,128], index: 0, kind: input, shape index: {}]   ;;  %s2856_s1 = inlined_call_operand.vmem [shape: bf16[16,16], index: 1, kind: input, shape index: {}]   ;;  %s2857_s2 = inlined_call_operand.vmem [shape: bf16[128,128], index: 2, kind: input, shape index: {}]   ;;  %s2858_s3 = inlined_call_operand.vmem [shape: f32[1,128], index: 3, kind: input, shape index: {}]   ;;  %s2859_s4 = inlined_call_operand.vmem [shape: f32[1,128], index: 4, kind: input, shape index: {}]   ;;  %s2860_s5 = inlined_call_operand.vmem [shape: f32[1,128], index: 5, kind: input, shape index: {}]   ;;  %s2861_s6 = inlined_call_operand.vmem [shape: f32[1,128], index: 6, kind: input, shape index: {}]   ;;  %s2862_s7 = inlined_call_operand.vmem [shape: bf16[128,128], index: 7, kind: input, shape index: {}]   ;;  %s2863_s8 = inlined_call_operand.vmem [shape: f32[1,128], index: 8, kind: input, shape index: {}]   ;;  %s2864_s9 = inlined_call_operand.vmem [shape: f32[1,128], index: 9, kind: input, shape index: {}]   ;;  %s2865_s10 = inlined_call_operand.vmem [shape: f32[1,128], index: 10, kind: input, shape index: {}]   ;;  %s2866_s11 = inlined_call_operand.vmem [shape: f32[1,128], index: 11, kind: input, shape index: {}]   ;;  %s2867_s12 = inlined_call_operand.vmem [shape: bf16[16,32], index: 12, kind: input, shape index: {}]   ;;  %s2868_s13 = inlined_call_operand.vmem [shape: bf16[32,32], index: 13, kind: input, shape index: {}]   ;;  %s2869_s14 = inlined_call_operand.vmem [shape: bf16[128,16], index: 14, kind: input, shape index: {}]   ;;  %s2870_s15 = inlined_call_operand.vmem [shape: f32[128,1], index: 15, kind: input, shape index: {}]   ;;  %s2871_s16 = inlined_call_operand.vmem [shape: f32[128,1], index: 16, kind: input, shape index: {}]   ;;  %s2872_s17 = inlined_call_operand.vmem [shape: f32[128,1], index: 17, kind: input, shape index: {}]   ;;  %s2873_s18 = inlined_call_operand.vmem [shape: f32[128,1], index: 18, kind: input, shape index: {}]   ;;  %s2874_s19 = inlined_call_operand.vmem [shape: bf16[16,128], index: 19, kind: input, shape index: {}]   ;;  %s2875_s20 = inlined_call_operand.vmem [shape: f32[16,1], index: 20, kind: input, shape index: {}]   ;;  %s2876_s21 = inlined_call_operand.vmem [shape: f32[16,1], index: 21, kind: input, shape index: {}]   ;;  %s2877_s22 = inlined_call_operand.vmem [shape: f32[16,1], index: 22, kind: input, shape index: {}]   ;;  %s2878_s23 = inlined_call_operand.vmem [shape: f32[16,1], index: 23, kind: input, shape index: {}]   ;;  %s2879_s24 = inlined_call_operand.hbm [shape: f32[16,32], index: 24, kind: output, shape index: {}]  }
   0x1   :  { %2882 = sst [smem:[#allocation5_spill]] %s2855_s0 }
   0x2   :  { %2883 = sst [smem:[#allocation6_spill]] %s2856_s1 }
   0x3   :  { %2884 = sst [smem:[#allocation7_spill]] %s2857_s2 }
   0x4   :  { %2885 = sst [smem:[#allocation8_spill]] %s2858_s3 }
   0x5   :  { %2886 = sst [smem:[#allocation9_spill]] %s2859_s4 }
   0x6   :  { %2887 = sst [smem:[#allocation10_spill]] %s2860_s5 }
   0x7   :  { %2888 = sst [smem:[#allocation11_spill]] %s2861_s6 }
   0x8   :  { %2889 = sst [smem:[#allocation12_spill]] %s2862_s7 }
   0x9   :  { %2890 = sst [smem:[#allocation13_spill]] %s2863_s8 }
   0xa   :  { %v1853_v0 = vld [vmem:[%s2867_s12] sm:$0xff]  ;;  %vm177_vm0 = vcmask 130048  }
   0xb   :  { %v1845_v1 = vld [vmem:[%s2869_s14] sm:$0xff]  ;;  %503 = vmatpush.bf16.msra.mxu1 %v1853_v0 }
   0xc   :  { %29 = vsyncpa [#allocation3], 0  ;;  %v1846_v2 = vld [vmem:[%s2869_s14 + $0x8] sm:$0xff]  ;;  %v1847_v3 = vld [vmem:[%s2869_s14 + $0x10] sm:$0xff]  ;;  %v1940_v6 = vmov 0   ;;  %vm661_vm1 = vcmask 261120  }
   0xd   :  { %v1848_v4 = vld [vmem:[%s2869_s14 + $0x18] sm:$0xff]  ;;  %v553_v5 = vld [vmem:[%s2870_s15] sm:$0xff]  ;;  %1861 = vset.pattern.permute.xlu0 %v1940_v6  ;;  %1863 = vset.pattern.permute.xlu2 %v1940_v6  ;;  %v554_v7 = vld [vmem:[%s2870_s15 + $0x8] sm:$0xff]  ;;  %s2891_s6 = sld [smem:[#allocation7_spill]]  ;;  %s1944_s1 = smov 128  }
   0xe   :  { %1789 = vmatmul.msk.bf16.vlgmr.msra.gmra.mxu1 %vm177_vm0, %v1845_v1  ;;  %571 = vperm.xlu0 %1861, %v553_v5   ;;  %v1849_v8 = vld [vmem:[%s2869_s14 + $0x20] sm:$0xff]  ;;  %v562_v9 = vld [vmem:[%s2870_s15 + $0x48] sm:$0xff]  ;;  %v564_v10 = vld [vmem:[%s2870_s15 + $0x58] sm:$0xff]  ;;  %s2892_s4 = sld [smem:[#allocation5_spill]]  ;;  %s1945_s5 = smov 8  }
   0xf   :  { %1862 = vset.pattern.permute.xlu1 %v1940_v6  ;;  %v1850_v11 = vld [vmem:[%s2869_s14 + $0x28] sm:$0xff]  ;;  %v568_v12 = vld [vmem:[%s2870_s15 + $0x78] sm:$0xff]  ;;  %v1851_v13 = vld [vmem:[%s2869_s14 + $0x30] sm:$0xff]  ;;  %s2899_s29 = sld [smem:[#allocation9_spill]] }
  0x10   :  { %v557_v14 = vld [vmem:[%s2870_s15 + $0x20] sm:$0xff]  ;;  %v555_v16 = vld [vmem:[%s2870_s15 + $0x10] sm:$0xff]  ;;  %v1844_v17 = vld [vmem:[%s2868_s13 + $0x8] sm:$0xff]  ;;  %s2900_s25 = sld [smem:[#allocation12_spill]] }
  0x11   :  { %v767_v15 = vld [vmem:[%s2873_s18] sm:$0xff]  ;;  %591 = vperm.xlu2 %1863, %v557_v14   ;;  %581 = vperm.xlu1 %1862, %v555_v16   ;;  %v558_v19 = vld [vmem:[%s2870_s15 + $0x28] sm:$0xff]  ;;  %v769_v20 = vld [vmem:[%s2873_s18 + $0x10] sm:$0xff] }
  0x12   :  { %692 = vmatpush.bf16.msra.mxu3 %v1844_v17  ;;  %1484 = vmatpush.bf16.msra.mxu0 %v1844_v17  ;;  %v1843_v18 = vld [vmem:[%s2868_s13] sm:$0xff]  ;;  %v556_v21 = vld [vmem:[%s2870_s15 + $0x18] sm:$0xff]  ;;  %v559_v23 = vld [vmem:[%s2870_s15 + $0x30] sm:$0xff] }
  0x13   :  { %v1852_v22 = vld [vmem:[%s2869_s14 + $0x38] sm:$0xff]  ;;  %v771_v24 = vld [vmem:[%s2873_s18 + $0x20] sm:$0xff]  ;;  %v757_v27 = vld [vmem:[%s2872_s17 + $0x30] sm:$0xff]  ;;  %s2893_s14 = sld [smem:[#allocation6_spill]] }
  0x14   :  { %v561_v25 = vld [vmem:[%s2870_s15 + $0x40] sm:$0xff]  ;;  %v560_v26 = vld [vmem:[%s2870_s15 + $0x38] sm:$0xff]  ;;  %v563_v28 = vld [vmem:[%s2870_s15 + $0x50] sm:$0xff] }
  0x15   :  { %v565_v30 = vld [vmem:[%s2870_s15 + $0x60] sm:$0xff]  ;;  %v758_v31 = vld [vmem:[%s2872_s17 + $0x38] sm:$0xff]  ;;  %v567_v32 = vld [vmem:[%s2870_s15 + $0x70] sm:$0xff] }
  0x16   :  { %576 = vperm.xlu0 %1861, %v554_v7   ;;  %693 = vmatpush.bf16.msra.mxu3 %v1843_v18  ;;  %v566_v34 = vld [vmem:[%s2870_s15 + $0x68] sm:$0xff]  ;;  %v774_v36 = vld [vmem:[%s2873_s18 + $0x38] sm:$0xff]  ;;  %v751_v37 = vld [vmem:[%s2872_s17] sm:$0xff] }
  0x17   :  { %1485 = vmatpush.bf16.msra.mxu0 %v1843_v18  ;;  %v768_v39 = vld [vmem:[%s2873_s18 + $0x8] sm:$0xff]  ;;  %v759_v40 = vld [vmem:[%s2872_s17 + $0x40] sm:$0xff]  ;;  %v754_v43 = vld [vmem:[%s2872_s17 + $0x18] sm:$0xff] }
  0x18   :  { %v752_v41 = vld [vmem:[%s2872_s17 + $0x8] sm:$0xff]  ;;  %v753_v45 = vld [vmem:[%s2872_s17 + $0x10] sm:$0xff]  ;;  %v755_v47 = vld [vmem:[%s2872_s17 + $0x20] sm:$0xff] }
  0x19   :  { %596 = vperm.xlu2 %1863, %v558_v19   ;;  %586 = vperm.xlu1 %1862, %v556_v21   ;;  %v770_v48 = vld [vmem:[%s2873_s18 + $0x18] sm:$0xff]  ;;  %v756_v50 = vld [vmem:[%s2872_s17 + $0x28] sm:$0xff]  ;;  %v773_v52 = vld [vmem:[%s2873_s18 + $0x30] sm:$0xff] }
  0x1a   :  { %v772_v54 = vld [vmem:[%s2873_s18 + $0x28] sm:$0xff] }
  0x1e   :  { %1790 = vmatmul.msk.bf16.gmra.mxu1 %vm177_vm0, %v1846_v2  ;;  %616 = vperm.xlu0 %1861, %v562_v9  }
  0x21   :  { %601 = vperm.xlu2 %1863, %v559_v23   ;;  %611 = vperm.xlu1 %1862, %v561_v25  }
  0x26   :  { %626 = vperm.xlu0 %1861, %v564_v10  }
  0x29   :  { %606 = vperm.xlu2 %1863, %v560_v26   ;;  %621 = vperm.xlu1 %1862, %v563_v28  }
  0x2e   :  { %1791 = vmatmul.msk.bf16.gmra.mxu1 %vm177_vm0, %v1847_v3  ;;  %646 = vperm.xlu0 %1861, %v568_v12  }
  0x31   :  { %631 = vperm.xlu2 %1863, %v565_v30   ;;  %641 = vperm.xlu1 %1862, %v567_v32  }
  0x36   :  { %1336 = vperm.xlu0 %1861, %v767_v15  }
  0x39   :  { %636 = vperm.xlu2 %1863, %v566_v34   ;;  %1048 = vperm.xlu1 %1862, %v751_v37  }
  0x3e   :  { %1792 = vmatmul.msk.bf16.gmra.mxu1 %vm177_vm0, %v1848_v4  ;;  %1346 = vperm.xlu0 %1861, %v769_v20  }
  0x41   :  { %1341 = vperm.xlu2 %1863, %v768_v39   ;;  %1053 = vperm.xlu1 %1862, %v752_v41  }
  0x46   :  { %1356 = vperm.xlu0 %1861, %v771_v24  }
  0x49   :  { %1063 = vperm.xlu2 %1863, %v754_v43   ;;  %1058 = vperm.xlu1 %1862, %v753_v45  }
  0x4e   :  { %1793 = vmatmul.msk.bf16.gmra.mxu1 %vm177_vm0, %v1849_v8  ;;  %1078 = vperm.xlu0 %1861, %v757_v27  }
  0x51   :  { %1068 = vperm.xlu2 %1863, %v755_v47   ;;  %1351 = vperm.xlu1 %1862, %v770_v48  }
  0x56   :  { %1083 = vperm.xlu0 %1861, %v758_v31  }
  0x59   :  { %1073 = vperm.xlu2 %1863, %v756_v50   ;;  %1366 = vperm.xlu1 %1862, %v773_v52  }
  0x5e   :  { %1794 = vmatmul.msk.bf16.gmra.mxu1 %vm177_vm0, %v1850_v11  ;;  %1371 = vperm.xlu0 %1861, %v774_v36  }
  0x61   :  { %1361 = vperm.xlu2 %1863, %v772_v54  }
  0x66   :  { %1088 = vperm.xlu0 %1861, %v759_v40  }
  0x6b   :  { %v592_v20 = vpop.permute.xlu2 %591 }
  0x6e   :  { %1795 = vmatmul.msk.bf16.gmra.mxu1 %vm177_vm0, %v1851_v13 }
  0x73   :  { %v597_v26 = vpop.permute.xlu2 %596 }
  0x7b   :  { %v602_v31 = vpop.permute.xlu2 %601 }
  0x7e   :  { %1796 = vmatmul.msk.bf16.gmra.mxu1 %vm177_vm0, %v1852_v22 }
  0x80   :  { %v572_v5 = vpop.permute.xlu0 %571 }
  0x83   :  { %v582_v13 = vpop.permute.xlu1 %581  ;;  %v607_v36 = vpop.permute.xlu2 %606 }
  0x88   :  { %v577_v9 = vpop.permute.xlu0 %576 }
  0x8b   :  { %v505_v29 = vpop.f32.mrf.mxu1  ;;  %v587_v17 = vpop.permute.xlu1 %586 }
  0x8c   :  { %v632_v45 = vpop.permute.xlu2 %631 }
  0x90   :  { %v617_v23 = vpop.permute.xlu0 %616 }
  0x93   :  { %v507_v33 = vpop.f32.mrf.mxu1  ;;  %v612_v40 = vpop.permute.xlu1 %611 }
  0x94   :  { %v545_v35 = vpack.c.bf16 %v507_v33, %v505_v29  ;;  %v637_v52 = vpop.permute.xlu2 %636 }
  0x96   :  { %1805 = vmatmul.msk.bf16.vlgmr.msra.gmra.mxu3 %vm661_vm1, %v545_v35 }
  0x98   :  { %v627_v29 = vpop.permute.xlu0 %626 }
  0x9b   :  { %v510_v38 = vpop.f32.mrf.mxu1 }
  0xa0   :  { %v647_v35 = vpop.permute.xlu0 %646 }
  0xa3   :  { %v512_v42 = vpop.f32.mrf.mxu1 }
  0xa4   :  { %v546_v44 = vpack.c.bf16 %v512_v42, %v510_v38 }
  0xa6   :  { %1806 = vmatmul.msk.bf16.gmra.mxu3 %vm661_vm1, %v546_v44 }
  0xa8   :  { %v2251_v41 = vpop.permute.xlu0 %1336 }
  0xab   :  { %v515_v46 = vpop.f32.mrf.mxu1 }
  0xb0   :  { %v2257_v48 = vpop.permute.xlu0 %1346 }
  0xb3   :  { %v517_v49 = vpop.f32.mrf.mxu1 }
  0xb4   :  { %v547_v51 = vpack.c.bf16 %v517_v49, %v515_v46  ;;  %v622_v46 = vpop.permute.xlu1 %621 }
  0xb6   :  { %1807 = vmatmul.msk.bf16.gmra.mxu3 %vm661_vm1, %v547_v51 }
  0xbb   :  { %v520_v53 = vpop.f32.mrf.mxu1 }
  0xbc   :  { %v642_v54 = vpop.permute.xlu1 %641 }
  0xc3   :  { %v522_v55 = vpop.f32.mrf.mxu1 }
  0xc4   :  { %v548_v56 = vpack.c.bf16 %v522_v55, %v520_v53  ;;  %v2265_v55 = vpop.permute.xlu0 %1356 }
  0xc6   :  { %1808 = vmatmul.msk.bf16.gmra.mxu3 %vm661_vm1, %v548_v56 }
  0xcb   :  { %v525_v57 = vpop.f32.mrf.mxu1 }
  0xd3   :  { %v527_v58 = vpop.f32.mrf.mxu1 }
  0xd4   :  { %v549_v59 = vpack.c.bf16 %v527_v58, %v525_v57 }
  0xd6   :  { %1809 = vmatmul.msk.bf16.gmra.mxu3 %vm661_vm1, %v549_v59  ;;  %v2271_v59 = vpop.permute.xlu2 %1341 }
  0xdb   :  { %v530_v60 = vpop.f32.mrf.mxu1 }
  0xe3   :  { %v532_v61 = vpop.f32.mrf.mxu1 }
  0xe4   :  { %v550_v62 = vpack.c.bf16 %v532_v61, %v530_v60  ;;  %v2275_v61 = vpop.permute.xlu1 %1048 }
  0xe6   :  { %1810 = vmatmul.msk.bf16.gmra.mxu3 %vm661_vm1, %v550_v62  ;;  %v2277_v62 = vpop.permute.xlu0 %1078 }
  0xeb   :  { %v535_v63 = vpop.f32.mrf.mxu1 }
  0xf3   :  { %v537_v0 = vpop.f32.mrf.mxu1 }
  0xf4   :  { %v551_v1 = vpack.c.bf16 %v537_v0, %v535_v63 }
  0xf6   :  { %1811 = vmatmul.msk.bf16.gmra.mxu3 %vm661_vm1, %v551_v1 }
  0xfb   :  { %v540_v2 = vpop.f32.mrf.mxu1 }
 0x103   :  { %v542_v3 = vpop.f32.mrf.mxu1 }
 0x104   :  { %v552_v4 = vpack.c.bf16 %v542_v3, %v540_v2  ;;  %v2283_v2 = vpop.permute.xlu2 %1063  ;;  %v2285_v3 = vpop.permute.xlu1 %1053 }
 0x106   :  { %1812 = vmatmul.msk.bf16.gmra.mxu3 %vm661_vm1, %v552_v4  ;;  %v2287_v4 = vpop.permute.xlu0 %1083 }
 0x119   :  { %v695_v6 = vpop.f32.mrf.mxu3 }
 0x11a   :  { %v2219_v7 = vadd.f32 %v695_v6, %v572_v5 }
 0x11c   :  { %v783_v8 = vsel %vm661_vm1, %v2219_v7, 0.0 }
 0x11d   :  { %784 = vadd.xlane.f32.xlu0 %v783_v8  ;;  %v1941_v8 = vmov 32.0  }
 0x11e   :  { %1870 = vrcp.f32 %v1941_v8  ;;  %v1831_v8 = vld [vmem:[%s2891_s6 + $0x20] sm:$0xff] }
 0x121   :  { %v697_v10 = vpop.f32.mrf.mxu3 }
 0x122   :  { %v2223_v11 = vadd.f32 %v697_v10, %v577_v9  ;;  %v2293_v10 = vpop.permute.xlu2 %1068 }
 0x124   :  { %v786_v12 = vsel %vm661_vm1, %v2223_v11, 0.0 }
 0x125   :  { %787 = vadd.xlane.f32.xlu1 %v786_v12  ;;  %v1871_v12 = vpop.eup %1870 }
 0x126   :  { %vm836_vm2 = vweird.f32 %v1871_v12 }
 0x129   :  { %v700_v14 = vpop.f32.mrf.mxu3 }
 0x12a   :  { %v2227_v15 = vadd.f32 %v700_v14, %v582_v13  ;;  %v2295_v13 = vpop.permute.xlu1 %1058 }
 0x12c   :  { %v789_v16 = vsel %vm661_vm1, %v2227_v15, 0.0 }
 0x12d   :  { %790 = vadd.xlane.f32.xlu2 %v789_v16  ;;  %v2297_v16 = vpop.permute.xlu0 %1371 }
 0x131   :  { %v702_v18 = vpop.f32.mrf.mxu3 }
 0x132   :  { %v2231_v19 = vadd.f32 %v702_v18, %v587_v17 }
 0x134   :  { %v792_v21 = vsel %vm661_vm1, %v2231_v19, 0.0 }
 0x135   :  { %793 = vadd.xlane.f32.xlu0 %v792_v21 }
 0x139   :  { %v705_v22 = vpop.f32.mrf.mxu3 }
 0x13a   :  { %v2235_v24 = vadd.f32 %v705_v22, %v592_v20  ;;  %v832_v20 = vmul.f32 32.0, %v1871_v12 }
 0x13c   :  { %v795_v25 = vsel %vm661_vm1, %v2235_v24, 0.0  ;;  %v833_v21 = vsub.f32 1.0, %v832_v20  ;;  %v1830_v20 = vld [vmem:[%s2891_s6 + $0x18] sm:$0xff] }
 0x13d   :  { %796 = vadd.xlane.f32.xlu2 %v795_v25 }
 0x141   :  { %v707_v27 = vpop.f32.mrf.mxu3 }
 0x142   :  { %v2239_v28 = vadd.f32 %v707_v27, %v597_v26  ;;  %v2307_v26 = vpop.permute.xlu1 %1351  ;;  %v2309_v27 = vpop.permute.xlu0 %1088 }
 0x144   :  { %v798_v30 = vsel %vm661_vm1, %v2239_v28, 0.0 }
 0x145   :  { %799 = vadd.xlane.f32.xlu2 %v798_v30 }
 0x149   :  { %v710_v32 = vpop.f32.mrf.mxu3 }
 0x14a   :  { %v2243_v33 = vadd.f32 %v710_v32, %v602_v31 }
 0x14c   :  { %v801_v34 = vsel %vm661_vm1, %v2243_v33, 0.0 }
 0x14d   :  { %802 = vadd.xlane.f32.xlu0 %v801_v34 }
 0x151   :  { %v712_v37 = vpop.f32.mrf.mxu3 }
 0x152   :  { %v2247_v38 = vadd.f32 %v712_v37, %v607_v36  ;;  %v2317_v37 = vpop.permute.xlu1 %1366 }
 0x154   :  { %v804_v39 = vsel %vm661_vm1, %v2247_v38, 0.0 }
 0x155   :  { %805 = vadd.xlane.f32.xlu1 %v804_v39  ;;  %v735_v39 = vld [vmem:[%s2871_s16] sm:$0xff] }
 0x159   :  { %v715_v42 = vpop.f32.mrf.mxu3 }
 0x15a   :  { %v2253_v43 = vadd.f32 %v715_v42, %v612_v40  ;;  %v1834_v42 = vld [vmem:[%s2891_s6 + $0x38] sm:$0xff] }
 0x15b   :  { %153 = vmatpush.bf16.msra.mxu2 %v1834_v42 }
 0x15c   :  { %v807_v44 = vsel %vm661_vm1, %v2253_v43, 0.0 }
 0x15d   :  { %808 = vadd.xlane.f32.xlu2 %v807_v44 }
 0x161   :  { %v717_v47 = vpop.f32.mrf.mxu3 }
 0x162   :  { %v2259_v49 = vadd.f32 %v717_v47, %v617_v23  ;;  %v2303_v23 = vpop.permute.xlu2 %1073  ;;  %v1833_v47 = vld [vmem:[%s2891_s6 + $0x30] sm:$0xff] }
 0x163   :  { %154 = vmatpush.bf16.msra.mxu2 %v1833_v47 }
 0x164   :  { %v810_v50 = vsel %vm661_vm1, %v2259_v49, 0.0 }
 0x165   :  { %811 = vadd.xlane.f32.xlu1 %v810_v50 }
 0x169   :  { %v720_v51 = vpop.f32.mrf.mxu3 }
 0x16a   :  { %v2263_v53 = vadd.f32 %v720_v51, %v622_v46  ;;  %v2313_v32 = vpop.permute.xlu2 %1361  ;;  %v737_v51 = vld [vmem:[%s2871_s16 + $0x10] sm:$0xff] }
 0x16c   :  { %v813_v56 = vsel %vm661_vm1, %v2263_v53, 0.0 }
 0x16d   :  { %814 = vadd.xlane.f32.xlu1 %v813_v56  ;;  %v736_v56 = vld [vmem:[%s2871_s16 + $0x8] sm:$0xff] }
 0x171   :  { %v722_v57 = vpop.f32.mrf.mxu3 }
 0x172   :  { %v2269_v58 = vadd.f32 %v722_v57, %v627_v29  ;;  %v834_v29 = vmul.f32 %v1871_v12, %v833_v21  ;;  %v1829_v21 = vld [vmem:[%s2891_s6 + $0x10] sm:$0xff] }
 0x174   :  { %v816_v60 = vsel %vm661_vm1, %v2269_v58, 0.0  ;;  %v835_v31 = vadd.f32 %v1871_v12, %v834_v29 }
 0x175   :  { %817 = vadd.xlane.f32.xlu2 %v816_v60 }
 0x176   :  { %v2315_v34 = vsel %vm836_vm2, %v1871_v12, %v835_v31 }
 0x179   :  { %v725_v63 = vpop.f32.mrf.mxu3 }
 0x17a   :  { %v2279_v0 = vadd.f32 %v725_v63, %v632_v45 }
 0x17c   :  { %v819_v1 = vsel %vm661_vm1, %v2279_v0, 0.0 }
 0x17d   :  { %820 = vadd.xlane.f32.xlu2 %v819_v1  ;;  %v1832_v1 = vld [vmem:[%s2891_s6 + $0x28] sm:$0xff] }
 0x17e   :  { %155 = vmatpush.bf16.msra.mxu2 %v1832_v1 }
 0x181   :  { %v727_v5 = vpop.f32.mrf.mxu3 }
 0x182   :  { %v2289_v6 = vadd.f32 %v727_v5, %v637_v52  ;;  %v738_v52 = vld [vmem:[%s2871_s16 + $0x18] sm:$0xff]  ;;  %156 = vmatpush.bf16.msra.mxu2 %v1831_v8  ;;  %v745_v8 = vld [vmem:[%s2871_s16 + $0x50] sm:$0xff] }
 0x184   :  { %v822_v9 = vsel %vm661_vm1, %v2289_v6, 0.0 }
 0x185   :  { %823 = vadd.xlane.f32.xlu0 %v822_v9  ;;  %v739_v9 = vld [vmem:[%s2871_s16 + $0x20] sm:$0xff] }
 0x186   :  { %157 = vmatpush.bf16.msra.mxu2 %v1830_v20 }
 0x189   :  { %v730_v14 = vpop.f32.mrf.mxu3 }
 0x18a   :  { %v2299_v17 = vadd.f32 %v730_v14, %v642_v54  ;;  %158 = vmatpush.bf16.msra.mxu2 %v1829_v21 }
 0x18c   :  { %v825_v18 = vsel %vm661_vm1, %v2299_v17, 0.0 }
 0x18d   :  { %826 = vadd.xlane.f32.xlu2 %v825_v18 }
 0x190   :  { %v785_v36 = vpop.xlane.xlu0 %784 }
 0x191   :  { %v732_v22 = vpop.f32.mrf.mxu3 }
 0x192   :  { %v2305_v25 = vadd.f32 %v732_v22, %v647_v35  ;;  %v838_v35 = vmul.f32 %v2315_v34, %v785_v36  ;;  %v740_v22 = vld [vmem:[%s2871_s16 + $0x28] sm:$0xff] }
 0x193   :  { %v1828_v36 = vld [vmem:[%s2891_s6 + $0x8] sm:$0xff] }
 0x194   :  { %v828_v30 = vsel %vm661_vm1, %v2305_v25, 0.0  ;;  %v854_v40 = vmul.f32 %v838_v35, %v735_v39  ;;  %159 = vmatpush.bf16.msra.mxu2 %v1828_v36  ;;  %v1827_v35 = vld [vmem:[%s2891_s6] sm:$0xff]  ;;  %v741_v39 = vld [vmem:[%s2871_s16 + $0x30] sm:$0xff] }
 0x195   :  { %829 = vadd.xlane.f32.xlu1 %v828_v30 }
 0x198   :  { %v788_v45 = vpop.xlane.xlu1 %787  ;;  %160 = vmatpush.bf16.msra.mxu2 %v1827_v35  ;;  %v748_v35 = vld [vmem:[%s2871_s16 + $0x68] sm:$0xff] }
 0x199   :  { %v839_v50 = vmul.f32 %v2315_v34, %v788_v45 }
 0x19b   :  { %v855_v5 = vmul.f32 %v839_v50, %v736_v56 }
 0x1a0   :  { %v791_v44 = vpop.xlane.xlu2 %790 }
 0x1a1   :  { %v840_v46 = vmul.f32 %v2315_v34, %v791_v44  ;;  %v1826_v44 = vld [vmem:[%s2892_s4] sm:$0xff]  ;;  %s2902_s4 = sld [smem:[#allocation11_spill]] }
 0x1a2   :  { %161 = vmatmul.bf16.vlgmr.msra.gmra.mxu2 %v1826_v44  ;;  %v749_v44 = vld [vmem:[%s2871_s16 + $0x70] sm:$0xff] }
 0x1a3   :  { %v856_v60 = vmul.f32 %v840_v46, %v737_v51  ;;  %v742_v46 = vld [vmem:[%s2871_s16 + $0x38] sm:$0xff] }
 0x1a5   :  { %872 = vperm.xlu2 %1863, %v854_v40  }
 0x1a8   :  { %v794_v54 = vpop.xlane.xlu0 %793 }
 0x1a9   :  { %v841_v57 = vmul.f32 %v2315_v34, %v794_v54 }
 0x1ab   :  { %v857_v63 = vmul.f32 %v841_v57, %v738_v52  ;;  %v743_v52 = vld [vmem:[%s2871_s16 + $0x40] sm:$0xff] }
 0x1ad   :  { %887 = vperm.xlu0 %1861, %v857_v63   ;;  %882 = vperm.xlu2 %1863, %v856_v60   ;;  %v744_v60 = vld [vmem:[%s2871_s16 + $0x48] sm:$0xff] }
 0x1ae   :  { %877 = vperm.xlu1 %1862, %v855_v5  }
 0x1b0   :  { %v797_v12 = vpop.xlane.xlu2 %796 }
 0x1b1   :  { %v842_v14 = vmul.f32 %v2315_v34, %v797_v12 }
 0x1b3   :  { %v858_v18 = vmul.f32 %v842_v14, %v739_v9 }
 0x1b5   :  { %892 = vperm.xlu0 %1861, %v858_v18   ;;  %v746_v18 = vld [vmem:[%s2871_s16 + $0x58] sm:$0xff] }
 0x1b8   :  { %v800_v29 = vpop.xlane.xlu2 %799 }
 0x1b9   :  { %v843_v30 = vmul.f32 %v2315_v34, %v800_v29  ;;  %v747_v29 = vld [vmem:[%s2871_s16 + $0x60] sm:$0xff] }
 0x1bb   :  { %v859_v31 = vmul.f32 %v843_v30, %v740_v22 }
 0x1bd   :  { %897 = vperm.xlu0 %1861, %v859_v31  }
 0x1c0   :  { %v803_v40 = vpop.xlane.xlu0 %802 }
 0x1c1   :  { %v844_v42 = vmul.f32 %v2315_v34, %v803_v40 }
 0x1c3   :  { %v860_v45 = vmul.f32 %v844_v42, %v741_v39 }
 0x1c5   :  { %902 = vperm.xlu2 %1863, %v860_v45  }
 0x1c8   :  { %v806_v47 = vpop.xlane.xlu1 %805 }
 0x1c9   :  { %v845_v50 = vmul.f32 %v2315_v34, %v806_v47 }
 0x1cb   :  { %v861_v51 = vmul.f32 %v845_v50, %v742_v46  ;;  %v761_v50 = vld [vmem:[%s2872_s17 + $0x50] sm:$0xff] }
 0x1cd   :  { %907 = vperm.xlu1 %1862, %v861_v51  }
 0x1d0   :  { %v809_v54 = vpop.xlane.xlu2 %808 }
 0x1d1   :  { %v846_v56 = vmul.f32 %v2315_v34, %v809_v54  ;;  %v762_v54 = vld [vmem:[%s2872_s17 + $0x58] sm:$0xff] }
 0x1d3   :  { %v862_v57 = vmul.f32 %v846_v56, %v743_v52 }
 0x1d5   :  { %912 = vperm.xlu1 %1862, %v862_v57  }
 0x1d8   :  { %v812_v63 = vpop.xlane.xlu1 %811 }
 0x1d9   :  { %v847_v1 = vmul.f32 %v2315_v34, %v812_v63 }
 0x1db   :  { %v863_v5 = vmul.f32 %v847_v1, %v744_v60 }
 0x1dd   :  { %917 = vperm.xlu0 %1861, %v863_v5  }
 0x1e0   :  { %v815_v9 = vpop.xlane.xlu1 %814 }
 0x1e1   :  { %v848_v12 = vmul.f32 %v2315_v34, %v815_v9 }
 0x1e3   :  { %v864_v14 = vmul.f32 %v848_v12, %v745_v8  ;;  %v750_v12 = vld [vmem:[%s2871_s16 + $0x78] sm:$0xff] }
 0x1e5   :  { %922 = vperm.xlu1 %1862, %v864_v14  }
 0x1e8   :  { %v818_v20 = vpop.xlane.xlu2 %817 }
 0x1e9   :  { %v849_v21 = vmul.f32 %v2315_v34, %v818_v20 }
 0x1eb   :  { %v865_v22 = vmul.f32 %v849_v21, %v746_v18 }
 0x1ed   :  { %927 = vperm.xlu0 %1861, %v865_v22  }
 0x1f0   :  { %v821_v30 = vpop.xlane.xlu2 %820 }
 0x1f1   :  { %v850_v31 = vmul.f32 %v2315_v34, %v821_v30 }
 0x1f3   :  { %v866_v36 = vmul.f32 %v850_v31, %v747_v29 }
 0x1f5   :  { %932 = vperm.xlu2 %1863, %v866_v36  }
 0x1f8   :  { %v824_v39 = vpop.xlane.xlu0 %823 }
 0x1f9   :  { %v851_v40 = vmul.f32 %v2315_v34, %v824_v39 }
 0x1fb   :  { %v867_v42 = vmul.f32 %v851_v40, %v748_v35 }
 0x1fd   :  { %937 = vperm.xlu2 %1863, %v867_v42   ;;  %v760_v42 = vld [vmem:[%s2872_s17 + $0x48] sm:$0xff] }
 0x200   :  { %v827_v45 = vpop.xlane.xlu2 %826 }
 0x201   :  { %v852_v46 = vmul.f32 %v2315_v34, %v827_v45 }
 0x203   :  { %v868_v47 = vmul.f32 %v852_v46, %v749_v44 }
 0x205   :  { %942 = vperm.xlu1 %1862, %v868_v47  }
 0x208   :  { %v873_v51 = vpop.permute.xlu2 %872  ;;  %v830_v60 = vpop.xlane.xlu1 %829 }
 0x209   :  { %v2410_v52 = vsub.f32 %v2219_v7, %v873_v51  ;;  %v853_v8 = vmul.f32 %v2315_v34, %v830_v60 }
 0x20b   :  { %v966_v56 = vmul.f32 %v2410_v52, %v2410_v52  ;;  %v869_v18 = vmul.f32 %v853_v8, %v750_v12 }
 0x20d   :  { %1098 = vperm.xlu1 %1862, %v761_v50   ;;  %v982_v57 = vsel %vm661_vm1, %v966_v56, 0.0  ;;  %v2457_v50 = vld [vmem:[%s2893_s14] sm:$0xff]  ;;  %s2896_s14 = sld [smem:[#allocation8_spill]] }
 0x210   :  { %v883_v40 = vpop.permute.xlu2 %882 }
 0x211   :  { %v2449_v44 = vsub.f32 %v2227_v15, %v883_v40 }
 0x215   :  { %1103 = vperm.xlu1 %1862, %v762_v54  }
 0x217   :  { %983 = vadd.xlane.f32.xlu0 %v982_v57 }
 0x21f   :  { %v888_v63 = vpop.permute.xlu0 %887 }
 0x220   :  { %v878_v1 = vpop.permute.xlu1 %877  ;;  %v2460_v51 = vsub.f32 %v2231_v19, %v888_v63 }
 0x221   :  { %v2419_v5 = vsub.f32 %v2223_v11, %v878_v1 }
 0x222   :  { %v969_v57 = vmul.f32 %v2460_v51, %v2460_v51 }
 0x223   :  { %v967_v7 = vmul.f32 %v2419_v5, %v2419_v5 }
 0x224   :  { %v991_v19 = vsel %vm661_vm1, %v969_v57, 0.0 }
 0x225   :  { %v985_v9 = vsel %vm661_vm1, %v967_v7, 0.0  ;;  %v162_v39 = vpop.f32.mrf.mxu2 }
 0x226   :  { %986 = vadd.xlane.f32.xlu2 %v985_v9 }
 0x227   :  { %v893_v14 = vpop.permute.xlu0 %892 }
 0x228   :  { %v2469_v1 = vsub.f32 %v2235_v24, %v893_v14 }
 0x22a   :  { %v970_v63 = vmul.f32 %v2469_v1, %v2469_v1 }
 0x22b   :  { %947 = vperm.xlu0 %1861, %v869_v18  }
 0x22c   :  { %v994_v8 = vsel %vm661_vm1, %v970_v63, 0.0 }
 0x22d   :  { %v164_v46 = vpop.f32.mrf.mxu2 }
 0x22e   :  { %v167_v47 = vpack.c.bf16 %v164_v46, %v162_v39  ;;  %v776_v39 = vld [vmem:[%s2873_s18 + $0x48] sm:$0xff] }
 0x22f   :  { %v898_v20 = vpop.permute.xlu0 %897 }
 0x230   :  { %v2429_v21 = vsub.f32 %v2239_v28, %v898_v20  ;;  %188 = vmatpush.bf16.msrb.mxu2 %v167_v47  ;;  %v778_v20 = vld [vmem:[%s2873_s18 + $0x58] sm:$0xff] }
 0x232   :  { %v971_v11 = vmul.f32 %v2429_v21, %v2429_v21 }
 0x233   :  { %1719 = vmatmul.msk.bf16.vlgmr.msrb.gmra.mxu2 %vm177_vm0, %v2457_v50 }
 0x234   :  { %v997_v22 = vsel %vm661_vm1, %v971_v11, 0.0 }
 0x235   :  { %998 = vadd.xlane.f32.xlu2 %v997_v22 }
 0x23f   :  { %v908_v29 = vpop.permute.xlu1 %907 }
 0x240   :  { %v2435_v30 = vsub.f32 %v2247_v38, %v908_v29 }
 0x242   :  { %v973_v31 = vmul.f32 %v2435_v30, %v2435_v30 }
 0x244   :  { %v1003_v36 = vsel %vm661_vm1, %v973_v31, 0.0 }
 0x245   :  { %1004 = vadd.xlane.f32.xlu1 %v1003_v36 }
 0x247   :  { %v913_v35 = vpop.permute.xlu1 %912 }
 0x248   :  { %v2441_v28 = vsub.f32 %v2253_v43, %v913_v35  ;;  %v968_v43 = vmul.f32 %v2449_v44, %v2449_v44 }
 0x24a   :  { %v974_v38 = vmul.f32 %v2441_v28, %v2441_v28  ;;  %v988_v15 = vsel %vm661_vm1, %v968_v43, 0.0 }
 0x24c   :  { %v1006_v45 = vsel %vm661_vm1, %v974_v38, 0.0 }
 0x24d   :  { %1093 = vperm.xlu2 %1863, %v760_v42   ;;  %1007 = vadd.xlane.f32.xlu1 %v1006_v45 }
 0x24f   :  { %v918_v9 = vpop.permute.xlu0 %917 }
 0x250   :  { %v2477_v12 = vsub.f32 %v2259_v49, %v918_v9  ;;  %v775_v49 = vld [vmem:[%s2873_s18 + $0x40] sm:$0xff] }
 0x252   :  { %v975_v24 = vmul.f32 %v2477_v12, %v2477_v12 }
 0x254   :  { %v1009_v22 = vsel %vm661_vm1, %v975_v24, 0.0 }
 0x255   :  { %989 = vadd.xlane.f32.xlu0 %v988_v15 }
 0x257   :  { %v923_v54 = vpop.permute.xlu1 %922 }
 0x258   :  { %v960_v56 = vsub.f32 %v2263_v53, %v923_v54  ;;  %v903_v53 = vpop.permute.xlu2 %902 }
 0x25a   :  { %v976_v60 = vmul.f32 %v960_v56, %v960_v56 }
 0x25c   :  { %v1012_v7 = vsel %vm661_vm1, %v976_v60, 0.0 }
 0x25d   :  { %1013 = vadd.xlane.f32.xlu1 %v1012_v7  ;;  %992 = vadd.xlane.f32.xlu0 %v991_v19 }
 0x25f   :  { %v928_v14 = vpop.permute.xlu0 %927 }
 0x260   :  { %v2479_v18 = vpop.permute.xlu2 %932  ;;  %v2487_v11 = vsub.f32 %v2269_v58, %v928_v14 }
 0x262   :  { %v977_v31 = vmul.f32 %v2487_v11, %v2487_v11 }
 0x264   :  { %v1015_v58 = vsel %vm661_vm1, %v977_v31, 0.0 }
 0x265   :  { %995 = vadd.xlane.f32.xlu0 %v994_v8 }
 0x268   :  { %v938_v36 = vpop.permute.xlu2 %937 }
 0x269   :  { %v2496_v35 = vsub.f32 %v2289_v6, %v938_v36 }
 0x26b   :  { %v979_v38 = vmul.f32 %v2496_v35, %v2496_v35 }
 0x26d   :  { %v1021_v6 = vsel %vm661_vm1, %v979_v38, 0.0 }
 0x276   :  { %1010 = vadd.xlane.f32.xlu2 %v1009_v22  ;;  %1391 = vperm.xlu1 %1862, %v778_v20   ;;  %v2521_v20 = vsub.f32 %v2243_v33, %v903_v53 }
 0x277   :  { %v943_v29 = vpop.permute.xlu1 %942 }
 0x278   :  { %v2507_v45 = vsub.f32 %v2299_v17, %v943_v29 }
 0x279   :  { %1376 = vperm.xlu0 %1861, %v775_v49   ;;  %v763_v49 = vld [vmem:[%s2872_s17 + $0x60] sm:$0xff] }
 0x27a   :  { %v980_v43 = vmul.f32 %v2507_v45, %v2507_v45 }
 0x27c   :  { %v1024_v54 = vsel %vm661_vm1, %v980_v43, 0.0 }
 0x27e   :  { %1016 = vadd.xlane.f32.xlu2 %v1015_v58 }
 0x27f   :  { %v1099_v40 = vpop.permute.xlu1 %1098 }
 0x280   :  { %v2502_v42 = vmul.f32 %v1099_v40, %v960_v56 }
 0x281   :  { %1381 = vperm.xlu0 %1861, %v776_v39   ;;  %v1126_v39 = vmul.f32 %v2275_v61, %v2410_v52 }
 0x286   :  { %1022 = vadd.xlane.f32.xlu2 %v1021_v6  ;;  %v765_v6 = vld [vmem:[%s2872_s17 + $0x70] sm:$0xff] }
 0x28a   :  { %v984_v46 = vpop.xlane.xlu0 %983 }
 0x28b   :  { %v1030_v47 = vmul.f32 %v984_v46, %v2315_v34 }
 0x28d   :  { %v1142_v15 = vadd.f32 1e-05, %v1030_v47  ;;  %v1127_v47 = vmul.f32 %v2285_v3, %v2419_v5  ;;  %v1537_v3 = vld [vmem:[%s2875_s20] sm:$0xff] }
 0x28e   :  { %1025 = vadd.xlane.f32.xlu2 %v1024_v54 }
 0x28f   :  { %1872 = vrsqrt.f32 %v1142_v15  ;;  %vm1164_vm4 = vweird.f32 %v1142_v15 }
 0x295   :  { %v1873_v56 = vpop.eup %1872 }
 0x296   :  { %v1159_v57 = vmul.f32 %v1873_v56, %v1142_v15  ;;  %vm1165_vm3 = vweird.f32 %v1873_v56 }
 0x297   :  { %vm1166_vm5 = vmor %vm1164_vm4, %vm1165_vm3 }
 0x298   :  { %v1160_v60 = vmul.f32 %v1873_v56, %v1159_v57 }
 0x299   :  { %v987_v7 = vpop.xlane.xlu2 %986 }
 0x29a   :  { %v1031_v17 = vmul.f32 %v987_v7, %v2315_v34  ;;  %v1161_v63 = vmul.f32 0.5, %v1160_v60 }
 0x29c   :  { %v1143_v19 = vadd.f32 1e-05, %v1031_v17  ;;  %v1162_v14 = vsub.f32 1.5, %v1161_v63 }
 0x29d   :  { %v948_v8 = vpop.permute.xlu0 %947 }
 0x29e   :  { %1874 = vrsqrt.f32 %v1143_v19  ;;  %v2516_v9 = vsub.f32 %v2305_v25, %v948_v8  ;;  %v1163_v31 = vmul.f32 %v1873_v56, %v1162_v14  ;;  %v972_v25 = vmul.f32 %v2521_v20, %v2521_v20 }
 0x29f   :  { %vm1174_vm7 = vweird.f32 %v1143_v19 }
 0x2a0   :  { %v981_v24 = vmul.f32 %v2516_v9, %v2516_v9  ;;  %v1167_v33 = vsel %vm1166_vm5, %v1873_v56, %v1163_v31  ;;  %v1000_v40 = vsel %vm661_vm1, %v972_v25, 0.0  ;;  %v781_v56 = vld [vmem:[%s2873_s18 + $0x70] sm:$0xff] }
 0x2a1   :  { %v1318_v43 = vmul.f32 %v1167_v33, %v1126_v39 }
 0x2a2   :  { %v1027_v22 = vsel %vm661_vm1, %v981_v24, 0.0 }
 0x2a3   :  { %1028 = vadd.xlane.f32.xlu1 %v1027_v22  ;;  %v1414_v61 = vadd.f32 %v2251_v41, %v1318_v43  ;;  %v1538_v41 = vld [vmem:[%s2875_s20 + $0x8] sm:$0xff] }
 0x2a4   :  { %v1875_v29 = vpop.eup %1874 }
 0x2a5   :  { %v1169_v36 = vmul.f32 %v1875_v29, %v1143_v19  ;;  %vm1175_vm6 = vweird.f32 %v1875_v29  ;;  %v1430_v57 = vmax.f32 %v1414_v61, 0.0 }
 0x2a6   :  { %1108 = vperm.xlu2 %1863, %v763_v49   ;;  %vm1176_vm8 = vmor %vm1174_vm7, %vm1175_vm6 }
 0x2a7   :  { %v1170_v58 = vmul.f32 %v1875_v29, %v1169_v36 }
 0x2a8   :  { %v999_v5 = vpop.xlane.xlu2 %998 }
 0x2a9   :  { %v1171_v53 = vmul.f32 0.5, %v1170_v58  ;;  %v1035_v17 = vmul.f32 %v999_v5, %v2315_v34 }
 0x2ab   :  { %v1172_v38 = vsub.f32 1.5, %v1171_v53  ;;  %1001 = vadd.xlane.f32.xlu0 %v1000_v40  ;;  %v1147_v19 = vadd.f32 1e-05, %v1035_v17 }
 0x2ad   :  { %v1173_v46 = vmul.f32 %v1875_v29, %v1172_v38  ;;  %1876 = vrsqrt.f32 %v1147_v19  ;;  %vm1214_vm14 = vweird.f32 %v1147_v19 }
 0x2ae   :  { %1118 = vperm.xlu2 %1863, %v765_v6  }
 0x2af   :  { %v1177_v15 = vsel %vm1176_vm8, %v1875_v29, %v1173_v46 }
 0x2b0   :  { %v1319_v54 = vmul.f32 %v1177_v15, %v1127_v47 }
 0x2b2   :  { %v1415_v52 = vadd.f32 %v2271_v59, %v1319_v54  ;;  %v777_v59 = vld [vmem:[%s2873_s18 + $0x50] sm:$0xff] }
 0x2b3   :  { %v2554_v14 = vpop.eup %1876 }
 0x2b4   :  { %v1431_v60 = vmax.f32 %v1415_v52, 0.0  ;;  %v1209_v29 = vmul.f32 %v2554_v14, %v1147_v19  ;;  %vm1215_vm12 = vweird.f32 %v2554_v14 }
 0x2b5   :  { %vm2583_vm15 = vmor %vm1214_vm14, %vm1215_vm12 }
 0x2b6   :  { %1406 = vperm.xlu2 %1863, %v781_v56   ;;  %v1446_v7 = vpack.c.bf16 %v1431_v60, %v1430_v57  ;;  %v1210_v58 = vmul.f32 %v2554_v14, %v1209_v29  ;;  %v190_v43 = vpop.f32.mrf.mxu2  ;;  %v2562_v56 = vsub.f32 %v2279_v0, %v2479_v18  ;;  %v1128_v57 = vmul.f32 %v2295_v13, %v2449_v44 }
 0x2b8   :  { %1813 = vmatmul.msk.bf16.vlgmr.msra.gmra.mxu0 %vm661_vm1, %v1446_v7  ;;  %v1211_v38 = vmul.f32 0.5, %v1210_v58 }
 0x2ba   :  { %v1212_v54 = vsub.f32 1.5, %v1211_v38 }
 0x2bc   :  { %1541 = vperm.xlu1 %1862, %v1537_v3   ;;  %v1864_v3 = vld [vmem:[%s2896_s14] ss:$0 sm:$0xff] }
 0x2bd   :  { %v2577_v13 = vadd.f32 %v1864_v3, %v190_v43 }
 0x2be   :  { %1546 = vperm.xlu2 %1863, %v1538_v41   ;;  %v1213_v41 = vmul.f32 %v2554_v14, %v1212_v54  ;;  %v192_v18 = vpop.f32.mrf.mxu2 }
 0x2bf   :  { %1386 = vperm.xlu0 %1861, %v777_v59   ;;  %v2579_v44 = vadd.f32 %v1864_v3, %v192_v18  ;;  %v2604_v3 = vpop.permute.xlu2 %1093 }
 0x2c1   :  { %v198_v29 = vadd.f32 %v2579_v44, %v2577_v13 }
 0x2c8   :  { %v990_v63 = vpop.xlane.xlu0 %989 }
 0x2c9   :  { %v1032_v8 = vmul.f32 %v990_v63, %v2315_v34  ;;  %v978_v63 = vmul.f32 %v2562_v56, %v2562_v56 }
 0x2cb   :  { %v1144_v24 = vadd.f32 1e-05, %v1032_v8  ;;  %v1942_v8 = vmov 16.0  }
 0x2cd   :  { %1878 = vrsqrt.f32 %v1144_v24  ;;  %vm1184_vm10 = vweird.f32 %v1144_v24 }
 0x2d0   :  { %v993_v22 = vpop.xlane.xlu0 %992 }
 0x2d1   :  { %v1033_v49 = vmul.f32 %v993_v22, %v2315_v34 }
 0x2d3   :  { %v1879_v31 = vpop.eup %1878  ;;  %v1145_v36 = vadd.f32 1e-05, %v1033_v49 }
 0x2d4   :  { %v1179_v25 = vmul.f32 %v1879_v31, %v1144_v24  ;;  %vm1185_vm9 = vweird.f32 %v1879_v31 }
 0x2d5   :  { %1880 = vrsqrt.f32 %v1145_v36  ;;  %vm2566_vm11 = vmor %vm1184_vm10, %vm1185_vm9  ;;  %vm1194_vm2 = vweird.f32 %v1145_v36 }
 0x2d6   :  { %v1180_v33 = vmul.f32 %v1879_v31, %v1179_v25  ;;  %v1217_v25 = vsel %vm2583_vm15, %v2554_v14, %v1213_v41 }
 0x2d8   :  { %v1181_v53 = vmul.f32 0.5, %v1180_v33  ;;  %v996_v39 = vpop.xlane.xlu0 %995  ;;  %v199_v33 = vrot.slane %v198_v29, 4 }
 0x2d9   :  { %v1034_v40 = vmul.f32 %v996_v39, %v2315_v34 }
 0x2da   :  { %v1182_v6 = vsub.f32 1.5, %v1181_v53  ;;  %v1131_v53 = vmul.f32 %v2303_v23, %v2429_v21  ;;  %v1130_v21 = vmul.f32 %v2293_v10, %v2469_v1 }
 0x2db   :  { %v1146_v46 = vadd.f32 1e-05, %v1034_v40  ;;  %v1881_v47 = vpop.eup %1880 }
 0x2dc   :  { %v1189_v15 = vmul.f32 %v1881_v47, %v1145_v36  ;;  %v1183_v61 = vmul.f32 %v1879_v31, %v1182_v6  ;;  %vm1195_vm13 = vweird.f32 %v1881_v47  ;;  %v1018_v36 = vsel %vm661_vm1, %v978_v63, 0.0 }
 0x2dd   :  { %1882 = vrsqrt.f32 %v1146_v46  ;;  %vm1196_vm3 = vmor %vm1194_vm2, %vm1195_vm13  ;;  %v200_v6 = vadd.f32 %v199_v33, %v198_v29  ;;  %vm1204_vm5 = vweird.f32 %v1146_v46 }
 0x2de   :  { %v1190_v52 = vmul.f32 %v1881_v47, %v1189_v15  ;;  %v1187_v0 = vsel %vm2566_vm11, %v1879_v31, %v1183_v61  ;;  %1884 = vrcp.f32 %v1942_v8  ;;  %v1129_v31 = vmul.f32 %v2283_v2, %v2460_v51  ;;  %v2598_v51 = vpop.permute.xlu1 %1103 }
 0x2df   :  { %v1320_v49 = vmul.f32 %v1187_v0, %v1128_v57  ;;  %v201_v15 = vrot.slane %v200_v6, 2 }
 0x2e0   :  { %v1191_v7 = vmul.f32 0.5, %v1190_v52 }
 0x2e1   :  { %v1416_v38 = vadd.f32 %v2257_v48, %v1320_v49  ;;  %v202_v48 = vadd.f32 %v201_v15, %v200_v6  ;;  %v1842_v15 = vld [vmem:[%s2900_s25 + $0x38] sm:$0xff] }
 0x2e2   :  { %v1192_v5 = vsub.f32 1.5, %v1191_v7  ;;  %319 = vmatpush.bf16.msra.mxu2 %v1842_v15 }
 0x2e3   :  { %v1883_v59 = vpop.eup %1882  ;;  %v1432_v52 = vmax.f32 %v1416_v38, 0.0  ;;  %v203_v0 = vrot.slane %v202_v48, 1 }
 0x2e4   :  { %v1199_v17 = vmul.f32 %v1883_v59, %v1146_v46  ;;  %v1193_v22 = vmul.f32 %v1881_v47, %v1192_v5  ;;  %v1885_v2 = vpop.eup %1884  ;;  %vm1205_vm4 = vweird.f32 %v1883_v59 }
 0x2e5   :  { %v206_v54 = vmul.f32 16.0, %v1885_v2  ;;  %vm1206_vm6 = vmor %vm1204_vm5, %vm1205_vm4  ;;  %vm210_vm7 = vweird.f32 %v1885_v2  ;;  %v204_v5 = vadd.f32 %v203_v0, %v202_v48  ;;  %v766_v0 = vld [vmem:[%s2872_s17 + $0x78] sm:$0xff] }
 0x2e6   :  { %v1200_v19 = vmul.f32 %v1883_v59, %v1199_v17  ;;  %v1197_v58 = vsel %vm1196_vm3, %v1881_v47, %v1193_v22  ;;  %v1323_v47 = vmul.f32 %v1217_v25, %v1131_v53  ;;  %v1005_v1 = vpop.xlane.xlu1 %1004 }
 0x2e7   :  { %v1321_v40 = vmul.f32 %v1197_v58, %v1129_v31  ;;  %v207_v57 = vsub.f32 1.0, %v206_v54  ;;  %v1037_v54 = vmul.f32 %v1005_v1, %v2315_v34 }
 0x2e8   :  { %v1201_v39 = vmul.f32 0.5, %v1200_v19  ;;  %v1419_v7 = vadd.f32 %v2313_v32, %v1323_v47  ;;  %v195_v32 = vld [vmem:[%s2899_s29] sm:$0x1]  ;;  %s2901_s29 = sld [smem:[#allocation10_spill]] }
 0x2e9   :  { %1019 = vadd.xlane.f32.xlu0 %v1018_v36  ;;  %v1417_v14 = vadd.f32 %v2307_v26, %v1321_v40  ;;  %v208_v18 = vmul.f32 %v1885_v2, %v207_v57  ;;  %v1011_v49 = vpop.xlane.xlu2 %1010  ;;  %v1841_v57 = vld [vmem:[%s2900_s25 + $0x30] sm:$0xff] }
 0x2ea   :  { %v1202_v43 = vsub.f32 1.5, %v1201_v39  ;;  %v1435_v63 = vmax.f32 %v1419_v7, 0.0  ;;  %320 = vmatpush.bf16.msra.mxu2 %v1841_v57 }
 0x2eb   :  { %v1433_v23 = vmax.f32 %v1417_v14, 0.0  ;;  %v209_v10 = vadd.f32 %v1885_v2, %v208_v18  ;;  %v1839_v18 = vld [vmem:[%s2900_s25 + $0x20] sm:$0xff] }
 0x2ec   :  { %v1203_v61 = vmul.f32 %v1883_v59, %v1202_v43 }
 0x2ed   :  { %v1447_v41 = vpack.c.bf16 %v1433_v23, %v1432_v52  ;;  %v780_v23 = vld [vmem:[%s2873_s18 + $0x68] sm:$0xff]  ;;  %v2644_v52 = vpop.permute.xlu0 %1376 }
 0x2ee   :  { %v1207_v60 = vsel %vm1206_vm6, %v1883_v59, %v1203_v61  ;;  %v2611_v59 = vsel %vm210_vm7, %v1885_v2, %v209_v10  ;;  %v1008_v25 = vpop.xlane.xlu1 %1007 }
 0x2ef   :  { %v1322_v26 = vmul.f32 %v1207_v60, %v1130_v21  ;;  %1814 = vmatmul.msk.bf16.gmra.mxu0 %vm661_vm1, %v1447_v41  ;;  %v212_v8 = vmul.f32 %v2611_v59, %v204_v5  ;;  %v2651_v60 = vadd.f32 1e-05, %v1037_v54  ;;  %v1840_v41 = vld [vmem:[%s2900_s25 + $0x28] sm:$0xff] }
 0x2f0   :  { %321 = vmatpush.bf16.msra.mxu2 %v1840_v41 }
 0x2f1   :  { %v1418_v46 = vadd.f32 %v2265_v55, %v1322_v26  ;;  %v213_v22 = vmul.f32 %v212_v8, %v195_v32  ;;  %v764_v55 = vld [vmem:[%s2872_s17 + $0x68] sm:$0xff]  ;;  %v1017_v36 = vpop.xlane.xlu2 %1016  ;;  %v1039_v32 = vmul.f32 %v1011_v49, %v2315_v34  ;;  %v782_v49 = vld [vmem:[%s2873_s18 + $0x78] sm:$0xff]  ;;  %vm1234_vm3 = vweird.f32 %v2651_v60 }
 0x2f2   :  { %v1041_v38 = vmul.f32 %v1017_v36, %v2315_v34 }
 0x2f3   :  { %v1434_v17 = vmax.f32 %v1418_v46, 0.0  ;;  %v215_v29 = vperm.slane %v213_v22, 0 }
 0x2f4   :  { %v2633_v14 = vadd.f32 1e-05, %v1041_v38  ;;  %322 = vmatpush.bf16.msra.mxu2 %v1839_v18 }
 0x2f5   :  { %v1448_v24 = vpack.c.bf16 %v1435_v63, %v1434_v17  ;;  %v2618_v31 = vsub.f32 %v2577_v13, %v215_v29  ;;  %v2621_v19 = vsub.f32 %v2579_v44, %v215_v29  ;;  %v779_v13 = vld [vmem:[%s2873_s18 + $0x60] sm:$0xff]  ;;  %v2670_v1 = vpop.permute.xlu0 %1381  ;;  %v1838_v17 = vld [vmem:[%s2900_s25 + $0x18] sm:$0xff] }
 0x2f6   :  { %v1014_v44 = vpop.xlane.xlu1 %1013  ;;  %1886 = vrsqrt.f32 %v2633_v14  ;;  %vm1274_vm12 = vweird.f32 %v2633_v14 }
 0x2f7   :  { %v219_v58 = vmul.f32 %v2618_v31, %v2618_v31  ;;  %v220_v33 = vmul.f32 %v2621_v19, %v2621_v19  ;;  %v1040_v43 = vmul.f32 %v1014_v44, %v2315_v34 }
 0x2f8   :  { %323 = vmatpush.bf16.msra.mxu2 %v1838_v17 }
 0x2f9   :  { %v221_v53 = vadd.f32 %v220_v33, %v219_v58  ;;  %v2642_v21 = vadd.f32 1e-05, %v1040_v43  ;;  %v1038_v58 = vmul.f32 %v1008_v25, %v2315_v34  ;;  %v1865_v33 = vld [vmem:[%s2901_s29] ss:$0 sm:$0xff]  ;;  %s2905_s29 = sld [smem:[#allocation13_spill]] }
 0x2fb   :  { %v222_v39 = vrot.slane %v221_v53, 4  ;;  %1888 = vrsqrt.f32 %v2642_v21  ;;  %v2697_v38 = vadd.f32 1e-05, %v1038_v58  ;;  %vm1264_vm2 = vweird.f32 %v2642_v21 }
 0x2fc   :  { %v2658_v26 = vpop.eup %1886 }
 0x2fd   :  { %1113 = vperm.xlu0 %1861, %v764_v55   ;;  %v223_v40 = vadd.f32 %v222_v39, %v221_v53  ;;  %v1269_v5 = vmul.f32 %v2658_v26, %v2633_v14  ;;  %v1837_v53 = vld [vmem:[%s2900_s25 + $0x10] sm:$0xff]  ;;  %v2693_v39 = vadd.f32 1e-05, %v1039_v32  ;;  %vm1275_vm11 = vweird.f32 %v2658_v26 }
 0x2fe   :  { %324 = vmatpush.bf16.msra.mxu2 %v1837_v53  ;;  %vm2722_vm13 = vmor %vm1274_vm12, %vm1275_vm11 }
 0x2ff   :  { %1815 = vmatmul.msk.bf16.gmra.mxu0 %vm661_vm1, %v1448_v24  ;;  %v224_v6 = vrot.slane %v223_v40, 2  ;;  %v1270_v22 = vmul.f32 %v2658_v26, %v1269_v5 }
 0x301   :  { %v225_v2 = vadd.f32 %v224_v6, %v223_v40  ;;  %v2666_v46 = vpop.eup %1888  ;;  %v1271_v40 = vmul.f32 0.5, %v1270_v22  ;;  %v232_v6 = vmul.f32 %v1865_v33, %v2618_v31 }
 0x302   :  { %v1259_v24 = vmul.f32 %v2666_v46, %v2642_v21  ;;  %vm1265_vm14 = vweird.f32 %v2666_v46  ;;  %v1133_v21 = vmul.f32 %v2287_v4, %v2435_v30 }
 0x303   :  { %v226_v47 = vrot.slane %v225_v2, 1  ;;  %v1272_v31 = vsub.f32 1.5, %v1271_v40  ;;  %vm1266_vm4 = vmor %vm1264_vm2, %vm1265_vm14 }
 0x304   :  { %v1260_v25 = vmul.f32 %v2666_v46, %v1259_v24 }
 0x305   :  { %1396 = vperm.xlu0 %1861, %v779_v13   ;;  %v227_v61 = vadd.f32 %v226_v47, %v225_v2  ;;  %v233_v2 = vmul.f32 %v1865_v33, %v2621_v19  ;;  %v1836_v47 = vld [vmem:[%s2900_s25 + $0x8] sm:$0xff] }
 0x306   :  { %325 = vmatpush.bf16.msra.mxu2 %v1836_v47 }
 0x307   :  { %v228_v48 = vmul.f32 %v227_v61, %v2611_v59  ;;  %v1261_v61 = vmul.f32 0.5, %v1260_v25 }
 0x309   :  { %v234_v7 = vadd.f32 1e-05, %v228_v48  ;;  %v1262_v18 = vsub.f32 1.5, %v1261_v61 }
 0x30b   :  { %1890 = vrsqrt.f32 %v234_v7  ;;  %vm241_vm8 = vweird.f32 %v234_v7  ;;  %v1263_v33 = vmul.f32 %v2666_v46, %v1262_v18 }
 0x30c   :  { %1892 = vrsqrt.f32 %v2651_v60 }
 0x30d   :  { %1401 = vperm.xlu0 %1861, %v780_v23   ;;  %1894 = vrsqrt.f32 %v2693_v39  ;;  %v1866_v23 = vld [vmem:[%s2902_s4] ss:$0 sm:$0xff]  ;;  %s1667_s4 = sshll.u32 %s2879_s24, 4  ;;  %s1668_s4 = int_to_ptr.hbm [resolvable:$true] %s1667_s4 }
 0x30e   :  { %1896 = vrsqrt.f32 %v2697_v38 }
 0x311   :  { %v1891_v10 = vpop.eup %1890 }
 0x312   :  { %v2675_v63 = vpop.eup %1892  ;;  %v236_v8 = vmul.f32 %v1891_v10, %v234_v7  ;;  %vm242_vm9 = vweird.f32 %v1891_v10 }
 0x313   :  { %v1229_v55 = vmul.f32 %v2675_v63, %v2651_v60  ;;  %vm243_vm10 = vmor %vm241_vm8, %vm242_vm9  ;;  %v2713_v32 = vpop.eup %1894  ;;  %vm1235_vm15 = vweird.f32 %v2675_v63  ;;  %v1392_v60 = vpop.permute.xlu1 %1391 }
 0x314   :  { %v237_v29 = vmul.f32 %v1891_v10, %v236_v8  ;;  %v1273_v8 = vmul.f32 %v2658_v26, %v1272_v31  ;;  %vm1236_vm5 = vmor %vm1234_vm3, %vm1235_vm15  ;;  %vm1255_vm9 = vweird.f32 %v2713_v32 }
 0x315   :  { %1123 = vperm.xlu0 %1861, %v766_v0   ;;  %v1230_v44 = vmul.f32 %v2675_v63, %v1229_v55  ;;  %v1835_v0 = vld [vmem:[%s2900_s25] sm:$0xff]  ;;  %v1249_v55 = vmul.f32 %v2713_v32, %v2693_v39 }
 0x316   :  { %v238_v36 = vmul.f32 0.5, %v237_v29  ;;  %326 = vmatpush.bf16.msra.mxu2 %v1835_v0  ;;  %v2718_v29 = vpop.eup %1896  ;;  %v1277_v14 = vsel %vm2722_vm13, %v2658_v26, %v1273_v8  ;;  %vm1244_vm13 = vweird.f32 %v2697_v38 }
 0x317   :  { %v1231_v57 = vmul.f32 0.5, %v1230_v44  ;;  %v1267_v44 = vsel %vm1266_vm4, %v2666_v46, %v1263_v33  ;;  %vm1245_vm12 = vweird.f32 %v2718_v29  ;;  %v1134_v33 = vmul.f32 %v2309_v27, %v2441_v28 }
 0x318   :  { %v239_v13 = vsub.f32 1.5, %v238_v36  ;;  %v1137_v36 = vmul.f32 %v2598_v51, %v2487_v11  ;;  %v1250_v11 = vmul.f32 %v2713_v32, %v1249_v55  ;;  %v1328_v47 = vmul.f32 %v1267_v44, %v2502_v42  ;;  %vm1246_vm14 = vmor %vm1244_vm13, %vm1245_vm12 }
 0x31a   :  { %v240_v15 = vmul.f32 %v1891_v10, %v239_v13  ;;  %v1239_v13 = vmul.f32 %v2718_v29, %v2697_v38  ;;  %v1329_v26 = vmul.f32 %v1277_v14, %v1137_v36  ;;  %v1023_v38 = vpop.xlane.xlu2 %1022 }
 0x31b   :  { %v1043_v14 = vmul.f32 %v1023_v38, %v2315_v34 }
 0x31c   :  { %v244_v48 = vsel %vm243_vm10, %v1891_v10, %v240_v15  ;;  %v1232_v10 = vsub.f32 1.5, %v1231_v57  ;;  %v1251_v15 = vmul.f32 0.5, %v1250_v11  ;;  %v1425_v61 = vadd.f32 %v1392_v60, %v1329_v26 }
 0x31d   :  { %1411 = vperm.xlu0 %1861, %v782_v49   ;;  %v245_v7 = vmul.f32 %v244_v48, %v232_v6  ;;  %v246_v41 = vmul.f32 %v244_v48, %v233_v2  ;;  %vm1254_vm10 = vweird.f32 %v2693_v39 }
 0x31e   :  { %v1002_v43 = vpop.xlane.xlu0 %1001  ;;  %v1233_v25 = vmul.f32 %v2675_v63, %v1232_v10  ;;  %v1252_v4 = vsub.f32 1.5, %v1251_v15  ;;  %vm1256_vm11 = vmor %vm1254_vm10, %vm1255_vm9 }
 0x31f   :  { %v1036_v54 = vmul.f32 %v1002_v43, %v2315_v34  ;;  %v251_v5 = vadd.f32 %v1866_v23, %v246_v41  ;;  %v250_v17 = vadd.f32 %v1866_v23, %v245_v7  ;;  %v1240_v43 = vmul.f32 %v2718_v29, %v1239_v13 }
 0x320   :  { %v1237_v6 = vsel %vm1236_vm5, %v2675_v63, %v1233_v25  ;;  %v1132_v63 = vmul.f32 %v2277_v62, %v2521_v20  ;;  %v1441_v41 = vmax.f32 %v1425_v61, 0.0  ;;  %v1155_v25 = vadd.f32 1e-05, %v1043_v14 }
 0x321   :  { %v1148_v19 = vadd.f32 1e-05, %v1036_v54  ;;  %v253_v24 = vmax.f32 %v251_v5, 0.0  ;;  %v252_v22 = vmax.f32 %v250_v17, 0.0  ;;  %v1325_v31 = vmul.f32 %v1237_v6, %v1133_v21 }
 0x322   :  { %v1241_v57 = vmul.f32 0.5, %v1240_v43  ;;  %v1026_v27 = vpop.xlane.xlu2 %1025  ;;  %vm1294_vm5 = vweird.f32 %v1155_v25 }
 0x323   :  { %1898 = vrsqrt.f32 %v1148_v19  ;;  %v254_v49 = vpack.c.bf16 %v253_v24, %v252_v22  ;;  %vm1224_vm7 = vweird.f32 %v1148_v19  ;;  %v1421_v18 = vadd.f32 %v2297_v16, %v1325_v31 }
 0x324   :  { %v1242_v8 = vsub.f32 1.5, %v1241_v57  ;;  %1900 = vrsqrt.f32 %v1155_v25 }
 0x325   :  { %327 = vmatmul.bf16.vlgmr.msra.gmra.mxu2 %v254_v49  ;;  %v1437_v20 = vmax.f32 %v1421_v18, 0.0 }
 0x326   :  { %v1243_v24 = vmul.f32 %v2718_v29, %v1242_v8 }
 0x328   :  { %v1247_v58 = vsel %vm1246_vm14, %v2718_v29, %v1243_v24 }
 0x329   :  { %v1899_v53 = vpop.eup %1898 }
 0x32a   :  { %v1219_v40 = vmul.f32 %v1899_v53, %v1148_v19  ;;  %vm1225_vm6 = vweird.f32 %v1899_v53  ;;  %v1253_v19 = vmul.f32 %v2713_v32, %v1252_v4  ;;  %v1901_v13 = vpop.eup %1900 }
 0x32b   :  { %vm1226_vm8 = vmor %vm1224_vm7, %vm1225_vm6  ;;  %v1289_v6 = vmul.f32 %v1901_v13, %v1155_v25  ;;  %vm1295_vm4 = vweird.f32 %v1901_v13 }
 0x32c   :  { %v1220_v51 = vmul.f32 %v1899_v53, %v1219_v40  ;;  %v1257_v16 = vsel %vm1256_vm11, %v2713_v32, %v1253_v19  ;;  %v1326_v32 = vmul.f32 %v1247_v58, %v1134_v33  ;;  %vm1296_vm6 = vmor %vm1294_vm5, %vm1295_vm4 }
 0x32d   :  { %v1290_v43 = vmul.f32 %v1901_v13, %v1289_v6 }
 0x32e   :  { %v1221_v2 = vmul.f32 0.5, %v1220_v51 }
 0x32f   :  { %v1291_v61 = vmul.f32 0.5, %v1290_v43 }
 0x330   :  { %v1222_v54 = vsub.f32 1.5, %v1221_v2 }
 0x331   :  { %v1387_v23 = vpop.permute.xlu0 %1386 }
 0x332   :  { %v1223_v46 = vmul.f32 %v1899_v53, %v1222_v54  ;;  %v1424_v48 = vadd.f32 %v1387_v23, %v1328_v47 }
 0x334   :  { %v1227_v30 = vsel %vm1226_vm8, %v1899_v53, %v1223_v46  ;;  %v1440_v7 = vmax.f32 %v1424_v48, 0.0  ;;  %v1292_v46 = vsub.f32 1.5, %v1291_v61 }
 0x335   :  { %v2748_v0 = vpop.f32.mrf.mxu0  ;;  %v1324_v42 = vmul.f32 %v1227_v30, %v1132_v63  ;;  %v1109_v30 = vpop.permute.xlu2 %1108 }
 0x336   :  { %v1451_v5 = vpack.c.bf16 %v1441_v41, %v1440_v7 }
 0x337   :  { %v1420_v17 = vadd.f32 %v2317_v37, %v1324_v42  ;;  %v1135_v37 = vmul.f32 %v2604_v3, %v2477_v12  ;;  %v1422_v12 = vadd.f32 %v2644_v52, %v1326_v32  ;;  %v1044_v52 = vmul.f32 %v1026_v27, %v2315_v34 }
 0x339   :  { %v1436_v62 = vmax.f32 %v1420_v17, 0.0  ;;  %v1327_v55 = vmul.f32 %v1257_v16, %v1135_v37  ;;  %v1438_v53 = vmax.f32 %v1422_v12, 0.0  ;;  %v1156_v11 = vadd.f32 1e-05, %v1044_v52 }
 0x33a   :  { %v1138_v17 = vmul.f32 %v1109_v30, %v2562_v56 }
 0x33b   :  { %v1449_v10 = vpack.c.bf16 %v1437_v20, %v1436_v62  ;;  %v1423_v49 = vadd.f32 %v2670_v1, %v1327_v55  ;;  %v1029_v1 = vpop.xlane.xlu1 %1028  ;;  %vm1304_vm8 = vweird.f32 %v1156_v11 }
 0x33c   :  { %v1045_v44 = vmul.f32 %v1029_v1, %v2315_v34 }
 0x33d   :  { %v2760_v22 = vpop.f32.mrf.mxu0  ;;  %1816 = vmatmul.msk.bf16.gmra.mxu0 %vm661_vm1, %v1449_v10  ;;  %v1439_v3 = vmax.f32 %v1423_v49, 0.0  ;;  %v1119_v32 = vpop.permute.xlu2 %1118 }
 0x33e   :  { %v1529_v39 = vpack.c.bf16 %v2760_v22, %v2748_v0  ;;  %v1157_v21 = vadd.f32 1e-05, %v1045_v44  ;;  %v1572_v0 = vld [vmem:[%s2877_s22 + $0x8] sm:$0xff]  ;;  %v1571_v22 = vld [vmem:[%s2877_s22] sm:$0xff] }
 0x33f   :  { %v1450_v36 = vpack.c.bf16 %v1439_v3, %v1438_v53 }
 0x340   :  { %vm1314_vm11 = vweird.f32 %v1157_v21 }
 0x345   :  { %v1407_v52 = vpop.permute.xlu2 %1406 }
 0x34d   :  { %1817 = vmatmul.msk.bf16.gmra.mxu0 %vm661_vm1, %v1450_v36 }
 0x35c   :  { %v1020_v40 = vpop.xlane.xlu0 %1019 }
 0x35d   :  { %v1042_v29 = vmul.f32 %v1020_v40, %v2315_v34  ;;  %1818 = vmatmul.msk.bf16.gmra.mxu0 %vm661_vm1, %v1451_v5  ;;  %v1293_v5 = vmul.f32 %v1901_v13, %v1292_v46  ;;  %v1140_v40 = vmul.f32 %v1119_v32, %v2507_v45 }
 0x35f   :  { %v1154_v28 = vadd.f32 1e-05, %v1042_v29  ;;  %v1297_v10 = vsel %vm1296_vm6, %v1901_v13, %v1293_v5 }
 0x361   :  { %1902 = vrsqrt.f32 %v1154_v28  ;;  %vm1284_vm2 = vweird.f32 %v1154_v28 }
 0x362   :  { %1904 = vrsqrt.f32 %v1156_v11 }
 0x363   :  { %1906 = vrsqrt.f32 %v1157_v21 }
 0x367   :  { %v1903_v51 = vpop.eup %1902 }
 0x368   :  { %v1279_v26 = vmul.f32 %v1903_v51, %v1154_v28  ;;  %v1905_v54 = vpop.eup %1904  ;;  %vm1285_vm15 = vweird.f32 %v1903_v51 }
 0x369   :  { %v1299_v31 = vmul.f32 %v1905_v54, %v1156_v11  ;;  %v1907_v63 = vpop.eup %1906  ;;  %vm1286_vm3 = vmor %vm1284_vm2, %vm1285_vm15  ;;  %vm1305_vm7 = vweird.f32 %v1905_v54 }
 0x36a   :  { %v1280_v2 = vmul.f32 %v1903_v51, %v1279_v26  ;;  %v1309_v42 = vmul.f32 %v1907_v63, %v1157_v21  ;;  %vm1306_vm9 = vmor %vm1304_vm8, %vm1305_vm7  ;;  %vm1315_vm10 = vweird.f32 %v1907_v63 }
 0x36b   :  { %v1300_v4 = vmul.f32 %v1905_v54, %v1299_v31  ;;  %vm1316_vm12 = vmor %vm1314_vm11, %vm1315_vm10 }
 0x36c   :  { %v1281_v60 = vmul.f32 0.5, %v1280_v2  ;;  %v2777_v47 = vpop.f32.mrf.mxu0  ;;  %v1310_v20 = vmul.f32 %v1907_v63, %v1309_v42 }
 0x36d   :  { %v1301_v19 = vmul.f32 0.5, %v1300_v4 }
 0x36e   :  { %v1282_v23 = vsub.f32 1.5, %v1281_v60  ;;  %v1311_v49 = vmul.f32 0.5, %v1310_v20 }
 0x36f   :  { %v1114_v15 = vpop.permute.xlu0 %1113  ;;  %v1302_v55 = vsub.f32 1.5, %v1301_v19 }
 0x370   :  { %v1283_v48 = vmul.f32 %v1903_v51, %v1282_v23  ;;  %v1139_v8 = vmul.f32 %v1114_v15, %v2496_v35  ;;  %v1312_v35 = vsub.f32 1.5, %v1311_v49 }
 0x371   :  { %v1303_v53 = vmul.f32 %v1905_v54, %v1302_v55 }
 0x372   :  { %v1287_v18 = vsel %vm1286_vm3, %v1903_v51, %v1283_v48  ;;  %v1331_v37 = vmul.f32 %v1297_v10, %v1139_v8  ;;  %v1313_v29 = vmul.f32 %v1907_v63, %v1312_v35  ;;  %v1542_v8 = vpop.permute.xlu1 %1541  ;;  %v1547_v10 = vpop.permute.xlu2 %1546 }
 0x373   :  { %v1330_v62 = vmul.f32 %v1287_v18, %v1138_v17  ;;  %v1307_v38 = vsel %vm1306_vm9, %v1905_v54, %v1303_v53 }
 0x374   :  { %v2779_v57 = vpop.f32.mrf.mxu0  ;;  %v1332_v27 = vmul.f32 %v1307_v38, %v1140_v40  ;;  %v1317_v1 = vsel %vm1316_vm12, %v1907_v63, %v1313_v29 }
 0x375   :  { %v1530_v7 = vpack.c.bf16 %v2779_v57, %v2777_v47 }
 0x376   :  { %v1428_v13 = vadd.f32 %v1407_v52, %v1332_v27  ;;  %v1574_v52 = vld [vmem:[%s2878_s23 + $0x8] sm:$0xff] }
 0x377   :  { %v1397_v41 = vpop.permute.xlu0 %1396 }
 0x378   :  { %v1426_v24 = vadd.f32 %v1397_v41, %v1330_v62  ;;  %v1444_v26 = vmax.f32 %v1428_v13, 0.0 }
 0x37a   :  { %v1442_v12 = vmax.f32 %v1426_v24, 0.0  ;;  %v1569_v24 = vld [vmem:[%s2876_s21] sm:$0xff] }
 0x37c   :  { %v1497_v16 = vpop.f32.mrf.mxu0 }
 0x37f   :  { %v1402_v58 = vpop.permute.xlu0 %1401 }
 0x380   :  { %v1427_v33 = vadd.f32 %v1402_v58, %v1331_v37  ;;  %v1570_v58 = vld [vmem:[%s2876_s21 + $0x8] sm:$0xff] }
 0x382   :  { %v1443_v3 = vmax.f32 %v1427_v33, 0.0 }
 0x384   :  { %v1452_v56 = vpack.c.bf16 %v1443_v3, %v1442_v12  ;;  %v1499_v36 = vpop.f32.mrf.mxu0 }
 0x385   :  { %v1531_v14 = vpack.c.bf16 %v1499_v36, %v1497_v16 }
 0x386   :  { %1819 = vmatmul.msk.bf16.gmra.mxu0 %vm661_vm1, %v1452_v56 }
 0x387   :  { %v1124_v25 = vpop.permute.xlu0 %1123 }
 0x388   :  { %v1141_v28 = vmul.f32 %v1124_v25, %v2516_v9  ;;  %v1867_v25 = vld [vmem:[%s2905_s29] ss:$0 sm:$0xff] }
 0x38a   :  { %v1333_v11 = vmul.f32 %v1317_v1, %v1141_v28 }
 0x38f   :  { %v1412_v51 = vpop.permute.xlu0 %1411 }
 0x390   :  { %v1429_v44 = vadd.f32 %v1412_v51, %v1333_v11 }
 0x392   :  { %v1445_v6 = vmax.f32 %v1429_v44, 0.0 }
 0x394   :  { %v1453_v2 = vpack.c.bf16 %v1445_v6, %v1444_v26  ;;  %v352_v6 = vld [vmem:[%s2864_s9] sm:$0x1] }
 0x396   :  { %1820 = vmatmul.msk.bf16.gmra.mxu0 %vm661_vm1, %v1453_v2 }
 0x3a8   :  { %v328_v43 = vpop.f32.mrf.mxu2 }
 0x3b0   :  { %v330_v45 = vpop.f32.mrf.mxu2 }
 0x3b1   :  { %v333_v60 = vpack.c.bf16 %v330_v45, %v328_v43 }
 0x3b3   :  { %345 = vmatpush.bf16.msrb.mxu2 %v333_v60 }
 0x3b6   :  { %1752 = vmatmul.msk.bf16.vlgmr.msrb.gmra.mxu2 %vm177_vm0, %v2457_v50  ;;  %v1854_v50 = vld [vmem:[%s2874_s19] sm:$0xff] }
 0x3ba   :  { %v1502_v15 = vpop.f32.mrf.mxu0 }
 0x3c2   :  { %v1504_v9 = vpop.f32.mrf.mxu0 }
 0x3c3   :  { %v1532_v21 = vpack.c.bf16 %v1504_v9, %v1502_v15 }
 0x3ca   :  { %v1507_v54 = vpop.f32.mrf.mxu0 }
 0x3d2   :  { %v1509_v61 = vpop.f32.mrf.mxu0 }
 0x3d3   :  { %v1533_v18 = vpack.c.bf16 %v1509_v61, %v1507_v54 }
 0x3da   :  { %v1512_v23 = vpop.f32.mrf.mxu0 }
 0x3e2   :  { %v1514_v31 = vpop.f32.mrf.mxu0 }
 0x3e3   :  { %v1534_v42 = vpack.c.bf16 %v1514_v31, %v1512_v23 }
 0x403   :  { %v1517_v46 = vpop.f32.mrf.mxu0 }
 0x40b   :  { %v1519_v48 = vpop.f32.mrf.mxu0 }
 0x40c   :  { %v1535_v41 = vpack.c.bf16 %v1519_v48, %v1517_v46 }
 0x413   :  { %v1522_v63 = vpop.f32.mrf.mxu0 }
 0x41b   :  { %v1524_v4 = vpop.f32.mrf.mxu0 }
 0x41c   :  { %v1536_v30 = vpack.c.bf16 %v1524_v4, %v1522_v63 }
 0x41e   :  { %1555 = vmatpush.bf16.msra.mxu2 %v1536_v30 }
 0x422   :  { %1556 = vmatpush.bf16.msra.mxu2 %v1535_v41 }
 0x426   :  { %1557 = vmatpush.bf16.msra.mxu2 %v1534_v42 }
 0x42a   :  { %1558 = vmatpush.bf16.msra.mxu2 %v1533_v18 }
 0x42e   :  { %1559 = vmatpush.bf16.msra.mxu2 %v1532_v21 }
 0x432   :  { %1560 = vmatpush.bf16.msra.mxu2 %v1531_v14 }
 0x436   :  { %1561 = vmatpush.bf16.msra.mxu2 %v1530_v7 }
 0x439   :  { %v347_v5 = vpop.f32.mrf.mxu2 }
 0x43a   :  { %1562 = vmatpush.bf16.msra.mxu2 %v1529_v39  ;;  %v1573_v39 = vld [vmem:[%s2878_s23] sm:$0xff]  ;;  %v348_v40 = vadd.f32 %v1867_v25, %v347_v5 }
 0x43d   :  { %1563 = vmatmul.bf16.vlgmr.msra.gmra.mxu2 %v1854_v50 }
 0x441   :  { %v349_v17 = vpop.f32.mrf.mxu2 }
 0x442   :  { %v350_v29 = vadd.f32 %v1867_v25, %v349_v17 }
 0x444   :  { %v355_v27 = vadd.f32 %v350_v29, %v348_v40 }
 0x446   :  { %v356_v28 = vrot.slane %v355_v27, 4 }
 0x448   :  { %v357_v1 = vadd.f32 %v356_v28, %v355_v27 }
 0x44a   :  { %v358_v13 = vrot.slane %v357_v1, 2 }
 0x44c   :  { %v359_v11 = vadd.f32 %v358_v13, %v357_v1 }
 0x44e   :  { %v360_v51 = vrot.slane %v359_v11, 1 }
 0x450   :  { %v361_v44 = vadd.f32 %v360_v51, %v359_v11 }
 0x452   :  { %v362_v26 = vmul.f32 %v361_v44, %v2611_v59 }
 0x454   :  { %v363_v2 = vmul.f32 %v362_v26, %v352_v6 }
 0x456   :  { %v365_v43 = vperm.slane %v363_v2, 0 }
 0x458   :  { %v367_v45 = vsub.f32 %v348_v40, %v365_v43  ;;  %v368_v60 = vsub.f32 %v350_v29, %v365_v43 }
 0x45a   :  { %v369_v15 = vmul.f32 %v367_v45, %v367_v45  ;;  %v370_v9 = vmul.f32 %v368_v60, %v368_v60 }
 0x45c   :  { %v371_v21 = vadd.f32 %v370_v9, %v369_v15 }
 0x45e   :  { %v372_v54 = vrot.slane %v371_v21, 4 }
 0x460   :  { %v373_v61 = vadd.f32 %v372_v54, %v371_v21 }
 0x462   :  { %v374_v23 = vrot.slane %v373_v61, 2 }
 0x464   :  { %v375_v31 = vadd.f32 %v374_v23, %v373_v61 }
 0x466   :  { %v376_v46 = vrot.slane %v375_v31, 1 }
 0x468   :  { %v377_v48 = vadd.f32 %v376_v46, %v375_v31 }
 0x46a   :  { %v378_v63 = vmul.f32 %v377_v48, %v2611_v59  ;;  %v1868_v59 = vld [vmem:[%s2865_s10] ss:$0 sm:$0xff]  ;;  %s1943_s10 = smov [#allocation2]  }
 0x46c   :  { %v384_v4 = vadd.f32 1e-05, %v378_v63 }
 0x46e   :  { %1908 = vrsqrt.f32 %v384_v4  ;;  %vm391_vm0 = vweird.f32 %v384_v4 }
 0x474   :  { %v1909_v30 = vpop.eup %1908 }
 0x475   :  { %v386_v41 = vmul.f32 %v1909_v30, %v384_v4  ;;  %vm392_vm13 = vweird.f32 %v1909_v30 }
 0x476   :  { %vm393_vm14 = vmor %vm391_vm0, %vm392_vm13 }
 0x477   :  { %v387_v42 = vmul.f32 %v1909_v30, %v386_v41 }
 0x4c0   :  { %v1564_v19 = vpop.f32.mrf.mxu2 }
 0x4c1   :  { %v1565_v62 = vadd.f32 %v1564_v19, %v1542_v8  ;;  %v388_v8 = vmul.f32 0.5, %v387_v42 }
 0x4c3   :  { %v1575_v20 = vsel %vm661_vm1, %v1565_v62, 0.0  ;;  %v389_v19 = vsub.f32 1.5, %v388_v8 }
 0x4c4   :  { %1576 = vadd.xlane.f32.xlu0 %v1575_v20 }
 0x4c8   :  { %v1566_v47 = vpop.f32.mrf.mxu2 }
 0x4c9   :  { %v1567_v57 = vadd.f32 %v1566_v47, %v1547_v10 }
 0x4cb   :  { %v1578_v7 = vsel %vm661_vm1, %v1567_v57, 0.0 }
 0x4cc   :  { %1579 = vadd.xlane.f32.xlu2 %v1578_v7 }
 0x4d8   :  { %1614 = vperm.xlu0 %1861, %v1572_v0  }
 0x4e4   :  { %1609 = vperm.xlu2 %1863, %v1571_v22  }
 0x4ec   :  { %1645 = vperm.xlu2 %1863, %v1573_v39   ;;  %v382_v39 = vmul.f32 %v1868_v59, %v367_v45 }
 0x537   :  { %v1577_v16 = vpop.xlane.xlu0 %1576 }
 0x538   :  { %v1581_v37 = vmul.f32 %v1577_v16, %v2315_v34 }
 0x53a   :  { %v1583_v55 = vmul.f32 %v1581_v37, %v1569_v24 }
 0x53c   :  { %1587 = vperm.xlu1 %1862, %v1583_v55  }
 0x53f   :  { %v1580_v33 = vpop.xlane.xlu2 %1579 }
 0x540   :  { %v1582_v32 = vmul.f32 %v1580_v33, %v2315_v34 }
 0x542   :  { %v1584_v49 = vmul.f32 %v1582_v32, %v1570_v58  ;;  %v1869_v58 = vld [vmem:[%s2866_s11] ss:$0 sm:$0xff]  ;;  %s1665_s11 = sshll.u32 %s1943_s10, 4  ;;  %s1666_s11 = int_to_ptr.vmem [resolvable:$true] %s1665_s11 }
 0x544   :  { %1592 = vperm.xlu1 %1862, %v1584_v49  }
 0x547   :  { %v1610_v0 = vpop.permute.xlu2 %1609 }
 0x54a   :  { %v1615_v18 = vpop.permute.xlu0 %1614 }
 0x5ae   :  { %v1588_v12 = vpop.permute.xlu1 %1587 }
 0x5af   :  { %v2819_v3 = vsub.f32 %v1565_v62, %v1588_v12 }
 0x5b1   :  { %v1597_v53 = vmul.f32 %v2819_v3, %v2819_v3  ;;  %v1617_v49 = vmul.f32 %v1610_v0, %v2819_v3 }
 0x5b3   :  { %v1599_v56 = vsel %vm661_vm1, %v1597_v53, 0.0 }
 0x5b4   :  { %1600 = vadd.xlane.f32.xlu1 %v1599_v56  ;;  %v383_v56 = vmul.f32 %v1868_v59, %v368_v60 }
 0x5b6   :  { %v1593_v35 = vpop.permute.xlu1 %1592 }
 0x5b7   :  { %v2824_v36 = vsub.f32 %v1567_v57, %v1593_v35  ;;  %v390_v57 = vmul.f32 %v1909_v30, %v389_v19 }
 0x5b9   :  { %v1598_v38 = vmul.f32 %v2824_v36, %v2824_v36  ;;  %v394_v24 = vsel %vm393_vm14, %v1909_v30, %v390_v57  ;;  %v1618_v13 = vmul.f32 %v1615_v18, %v2824_v36 }
 0x5ba   :  { %v395_v55 = vmul.f32 %v394_v24, %v382_v39  ;;  %v396_v27 = vmul.f32 %v394_v24, %v383_v56 }
 0x5bb   :  { %v1602_v14 = vsel %vm661_vm1, %v1598_v38, 0.0 }
 0x5bc   :  { %1603 = vadd.xlane.f32.xlu0 %v1602_v14  ;;  %v400_v38 = vadd.f32 %v1869_v58, %v395_v55  ;;  %v1646_v14 = vpop.permute.xlu2 %1645  ;;  %v401_v44 = vadd.f32 %v1869_v58, %v396_v27 }
 0x5be   :  { %v403_v2 = vmax.f32 %v401_v44, 0.0 }
 0x5d0   :  { %1650 = vperm.xlu0 %1861, %v1574_v52   ;;  %v402_v52 = vmax.f32 %v400_v38, 0.0 }
 0x627   :  { %v1601_v50 = vpop.xlane.xlu1 %1600 }
 0x628   :  { %v1605_v5 = vmul.f32 %v1601_v50, %v2315_v34 }
 0x62a   :  { %v1619_v17 = vadd.f32 1e-05, %v1605_v5 }
 0x62c   :  { %1910 = vrsqrt.f32 %v1619_v17  ;;  %vm1627_vm2 = vweird.f32 %v1619_v17 }
 0x62f   :  { %v1604_v62 = vpop.xlane.xlu0 %1603 }
 0x630   :  { %v1606_v20 = vmul.f32 %v1604_v62, %v2315_v34 }
 0x632   :  { %v1911_v10 = vpop.eup %1910  ;;  %v1620_v47 = vadd.f32 1e-05, %v1606_v20 }
 0x633   :  { %v1622_v7 = vmul.f32 %v1911_v10, %v1619_v17  ;;  %vm1628_vm15 = vweird.f32 %v1911_v10 }
 0x634   :  { %1912 = vrsqrt.f32 %v1620_v47  ;;  %vm1629_vm3 = vmor %vm1627_vm2, %vm1628_vm15  ;;  %vm1637_vm5 = vweird.f32 %v1620_v47 }
 0x635   :  { %v1623_v22 = vmul.f32 %v1911_v10, %v1622_v7 }
 0x637   :  { %v1624_v16 = vmul.f32 0.5, %v1623_v22 }
 0x639   :  { %v1625_v37 = vsub.f32 1.5, %v1624_v16 }
 0x63a   :  { %v1913_v34 = vpop.eup %1912 }
 0x63b   :  { %v1626_v33 = vmul.f32 %v1911_v10, %v1625_v37  ;;  %v1632_v32 = vmul.f32 %v1913_v34, %v1620_v47  ;;  %vm1638_vm4 = vweird.f32 %v1913_v34 }
 0x63c   :  { %vm1639_vm6 = vmor %vm1637_vm5, %vm1638_vm4 }
 0x63d   :  { %v1630_v12 = vsel %vm1629_vm3, %v1911_v10, %v1626_v33  ;;  %v1633_v53 = vmul.f32 %v1913_v34, %v1632_v32 }
 0x63e   :  { %v1641_v35 = vmul.f32 %v1630_v12, %v1617_v49 }
 0x63f   :  { %v1634_v25 = vmul.f32 0.5, %v1633_v53 }
 0x640   :  { %v1653_v40 = vadd.f32 %v1646_v14, %v1641_v35 }
 0x641   :  { %v1635_v29 = vsub.f32 1.5, %v1634_v25 }
 0x642   :  { %v1655_v28 = vmax.f32 %v1653_v40, 0.0  ;;  %v1651_v26 = vpop.permute.xlu0 %1650 }
 0x643   :  { %v1636_v1 = vmul.f32 %v1913_v34, %v1635_v29 }
 0x644   :  { %v1657_v3 = vadd.f32 %v1655_v28, %v402_v52 }
 0x645   :  { %v1640_v11 = vsel %vm1639_vm6, %v1913_v34, %v1636_v1 }
 0x646   :  { %v1642_v51 = vmul.f32 %v1640_v11, %v1618_v13  ;;  %1659 = vst.msk [vmem:[#allocation2] sm:$0xff] %vm661_vm1, %v1657_v3 }
 0x648   :  { %v1654_v6 = vadd.f32 %v1651_v26, %v1642_v51 }
 0x64a   :  { %v1656_v43 = vmax.f32 %v1654_v6, 0.0 }
 0x64c   :  { %v1658_v36 = vadd.f32 %v1656_v43, %v403_v2 }
 0x64e   :  { %1660 = vst.msk [vmem:[#allocation2 + $0x8] sm:$0xff] %vm661_vm1, %v1658_v36 }
 0x64f   :  { %1673 = dma.vmem_to_hbm [thread:$0]  %s1666_s11, 256, %s1668_s4, [#allocation3], %s1944_s1, %s1944_s1, %s1945_s5  }
 0x650   :  { %1938 = dma.done.wait [#allocation3], 256  }
 0x651   :  { %1939 = vsyncadd [#allocation3], 4294967040 }
 0x652   :  { %1678 = vsyncpa [#allocation3], 1 }

// kernel: tpu_custom_call.1
= control target key start
LH: loop header
LB: loop body
LE: loop exit
PB: predicated region body
PF: predicated region fallthrough
CT: control target
= control target key end

     0   :  { %s2855_s0 = inlined_call_operand.vmem [shape: bf16[16,128], index: 0, kind: input, shape index: {}]   ;;  %s2856_s1 = inlined_call_operand.vmem [shape: bf16[16,16], index: 1, kind: input, shape index: {}]   ;;  %s2857_s2 = inlined_call_operand.vmem [shape: bf16[128,128], index: 2, kind: input, shape index: {}]   ;;  %s2858_s3 = inlined_call_operand.vmem [shape: f32[1,128], index: 3, kind: input, shape index: {}]   ;;  %s2859_s4 = inlined_call_operand.vmem [shape: f32[1,128], index: 4, kind: input, shape index: {}]   ;;  %s2860_s5 = inlined_call_operand.vmem [shape: f32[1,128], index: 5, kind: input, shape index: {}]   ;;  %s2861_s6 = inlined_call_operand.vmem [shape: f32[1,128], index: 6, kind: input, shape index: {}]   ;;  %s2862_s7 = inlined_call_operand.vmem [shape: bf16[128,128], index: 7, kind: input, shape index: {}]   ;;  %s2863_s8 = inlined_call_operand.vmem [shape: f32[1,128], index: 8, kind: input, shape index: {}]   ;;  %s2864_s9 = inlined_call_operand.vmem [shape: f32[1,128], index: 9, kind: input, shape index: {}]   ;;  %s2865_s10 = inlined_call_operand.vmem [shape: f32[1,128], index: 10, kind: input, shape index: {}]   ;;  %s2866_s11 = inlined_call_operand.vmem [shape: f32[1,128], index: 11, kind: input, shape index: {}]   ;;  %s2867_s12 = inlined_call_operand.vmem [shape: bf16[16,32], index: 12, kind: input, shape index: {}]   ;;  %s2868_s13 = inlined_call_operand.vmem [shape: bf16[32,32], index: 13, kind: input, shape index: {}]   ;;  %s2869_s14 = inlined_call_operand.vmem [shape: bf16[128,16], index: 14, kind: input, shape index: {}]   ;;  %s2870_s15 = inlined_call_operand.vmem [shape: f32[128,1], index: 15, kind: input, shape index: {}]   ;;  %s2871_s16 = inlined_call_operand.vmem [shape: f32[128,1], index: 16, kind: input, shape index: {}]   ;;  %s2872_s17 = inlined_call_operand.vmem [shape: f32[128,1], index: 17, kind: input, shape index: {}]   ;;  %s2873_s18 = inlined_call_operand.vmem [shape: f32[128,1], index: 18, kind: input, shape index: {}]   ;;  %s2874_s19 = inlined_call_operand.vmem [shape: bf16[16,128], index: 19, kind: input, shape index: {}]   ;;  %s2875_s20 = inlined_call_operand.vmem [shape: f32[16,1], index: 20, kind: input, shape index: {}]   ;;  %s2876_s21 = inlined_call_operand.vmem [shape: f32[16,1], index: 21, kind: input, shape index: {}]   ;;  %s2877_s22 = inlined_call_operand.vmem [shape: f32[16,1], index: 22, kind: input, shape index: {}]   ;;  %s2878_s23 = inlined_call_operand.vmem [shape: f32[16,1], index: 23, kind: input, shape index: {}]   ;;  %s2879_s24 = inlined_call_operand.hbm [shape: f32[16,32], index: 24, kind: output, shape index: {}]  }
   0x1   :  { %2882 = sst [smem:[#allocation5_spill]] %s2855_s0 }
   0x2   :  { %2883 = sst [smem:[#allocation6_spill]] %s2856_s1 }
   0x3   :  { %2884 = sst [smem:[#allocation7_spill]] %s2857_s2 }
   0x4   :  { %2885 = sst [smem:[#allocation8_spill]] %s2858_s3 }
   0x5   :  { %2886 = sst [smem:[#allocation9_spill]] %s2859_s4 }
   0x6   :  { %2887 = sst [smem:[#allocation10_spill]] %s2860_s5 }
   0x7   :  { %2888 = sst [smem:[#allocation11_spill]] %s2861_s6 }
   0x8   :  { %2889 = sst [smem:[#allocation12_spill]] %s2862_s7 }
   0x9   :  { %2890 = sst [smem:[#allocation13_spill]] %s2863_s8 }
   0xa   :  { %v1853_v0 = vld [vmem:[%s2867_s12] sm:$0xff]  ;;  %vm177_vm0 = vcmask 130048  }
   0xb   :  { %v1845_v1 = vld [vmem:[%s2869_s14] sm:$0xff]  ;;  %503 = vmatpush.bf16.msra.mxu1 %v1853_v0 }
   0xc   :  { %29 = vsyncpa [#allocation3], 0  ;;  %v1846_v2 = vld [vmem:[%s2869_s14 + $0x8] sm:$0xff]  ;;  %v1847_v3 = vld [vmem:[%s2869_s14 + $0x10] sm:$0xff]  ;;  %v1940_v6 = vmov 0   ;;  %vm661_vm1 = vcmask 261120  }
   0xd   :  { %v1848_v4 = vld [vmem:[%s2869_s14 + $0x18] sm:$0xff]  ;;  %v553_v5 = vld [vmem:[%s2870_s15] sm:$0xff]  ;;  %1861 = vset.pattern.permute.xlu0 %v1940_v6  ;;  %1863 = vset.pattern.permute.xlu2 %v1940_v6  ;;  %v554_v7 = vld [vmem:[%s2870_s15 + $0x8] sm:$0xff]  ;;  %s2891_s6 = sld [smem:[#allocation7_spill]]  ;;  %s1944_s1 = smov 128  }
   0xe   :  { %1789 = vmatmul.msk.bf16.vlgmr.msra.gmra.mxu1 %vm177_vm0, %v1845_v1  ;;  %571 = vperm.xlu0 %1861, %v553_v5   ;;  %v1849_v8 = vld [vmem:[%s2869_s14 + $0x20] sm:$0xff]  ;;  %v562_v9 = vld [vmem:[%s2870_s15 + $0x48] sm:$0xff]  ;;  %v564_v10 = vld [vmem:[%s2870_s15 + $0x58] sm:$0xff]  ;;  %s2892_s4 = sld [smem:[#allocation5_spill]]  ;;  %s1945_s5 = smov 8  }
   0xf   :  { %1862 = vset.pattern.permute.xlu1 %v1940_v6  ;;  %v1850_v11 = vld [vmem:[%s2869_s14 + $0x28] sm:$0xff]  ;;  %v568_v12 = vld [vmem:[%s2870_s15 + $0x78] sm:$0xff]  ;;  %v1851_v13 = vld [vmem:[%s2869_s14 + $0x30] sm:$0xff]  ;;  %s2899_s29 = sld [smem:[#allocation9_spill]] }
  0x10   :  { %v557_v14 = vld [vmem:[%s2870_s15 + $0x20] sm:$0xff]  ;;  %v555_v16 = vld [vmem:[%s2870_s15 + $0x10] sm:$0xff]  ;;  %v1844_v17 = vld [vmem:[%s2868_s13 + $0x8] sm:$0xff]  ;;  %s2900_s25 = sld [smem:[#allocation12_spill]] }
  0x11   :  { %v767_v15 = vld [vmem:[%s2873_s18] sm:$0xff]  ;;  %591 = vperm.xlu2 %1863, %v557_v14   ;;  %581 = vperm.xlu1 %1862, %v555_v16   ;;  %v558_v19 = vld [vmem:[%s2870_s15 + $0x28] sm:$0xff]  ;;  %v769_v20 = vld [vmem:[%s2873_s18 + $0x10] sm:$0xff] }
  0x12   :  { %692 = vmatpush.bf16.msra.mxu3 %v1844_v17  ;;  %1484 = vmatpush.bf16.msra.mxu0 %v1844_v17  ;;  %v1843_v18 = vld [vmem:[%s2868_s13] sm:$0xff]  ;;  %v556_v21 = vld [vmem:[%s2870_s15 + $0x18] sm:$0xff]  ;;  %v559_v23 = vld [vmem:[%s2870_s15 + $0x30] sm:$0xff] }
  0x13   :  { %v1852_v22 = vld [vmem:[%s2869_s14 + $0x38] sm:$0xff]  ;;  %v771_v24 = vld [vmem:[%s2873_s18 + $0x20] sm:$0xff]  ;;  %v757_v27 = vld [vmem:[%s2872_s17 + $0x30] sm:$0xff]  ;;  %s2893_s14 = sld [smem:[#allocation6_spill]] }
  0x14   :  { %v561_v25 = vld [vmem:[%s2870_s15 + $0x40] sm:$0xff]  ;;  %v560_v26 = vld [vmem:[%s2870_s15 + $0x38] sm:$0xff]  ;;  %v563_v28 = vld [vmem:[%s2870_s15 + $0x50] sm:$0xff] }
  0x15   :  { %v565_v30 = vld [vmem:[%s2870_s15 + $0x60] sm:$0xff]  ;;  %v758_v31 = vld [vmem:[%s2872_s17 + $0x38] sm:$0xff]  ;;  %v567_v32 = vld [vmem:[%s2870_s15 + $0x70] sm:$0xff] }
  0x16   :  { %576 = vperm.xlu0 %1861, %v554_v7   ;;  %693 = vmatpush.bf16.msra.mxu3 %v1843_v18  ;;  %v566_v34 = vld [vmem:[%s2870_s15 + $0x68] sm:$0xff]  ;;  %v774_v36 = vld [vmem:[%s2873_s18 + $0x38] sm:$0xff]  ;;  %v751_v37 = vld [vmem:[%s2872_s17] sm:$0xff] }
  0x17   :  { %1485 = vmatpush.bf16.msra.mxu0 %v1843_v18  ;;  %v768_v39 = vld [vmem:[%s2873_s18 + $0x8] sm:$0xff]  ;;  %v759_v40 = vld [vmem:[%s2872_s17 + $0x40] sm:$0xff]  ;;  %v754_v43 = vld [vmem:[%s2872_s17 + $0x18] sm:$0xff] }
  0x18   :  { %v752_v41 = vld [vmem:[%s2872_s17 + $0x8] sm:$0xff]  ;;  %v753_v45 = vld [vmem:[%s2872_s17 + $0x10] sm:$0xff]  ;;  %v755_v47 = vld [vmem:[%s2872_s17 + $0x20] sm:$0xff] }
  0x19   :  { %596 = vperm.xlu2 %1863, %v558_v19   ;;  %586 = vperm.xlu1 %1862, %v556_v21   ;;  %v770_v48 = vld [vmem:[%s2873_s18 + $0x18] sm:$0xff]  ;;  %v756_v50 = vld [vmem:[%s2872_s17 + $0x28] sm:$0xff]  ;;  %v773_v52 = vld [vmem:[%s2873_s18 + $0x30] sm:$0xff] }
  0x1a   :  { %v772_v54 = vld [vmem:[%s2873_s18 + $0x28] sm:$0xff] }
  0x1e   :  { %1790 = vmatmul.msk.bf16.gmra.mxu1 %vm177_vm0, %v1846_v2  ;;  %616 = vperm.xlu0 %1861, %v562_v9  }
  0x21   :  { %601 = vperm.xlu2 %1863, %v559_v23   ;;  %611 = vperm.xlu1 %1862, %v561_v25  }
  0x26   :  { %626 = vperm.xlu0 %1861, %v564_v10  }
  0x29   :  { %606 = vperm.xlu2 %1863, %v560_v26   ;;  %621 = vperm.xlu1 %1862, %v563_v28  }
  0x2e   :  { %1791 = vmatmul.msk.bf16.gmra.mxu1 %vm177_vm0, %v1847_v3  ;;  %646 = vperm.xlu0 %1861, %v568_v12  }
  0x31   :  { %631 = vperm.xlu2 %1863, %v565_v30   ;;  %641 = vperm.xlu1 %1862, %v567_v32  }
  0x36   :  { %1336 = vperm.xlu0 %1861, %v767_v15  }
  0x39   :  { %636 = vperm.xlu2 %1863, %v566_v34   ;;  %1048 = vperm.xlu1 %1862, %v751_v37  }
  0x3e   :  { %1792 = vmatmul.msk.bf16.gmra.mxu1 %vm177_vm0, %v1848_v4  ;;  %1346 = vperm.xlu0 %1861, %v769_v20  }
  0x41   :  { %1341 = vperm.xlu2 %1863, %v768_v39   ;;  %1053 = vperm.xlu1 %1862, %v752_v41  }
  0x46   :  { %1356 = vperm.xlu0 %1861, %v771_v24  }
  0x49   :  { %1063 = vperm.xlu2 %1863, %v754_v43   ;;  %1058 = vperm.xlu1 %1862, %v753_v45  }
  0x4e   :  { %1793 = vmatmul.msk.bf16.gmra.mxu1 %vm177_vm0, %v1849_v8  ;;  %1078 = vperm.xlu0 %1861, %v757_v27  }
  0x51   :  { %1068 = vperm.xlu2 %1863, %v755_v47   ;;  %1351 = vperm.xlu1 %1862, %v770_v48  }
  0x56   :  { %1083 = vperm.xlu0 %1861, %v758_v31  }
  0x59   :  { %1073 = vperm.xlu2 %1863, %v756_v50   ;;  %1366 = vperm.xlu1 %1862, %v773_v52  }
  0x5e   :  { %1794 = vmatmul.msk.bf16.gmra.mxu1 %vm177_vm0, %v1850_v11  ;;  %1371 = vperm.xlu0 %1861, %v774_v36  }
  0x61   :  { %1361 = vperm.xlu2 %1863, %v772_v54  }
  0x66   :  { %1088 = vperm.xlu0 %1861, %v759_v40  }
  0x6b   :  { %v592_v20 = vpop.permute.xlu2 %591 }
  0x6e   :  { %1795 = vmatmul.msk.bf16.gmra.mxu1 %vm177_vm0, %v1851_v13 }
  0x73   :  { %v597_v26 = vpop.permute.xlu2 %596 }
  0x7b   :  { %v602_v31 = vpop.permute.xlu2 %601 }
  0x7e   :  { %1796 = vmatmul.msk.bf16.gmra.mxu1 %vm177_vm0, %v1852_v22 }
  0x80   :  { %v572_v5 = vpop.permute.xlu0 %571 }
  0x83   :  { %v582_v13 = vpop.permute.xlu1 %581  ;;  %v607_v36 = vpop.permute.xlu2 %606 }
  0x88   :  { %v577_v9 = vpop.permute.xlu0 %576 }
  0x8b   :  { %v505_v29 = vpop.f32.mrf.mxu1  ;;  %v587_v17 = vpop.permute.xlu1 %586 }
  0x8c   :  { %v632_v45 = vpop.permute.xlu2 %631 }
  0x90   :  { %v617_v23 = vpop.permute.xlu0 %616 }
  0x93   :  { %v507_v33 = vpop.f32.mrf.mxu1  ;;  %v612_v40 = vpop.permute.xlu1 %611 }
  0x94   :  { %v545_v35 = vpack.c.bf16 %v507_v33, %v505_v29  ;;  %v637_v52 = vpop.permute.xlu2 %636 }
  0x96   :  { %1805 = vmatmul.msk.bf16.vlgmr.msra.gmra.mxu3 %vm661_vm1, %v545_v35 }
  0x98   :  { %v627_v29 = vpop.permute.xlu0 %626 }
  0x9b   :  { %v510_v38 = vpop.f32.mrf.mxu1 }
  0xa0   :  { %v647_v35 = vpop.permute.xlu0 %646 }
  0xa3   :  { %v512_v42 = vpop.f32.mrf.mxu1 }
  0xa4   :  { %v546_v44 = vpack.c.bf16 %v512_v42, %v510_v38 }
  0xa6   :  { %1806 = vmatmul.msk.bf16.gmra.mxu3 %vm661_vm1, %v546_v44 }
  0xa8   :  { %v2251_v41 = vpop.permute.xlu0 %1336 }
  0xab   :  { %v515_v46 = vpop.f32.mrf.mxu1 }
  0xb0   :  { %v2257_v48 = vpop.permute.xlu0 %1346 }
  0xb3   :  { %v517_v49 = vpop.f32.mrf.mxu1 }
  0xb4   :  { %v547_v51 = vpack.c.bf16 %v517_v49, %v515_v46  ;;  %v622_v46 = vpop.permute.xlu1 %621 }
  0xb6   :  { %1807 = vmatmul.msk.bf16.gmra.mxu3 %vm661_vm1, %v547_v51 }
  0xbb   :  { %v520_v53 = vpop.f32.mrf.mxu1 }
  0xbc   :  { %v642_v54 = vpop.permute.xlu1 %641 }
  0xc3   :  { %v522_v55 = vpop.f32.mrf.mxu1 }
  0xc4   :  { %v548_v56 = vpack.c.bf16 %v522_v55, %v520_v53  ;;  %v2265_v55 = vpop.permute.xlu0 %1356 }
  0xc6   :  { %1808 = vmatmul.msk.bf16.gmra.mxu3 %vm661_vm1, %v548_v56 }
  0xcb   :  { %v525_v57 = vpop.f32.mrf.mxu1 }
  0xd3   :  { %v527_v58 = vpop.f32.mrf.mxu1 }
  0xd4   :  { %v549_v59 = vpack.c.bf16 %v527_v58, %v525_v57 }
  0xd6   :  { %1809 = vmatmul.msk.bf16.gmra.mxu3 %vm661_vm1, %v549_v59  ;;  %v2271_v59 = vpop.permute.xlu2 %1341 }
  0xdb   :  { %v530_v60 = vpop.f32.mrf.mxu1 }
  0xe3   :  { %v532_v61 = vpop.f32.mrf.mxu1 }
  0xe4   :  { %v550_v62 = vpack.c.bf16 %v532_v61, %v530_v60  ;;  %v2275_v61 = vpop.permute.xlu1 %1048 }
  0xe6   :  { %1810 = vmatmul.msk.bf16.gmra.mxu3 %vm661_vm1, %v550_v62  ;;  %v2277_v62 = vpop.permute.xlu0 %1078 }
  0xeb   :  { %v535_v63 = vpop.f32.mrf.mxu1 }
  0xf3   :  { %v537_v0 = vpop.f32.mrf.mxu1 }
  0xf4   :  { %v551_v1 = vpack.c.bf16 %v537_v0, %v535_v63 }
  0xf6   :  { %1811 = vmatmul.msk.bf16.gmra.mxu3 %vm661_vm1, %v551_v1 }
  0xfb   :  { %v540_v2 = vpop.f32.mrf.mxu1 }
 0x103   :  { %v542_v3 = vpop.f32.mrf.mxu1 }
 0x104   :  { %v552_v4 = vpack.c.bf16 %v542_v3, %v540_v2  ;;  %v2283_v2 = vpop.permute.xlu2 %1063  ;;  %v2285_v3 = vpop.permute.xlu1 %1053 }
 0x106   :  { %1812 = vmatmul.msk.bf16.gmra.mxu3 %vm661_vm1, %v552_v4  ;;  %v2287_v4 = vpop.permute.xlu0 %1083 }
 0x119   :  { %v695_v6 = vpop.f32.mrf.mxu3 }
 0x11a   :  { %v2219_v7 = vadd.f32 %v695_v6, %v572_v5 }
 0x11c   :  { %v783_v8 = vsel %vm661_vm1, %v2219_v7, 0.0 }
 0x11d   :  { %784 = vadd.xlane.f32.xlu0 %v783_v8  ;;  %v1941_v8 = vmov 32.0  }
 0x11e   :  { %1870 = vrcp.f32 %v1941_v8  ;;  %v1831_v8 = vld [vmem:[%s2891_s6 + $0x20] sm:$0xff] }
 0x121   :  { %v697_v10 = vpop.f32.mrf.mxu3 }
 0x122   :  { %v2223_v11 = vadd.f32 %v697_v10, %v577_v9  ;;  %v2293_v10 = vpop.permute.xlu2 %1068 }
 0x124   :  { %v786_v12 = vsel %vm661_vm1, %v2223_v11, 0.0 }
 0x125   :  { %787 = vadd.xlane.f32.xlu1 %v786_v12  ;;  %v1871_v12 = vpop.eup %1870 }
 0x126   :  { %vm836_vm2 = vweird.f32 %v1871_v12 }
 0x129   :  { %v700_v14 = vpop.f32.mrf.mxu3 }
 0x12a   :  { %v2227_v15 = vadd.f32 %v700_v14, %v582_v13  ;;  %v2295_v13 = vpop.permute.xlu1 %1058 }
 0x12c   :  { %v789_v16 = vsel %vm661_vm1, %v2227_v15, 0.0 }
 0x12d   :  { %790 = vadd.xlane.f32.xlu2 %v789_v16  ;;  %v2297_v16 = vpop.permute.xlu0 %1371 }
 0x131   :  { %v702_v18 = vpop.f32.mrf.mxu3 }
 0x132   :  { %v2231_v19 = vadd.f32 %v702_v18, %v587_v17 }
 0x134   :  { %v792_v21 = vsel %vm661_vm1, %v2231_v19, 0.0 }
 0x135   :  { %793 = vadd.xlane.f32.xlu0 %v792_v21 }
 0x139   :  { %v705_v22 = vpop.f32.mrf.mxu3 }
 0x13a   :  { %v2235_v24 = vadd.f32 %v705_v22, %v592_v20  ;;  %v832_v20 = vmul.f32 32.0, %v1871_v12 }
 0x13c   :  { %v795_v25 = vsel %vm661_vm1, %v2235_v24, 0.0  ;;  %v833_v21 = vsub.f32 1.0, %v832_v20  ;;  %v1830_v20 = vld [vmem:[%s2891_s6 + $0x18] sm:$0xff] }
 0x13d   :  { %796 = vadd.xlane.f32.xlu2 %v795_v25 }
 0x141   :  { %v707_v27 = vpop.f32.mrf.mxu3 }
 0x142   :  { %v2239_v28 = vadd.f32 %v707_v27, %v597_v26  ;;  %v2307_v26 = vpop.permute.xlu1 %1351  ;;  %v2309_v27 = vpop.permute.xlu0 %1088 }
 0x144   :  { %v798_v30 = vsel %vm661_vm1, %v2239_v28, 0.0 }
 0x145   :  { %799 = vadd.xlane.f32.xlu2 %v798_v30 }
 0x149   :  { %v710_v32 = vpop.f32.mrf.mxu3 }
 0x14a   :  { %v2243_v33 = vadd.f32 %v710_v32, %v602_v31 }
 0x14c   :  { %v801_v34 = vsel %vm661_vm1, %v2243_v33, 0.0 }
 0x14d   :  { %802 = vadd.xlane.f32.xlu0 %v801_v34 }
 0x151   :  { %v712_v37 = vpop.f32.mrf.mxu3 }
 0x152   :  { %v2247_v38 = vadd.f32 %v712_v37, %v607_v36  ;;  %v2317_v37 = vpop.permute.xlu1 %1366 }
 0x154   :  { %v804_v39 = vsel %vm661_vm1, %v2247_v38, 0.0 }
 0x155   :  { %805 = vadd.xlane.f32.xlu1 %v804_v39  ;;  %v735_v39 = vld [vmem:[%s2871_s16] sm:$0xff] }
 0x159   :  { %v715_v42 = vpop.f32.mrf.mxu3 }
 0x15a   :  { %v2253_v43 = vadd.f32 %v715_v42, %v612_v40  ;;  %v1834_v42 = vld [vmem:[%s2891_s6 + $0x38] sm:$0xff] }
 0x15b   :  { %153 = vmatpush.bf16.msra.mxu2 %v1834_v42 }
 0x15c   :  { %v807_v44 = vsel %vm661_vm1, %v2253_v43, 0.0 }
 0x15d   :  { %808 = vadd.xlane.f32.xlu2 %v807_v44 }
 0x161   :  { %v717_v47 = vpop.f32.mrf.mxu3 }
 0x162   :  { %v2259_v49 = vadd.f32 %v717_v47, %v617_v23  ;;  %v2303_v23 = vpop.permute.xlu2 %1073  ;;  %v1833_v47 = vld [vmem:[%s2891_s6 + $0x30] sm:$0xff] }
 0x163   :  { %154 = vmatpush.bf16.msra.mxu2 %v1833_v47 }
 0x164   :  { %v810_v50 = vsel %vm661_vm1, %v2259_v49, 0.0 }
 0x165   :  { %811 = vadd.xlane.f32.xlu1 %v810_v50 }
 0x169   :  { %v720_v51 = vpop.f32.mrf.mxu3 }
 0x16a   :  { %v2263_v53 = vadd.f32 %v720_v51, %v622_v46  ;;  %v2313_v32 = vpop.permute.xlu2 %1361  ;;  %v737_v51 = vld [vmem:[%s2871_s16 + $0x10] sm:$0xff] }
 0x16c   :  { %v813_v56 = vsel %vm661_vm1, %v2263_v53, 0.0 }
 0x16d   :  { %814 = vadd.xlane.f32.xlu1 %v813_v56  ;;  %v736_v56 = vld [vmem:[%s2871_s16 + $0x8] sm:$0xff] }
 0x171   :  { %v722_v57 = vpop.f32.mrf.mxu3 }
 0x172   :  { %v2269_v58 = vadd.f32 %v722_v57, %v627_v29  ;;  %v834_v29 = vmul.f32 %v1871_v12, %v833_v21  ;;  %v1829_v21 = vld [vmem:[%s2891_s6 + $0x10] sm:$0xff] }
 0x174   :  { %v816_v60 = vsel %vm661_vm1, %v2269_v58, 0.0  ;;  %v835_v31 = vadd.f32 %v1871_v12, %v834_v29 }
 0x175   :  { %817 = vadd.xlane.f32.xlu2 %v816_v60 }
 0x176   :  { %v2315_v34 = vsel %vm836_vm2, %v1871_v12, %v835_v31 }
 0x179   :  { %v725_v63 = vpop.f32.mrf.mxu3 }
 0x17a   :  { %v2279_v0 = vadd.f32 %v725_v63, %v632_v45 }
 0x17c   :  { %v819_v1 = vsel %vm661_vm1, %v2279_v0, 0.0 }
 0x17d   :  { %820 = vadd.xlane.f32.xlu2 %v819_v1  ;;  %v1832_v1 = vld [vmem:[%s2891_s6 + $0x28] sm:$0xff] }
 0x17e   :  { %155 = vmatpush.bf16.msra.mxu2 %v1832_v1 }
 0x181   :  { %v727_v5 = vpop.f32.mrf.mxu3 }
 0x182   :  { %v2289_v6 = vadd.f32 %v727_v5, %v637_v52  ;;  %v738_v52 = vld [vmem:[%s2871_s16 + $0x18] sm:$0xff]  ;;  %156 = vmatpush.bf16.msra.mxu2 %v1831_v8  ;;  %v745_v8 = vld [vmem:[%s2871_s16 + $0x50] sm:$0xff] }
 0x184   :  { %v822_v9 = vsel %vm661_vm1, %v2289_v6, 0.0 }
 0x185   :  { %823 = vadd.xlane.f32.xlu0 %v822_v9  ;;  %v739_v9 = vld [vmem:[%s2871_s16 + $0x20] sm:$0xff] }
 0x186   :  { %157 = vmatpush.bf16.msra.mxu2 %v1830_v20 }
 0x189   :  { %v730_v14 = vpop.f32.mrf.mxu3 }
 0x18a   :  { %v2299_v17 = vadd.f32 %v730_v14, %v642_v54  ;;  %158 = vmatpush.bf16.msra.mxu2 %v1829_v21 }
 0x18c   :  { %v825_v18 = vsel %vm661_vm1, %v2299_v17, 0.0 }
 0x18d   :  { %826 = vadd.xlane.f32.xlu2 %v825_v18 }
 0x190   :  { %v785_v36 = vpop.xlane.xlu0 %784 }
 0x191   :  { %v732_v22 = vpop.f32.mrf.mxu3 }
 0x192   :  { %v2305_v25 = vadd.f32 %v732_v22, %v647_v35  ;;  %v838_v35 = vmul.f32 %v2315_v34, %v785_v36  ;;  %v740_v22 = vld [vmem:[%s2871_s16 + $0x28] sm:$0xff] }
 0x193   :  { %v1828_v36 = vld [vmem:[%s2891_s6 + $0x8] sm:$0xff] }
 0x194   :  { %v828_v30 = vsel %vm661_vm1, %v2305_v25, 0.0  ;;  %v854_v40 = vmul.f32 %v838_v35, %v735_v39  ;;  %159 = vmatpush.bf16.msra.mxu2 %v1828_v36  ;;  %v1827_v35 = vld [vmem:[%s2891_s6] sm:$0xff]  ;;  %v741_v39 = vld [vmem:[%s2871_s16 + $0x30] sm:$0xff] }
 0x195   :  { %829 = vadd.xlane.f32.xlu1 %v828_v30 }
 0x198   :  { %v788_v45 = vpop.xlane.xlu1 %787  ;;  %160 = vmatpush.bf16.msra.mxu2 %v1827_v35  ;;  %v748_v35 = vld [vmem:[%s2871_s16 + $0x68] sm:$0xff] }
 0x199   :  { %v839_v50 = vmul.f32 %v2315_v34, %v788_v45 }
 0x19b   :  { %v855_v5 = vmul.f32 %v839_v50, %v736_v56 }
 0x1a0   :  { %v791_v44 = vpop.xlane.xlu2 %790 }
 0x1a1   :  { %v840_v46 = vmul.f32 %v2315_v34, %v791_v44  ;;  %v1826_v44 = vld [vmem:[%s2892_s4] sm:$0xff]  ;;  %s2902_s4 = sld [smem:[#allocation11_spill]] }
 0x1a2   :  { %161 = vmatmul.bf16.vlgmr.msra.gmra.mxu2 %v1826_v44  ;;  %v749_v44 = vld [vmem:[%s2871_s16 + $0x70] sm:$0xff] }
 0x1a3   :  { %v856_v60 = vmul.f32 %v840_v46, %v737_v51  ;;  %v742_v46 = vld [vmem:[%s2871_s16 + $0x38] sm:$0xff] }
 0x1a5   :  { %872 = vperm.xlu2 %1863, %v854_v40  }
 0x1a8   :  { %v794_v54 = vpop.xlane.xlu0 %793 }
 0x1a9   :  { %v841_v57 = vmul.f32 %v2315_v34, %v794_v54 }
 0x1ab   :  { %v857_v63 = vmul.f32 %v841_v57, %v738_v52  ;;  %v743_v52 = vld [vmem:[%s2871_s16 + $0x40] sm:$0xff] }
 0x1ad   :  { %887 = vperm.xlu0 %1861, %v857_v63   ;;  %882 = vperm.xlu2 %1863, %v856_v60   ;;  %v744_v60 = vld [vmem:[%s2871_s16 + $0x48] sm:$0xff] }
 0x1ae   :  { %877 = vperm.xlu1 %1862, %v855_v5  }
 0x1b0   :  { %v797_v12 = vpop.xlane.xlu2 %796 }
 0x1b1   :  { %v842_v14 = vmul.f32 %v2315_v34, %v797_v12 }
 0x1b3   :  { %v858_v18 = vmul.f32 %v842_v14, %v739_v9 }
 0x1b5   :  { %892 = vperm.xlu0 %1861, %v858_v18   ;;  %v746_v18 = vld [vmem:[%s2871_s16 + $0x58] sm:$0xff] }
 0x1b8   :  { %v800_v29 = vpop.xlane.xlu2 %799 }
 0x1b9   :  { %v843_v30 = vmul.f32 %v2315_v34, %v800_v29  ;;  %v747_v29 = vld [vmem:[%s2871_s16 + $0x60] sm:$0xff] }
 0x1bb   :  { %v859_v31 = vmul.f32 %v843_v30, %v740_v22 }
 0x1bd   :  { %897 = vperm.xlu0 %1861, %v859_v31  }
 0x1c0   :  { %v803_v40 = vpop.xlane.xlu0 %802 }
 0x1c1   :  { %v844_v42 = vmul.f32 %v2315_v34, %v803_v40 }
 0x1c3   :  { %v860_v45 = vmul.f32 %v844_v42, %v741_v39 }
 0x1c5   :  { %902 = vperm.xlu2 %1863, %v860_v45  }
 0x1c8   :  { %v806_v47 = vpop.xlane.xlu1 %805 }
 0x1c9   :  { %v845_v50 = vmul.f32 %v2315_v34, %v806_v47 }
 0x1cb   :  { %v861_v51 = vmul.f32 %v845_v50, %v742_v46  ;;  %v761_v50 = vld [vmem:[%s2872_s17 + $0x50] sm:$0xff] }
 0x1cd   :  { %907 = vperm.xlu1 %1862, %v861_v51  }
 0x1d0   :  { %v809_v54 = vpop.xlane.xlu2 %808 }
 0x1d1   :  { %v846_v56 = vmul.f32 %v2315_v34, %v809_v54  ;;  %v762_v54 = vld [vmem:[%s2872_s17 + $0x58] sm:$0xff] }
 0x1d3   :  { %v862_v57 = vmul.f32 %v846_v56, %v743_v52 }
 0x1d5   :  { %912 = vperm.xlu1 %1862, %v862_v57  }
 0x1d8   :  { %v812_v63 = vpop.xlane.xlu1 %811 }
 0x1d9   :  { %v847_v1 = vmul.f32 %v2315_v34, %v812_v63 }
 0x1db   :  { %v863_v5 = vmul.f32 %v847_v1, %v744_v60 }
 0x1dd   :  { %917 = vperm.xlu0 %1861, %v863_v5  }
 0x1e0   :  { %v815_v9 = vpop.xlane.xlu1 %814 }
 0x1e1   :  { %v848_v12 = vmul.f32 %v2315_v34, %v815_v9 }
 0x1e3   :  { %v864_v14 = vmul.f32 %v848_v12, %v745_v8  ;;  %v750_v12 = vld [vmem:[%s2871_s16 + $0x78] sm:$0xff] }
 0x1e5   :  { %922 = vperm.xlu1 %1862, %v864_v14  }
 0x1e8   :  { %v818_v20 = vpop.xlane.xlu2 %817 }
 0x1e9   :  { %v849_v21 = vmul.f32 %v2315_v34, %v818_v20 }
 0x1eb   :  { %v865_v22 = vmul.f32 %v849_v21, %v746_v18 }
 0x1ed   :  { %927 = vperm.xlu0 %1861, %v865_v22  }
 0x1f0   :  { %v821_v30 = vpop.xlane.xlu2 %820 }
 0x1f1   :  { %v850_v31 = vmul.f32 %v2315_v34, %v821_v30 }
 0x1f3   :  { %v866_v36 = vmul.f32 %v850_v31, %v747_v29 }
 0x1f5   :  { %932 = vperm.xlu2 %1863, %v866_v36  }
 0x1f8   :  { %v824_v39 = vpop.xlane.xlu0 %823 }
 0x1f9   :  { %v851_v40 = vmul.f32 %v2315_v34, %v824_v39 }
 0x1fb   :  { %v867_v42 = vmul.f32 %v851_v40, %v748_v35 }
 0x1fd   :  { %937 = vperm.xlu2 %1863, %v867_v42   ;;  %v760_v42 = vld [vmem:[%s2872_s17 + $0x48] sm:$0xff] }
 0x200   :  { %v827_v45 = vpop.xlane.xlu2 %826 }
 0x201   :  { %v852_v46 = vmul.f32 %v2315_v34, %v827_v45 }
 0x203   :  { %v868_v47 = vmul.f32 %v852_v46, %v749_v44 }
 0x205   :  { %942 = vperm.xlu1 %1862, %v868_v47  }
 0x208   :  { %v873_v51 = vpop.permute.xlu2 %872  ;;  %v830_v60 = vpop.xlane.xlu1 %829 }
 0x209   :  { %v2410_v52 = vsub.f32 %v2219_v7, %v873_v51  ;;  %v853_v8 = vmul.f32 %v2315_v34, %v830_v60 }
 0x20b   :  { %v966_v56 = vmul.f32 %v2410_v52, %v2410_v52  ;;  %v869_v18 = vmul.f32 %v853_v8, %v750_v12 }
 0x20d   :  { %1098 = vperm.xlu1 %1862, %v761_v50   ;;  %v982_v57 = vsel %vm661_vm1, %v966_v56, 0.0  ;;  %v2457_v50 = vld [vmem:[%s2893_s14] sm:$0xff]  ;;  %s2896_s14 = sld [smem:[#allocation8_spill]] }
 0x210   :  { %v883_v40 = vpop.permute.xlu2 %882 }
 0x211   :  { %v2449_v44 = vsub.f32 %v2227_v15, %v883_v40 }
 0x215   :  { %1103 = vperm.xlu1 %1862, %v762_v54  }
 0x217   :  { %983 = vadd.xlane.f32.xlu0 %v982_v57 }
 0x21f   :  { %v888_v63 = vpop.permute.xlu0 %887 }
 0x220   :  { %v878_v1 = vpop.permute.xlu1 %877  ;;  %v2460_v51 = vsub.f32 %v2231_v19, %v888_v63 }
 0x221   :  { %v2419_v5 = vsub.f32 %v2223_v11, %v878_v1 }
 0x222   :  { %v969_v57 = vmul.f32 %v2460_v51, %v2460_v51 }
 0x223   :  { %v967_v7 = vmul.f32 %v2419_v5, %v2419_v5 }
 0x224   :  { %v991_v19 = vsel %vm661_vm1, %v969_v57, 0.0 }
 0x225   :  { %v985_v9 = vsel %vm661_vm1, %v967_v7, 0.0  ;;  %v162_v39 = vpop.f32.mrf.mxu2 }
 0x226   :  { %986 = vadd.xlane.f32.xlu2 %v985_v9 }
 0x227   :  { %v893_v14 = vpop.permute.xlu0 %892 }
 0x228   :  { %v2469_v1 = vsub.f32 %v2235_v24, %v893_v14 }
 0x22a   :  { %v970_v63 = vmul.f32 %v2469_v1, %v2469_v1 }
 0x22b   :  { %947 = vperm.xlu0 %1861, %v869_v18  }
 0x22c   :  { %v994_v8 = vsel %vm661_vm1, %v970_v63, 0.0 }
 0x22d   :  { %v164_v46 = vpop.f32.mrf.mxu2 }
 0x22e   :  { %v167_v47 = vpack.c.bf16 %v164_v46, %v162_v39  ;;  %v776_v39 = vld [vmem:[%s2873_s18 + $0x48] sm:$0xff] }
 0x22f   :  { %v898_v20 = vpop.permute.xlu0 %897 }
 0x230   :  { %v2429_v21 = vsub.f32 %v2239_v28, %v898_v20  ;;  %188 = vmatpush.bf16.msrb.mxu2 %v167_v47  ;;  %v778_v20 = vld [vmem:[%s2873_s18 + $0x58] sm:$0xff] }
 0x232   :  { %v971_v11 = vmul.f32 %v2429_v21, %v2429_v21 }
 0x233   :  { %1719 = vmatmul.msk.bf16.vlgmr.msrb.gmra.mxu2 %vm177_vm0, %v2457_v50 }
 0x234   :  { %v997_v22 = vsel %vm661_vm1, %v971_v11, 0.0 }
 0x235   :  { %998 = vadd.xlane.f32.xlu2 %v997_v22 }
 0x23f   :  { %v908_v29 = vpop.permute.xlu1 %907 }
 0x240   :  { %v2435_v30 = vsub.f32 %v2247_v38, %v908_v29 }
 0x242   :  { %v973_v31 = vmul.f32 %v2435_v30, %v2435_v30 }
 0x244   :  { %v1003_v36 = vsel %vm661_vm1, %v973_v31, 0.0 }
 0x245   :  { %1004 = vadd.xlane.f32.xlu1 %v1003_v36 }
 0x247   :  { %v913_v35 = vpop.permute.xlu1 %912 }
 0x248   :  { %v2441_v28 = vsub.f32 %v2253_v43, %v913_v35  ;;  %v968_v43 = vmul.f32 %v2449_v44, %v2449_v44 }
 0x24a   :  { %v974_v38 = vmul.f32 %v2441_v28, %v2441_v28  ;;  %v988_v15 = vsel %vm661_vm1, %v968_v43, 0.0 }
 0x24c   :  { %v1006_v45 = vsel %vm661_vm1, %v974_v38, 0.0 }
 0x24d   :  { %1093 = vperm.xlu2 %1863, %v760_v42   ;;  %1007 = vadd.xlane.f32.xlu1 %v1006_v45 }
 0x24f   :  { %v918_v9 = vpop.permute.xlu0 %917 }
 0x250   :  { %v2477_v12 = vsub.f32 %v2259_v49, %v918_v9  ;;  %v775_v49 = vld [vmem:[%s2873_s18 + $0x40] sm:$0xff] }
 0x252   :  { %v975_v24 = vmul.f32 %v2477_v12, %v2477_v12 }
 0x254   :  { %v1009_v22 = vsel %vm661_vm1, %v975_v24, 0.0 }
 0x255   :  { %989 = vadd.xlane.f32.xlu0 %v988_v15 }
 0x257   :  { %v923_v54 = vpop.permute.xlu1 %922 }
 0x258   :  { %v960_v56 = vsub.f32 %v2263_v53, %v923_v54  ;;  %v903_v53 = vpop.permute.xlu2 %902 }
 0x25a   :  { %v976_v60 = vmul.f32 %v960_v56, %v960_v56 }
 0x25c   :  { %v1012_v7 = vsel %vm661_vm1, %v976_v60, 0.0 }
 0x25d   :  { %1013 = vadd.xlane.f32.xlu1 %v1012_v7  ;;  %992 = vadd.xlane.f32.xlu0 %v991_v19 }
 0x25f   :  { %v928_v14 = vpop.permute.xlu0 %927 }
 0x260   :  { %v2479_v18 = vpop.permute.xlu2 %932  ;;  %v2487_v11 = vsub.f32 %v2269_v58, %v928_v14 }
 0x262   :  { %v977_v31 = vmul.f32 %v2487_v11, %v2487_v11 }
 0x264   :  { %v1015_v58 = vsel %vm661_vm1, %v977_v31, 0.0 }
 0x265   :  { %995 = vadd.xlane.f32.xlu0 %v994_v8 }
 0x268   :  { %v938_v36 = vpop.permute.xlu2 %937 }
 0x269   :  { %v2496_v35 = vsub.f32 %v2289_v6, %v938_v36 }
 0x26b   :  { %v979_v38 = vmul.f32 %v2496_v35, %v2496_v35 }
 0x26d   :  { %v1021_v6 = vsel %vm661_vm1, %v979_v38, 0.0 }
 0x276   :  { %1010 = vadd.xlane.f32.xlu2 %v1009_v22  ;;  %1391 = vperm.xlu1 %1862, %v778_v20   ;;  %v2521_v20 = vsub.f32 %v2243_v33, %v903_v53 }
 0x277   :  { %v943_v29 = vpop.permute.xlu1 %942 }
 0x278   :  { %v2507_v45 = vsub.f32 %v2299_v17, %v943_v29 }
 0x279   :  { %1376 = vperm.xlu0 %1861, %v775_v49   ;;  %v763_v49 = vld [vmem:[%s2872_s17 + $0x60] sm:$0xff] }
 0x27a   :  { %v980_v43 = vmul.f32 %v2507_v45, %v2507_v45 }
 0x27c   :  { %v1024_v54 = vsel %vm661_vm1, %v980_v43, 0.0 }
 0x27e   :  { %1016 = vadd.xlane.f32.xlu2 %v1015_v58 }
 0x27f   :  { %v1099_v40 = vpop.permute.xlu1 %1098 }
 0x280   :  { %v2502_v42 = vmul.f32 %v1099_v40, %v960_v56 }
 0x281   :  { %1381 = vperm.xlu0 %1861, %v776_v39   ;;  %v1126_v39 = vmul.f32 %v2275_v61, %v2410_v52 }
 0x286   :  { %1022 = vadd.xlane.f32.xlu2 %v1021_v6  ;;  %v765_v6 = vld [vmem:[%s2872_s17 + $0x70] sm:$0xff] }
 0x28a   :  { %v984_v46 = vpop.xlane.xlu0 %983 }
 0x28b   :  { %v1030_v47 = vmul.f32 %v984_v46, %v2315_v34 }
 0x28d   :  { %v1142_v15 = vadd.f32 1e-05, %v1030_v47  ;;  %v1127_v47 = vmul.f32 %v2285_v3, %v2419_v5  ;;  %v1537_v3 = vld [vmem:[%s2875_s20] sm:$0xff] }
 0x28e   :  { %1025 = vadd.xlane.f32.xlu2 %v1024_v54 }
 0x28f   :  { %1872 = vrsqrt.f32 %v1142_v15  ;;  %vm1164_vm4 = vweird.f32 %v1142_v15 }
 0x295   :  { %v1873_v56 = vpop.eup %1872 }
 0x296   :  { %v1159_v57 = vmul.f32 %v1873_v56, %v1142_v15  ;;  %vm1165_vm3 = vweird.f32 %v1873_v56 }
 0x297   :  { %vm1166_vm5 = vmor %vm1164_vm4, %vm1165_vm3 }
 0x298   :  { %v1160_v60 = vmul.f32 %v1873_v56, %v1159_v57 }
 0x299   :  { %v987_v7 = vpop.xlane.xlu2 %986 }
 0x29a   :  { %v1031_v17 = vmul.f32 %v987_v7, %v2315_v34  ;;  %v1161_v63 = vmul.f32 0.5, %v1160_v60 }
 0x29c   :  { %v1143_v19 = vadd.f32 1e-05, %v1031_v17  ;;  %v1162_v14 = vsub.f32 1.5, %v1161_v63 }
 0x29d   :  { %v948_v8 = vpop.permute.xlu0 %947 }
 0x29e   :  { %1874 = vrsqrt.f32 %v1143_v19  ;;  %v2516_v9 = vsub.f32 %v2305_v25, %v948_v8  ;;  %v1163_v31 = vmul.f32 %v1873_v56, %v1162_v14  ;;  %v972_v25 = vmul.f32 %v2521_v20, %v2521_v20 }
 0x29f   :  { %vm1174_vm7 = vweird.f32 %v1143_v19 }
 0x2a0   :  { %v981_v24 = vmul.f32 %v2516_v9, %v2516_v9  ;;  %v1167_v33 = vsel %vm1166_vm5, %v1873_v56, %v1163_v31  ;;  %v1000_v40 = vsel %vm661_vm1, %v972_v25, 0.0  ;;  %v781_v56 = vld [vmem:[%s2873_s18 + $0x70] sm:$0xff] }
 0x2a1   :  { %v1318_v43 = vmul.f32 %v1167_v33, %v1126_v39 }
 0x2a2   :  { %v1027_v22 = vsel %vm661_vm1, %v981_v24, 0.0 }
 0x2a3   :  { %1028 = vadd.xlane.f32.xlu1 %v1027_v22  ;;  %v1414_v61 = vadd.f32 %v2251_v41, %v1318_v43  ;;  %v1538_v41 = vld [vmem:[%s2875_s20 + $0x8] sm:$0xff] }
 0x2a4   :  { %v1875_v29 = vpop.eup %1874 }
 0x2a5   :  { %v1169_v36 = vmul.f32 %v1875_v29, %v1143_v19  ;;  %vm1175_vm6 = vweird.f32 %v1875_v29  ;;  %v1430_v57 = vmax.f32 %v1414_v61, 0.0 }
 0x2a6   :  { %1108 = vperm.xlu2 %1863, %v763_v49   ;;  %vm1176_vm8 = vmor %vm1174_vm7, %vm1175_vm6 }
 0x2a7   :  { %v1170_v58 = vmul.f32 %v1875_v29, %v1169_v36 }
 0x2a8   :  { %v999_v5 = vpop.xlane.xlu2 %998 }
 0x2a9   :  { %v1171_v53 = vmul.f32 0.5, %v1170_v58  ;;  %v1035_v17 = vmul.f32 %v999_v5, %v2315_v34 }
 0x2ab   :  { %v1172_v38 = vsub.f32 1.5, %v1171_v53  ;;  %1001 = vadd.xlane.f32.xlu0 %v1000_v40  ;;  %v1147_v19 = vadd.f32 1e-05, %v1035_v17 }
 0x2ad   :  { %v1173_v46 = vmul.f32 %v1875_v29, %v1172_v38  ;;  %1876 = vrsqrt.f32 %v1147_v19  ;;  %vm1214_vm14 = vweird.f32 %v1147_v19 }
 0x2ae   :  { %1118 = vperm.xlu2 %1863, %v765_v6  }
 0x2af   :  { %v1177_v15 = vsel %vm1176_vm8, %v1875_v29, %v1173_v46 }
 0x2b0   :  { %v1319_v54 = vmul.f32 %v1177_v15, %v1127_v47 }
 0x2b2   :  { %v1415_v52 = vadd.f32 %v2271_v59, %v1319_v54  ;;  %v777_v59 = vld [vmem:[%s2873_s18 + $0x50] sm:$0xff] }
 0x2b3   :  { %v2554_v14 = vpop.eup %1876 }
 0x2b4   :  { %v1431_v60 = vmax.f32 %v1415_v52, 0.0  ;;  %v1209_v29 = vmul.f32 %v2554_v14, %v1147_v19  ;;  %vm1215_vm12 = vweird.f32 %v2554_v14 }
 0x2b5   :  { %vm2583_vm15 = vmor %vm1214_vm14, %vm1215_vm12 }
 0x2b6   :  { %1406 = vperm.xlu2 %1863, %v781_v56   ;;  %v1446_v7 = vpack.c.bf16 %v1431_v60, %v1430_v57  ;;  %v1210_v58 = vmul.f32 %v2554_v14, %v1209_v29  ;;  %v190_v43 = vpop.f32.mrf.mxu2  ;;  %v2562_v56 = vsub.f32 %v2279_v0, %v2479_v18  ;;  %v1128_v57 = vmul.f32 %v2295_v13, %v2449_v44 }
 0x2b8   :  { %1813 = vmatmul.msk.bf16.vlgmr.msra.gmra.mxu0 %vm661_vm1, %v1446_v7  ;;  %v1211_v38 = vmul.f32 0.5, %v1210_v58 }
 0x2ba   :  { %v1212_v54 = vsub.f32 1.5, %v1211_v38 }
 0x2bc   :  { %1541 = vperm.xlu1 %1862, %v1537_v3   ;;  %v1864_v3 = vld [vmem:[%s2896_s14] ss:$0 sm:$0xff] }
 0x2bd   :  { %v2577_v13 = vadd.f32 %v1864_v3, %v190_v43 }
 0x2be   :  { %1546 = vperm.xlu2 %1863, %v1538_v41   ;;  %v1213_v41 = vmul.f32 %v2554_v14, %v1212_v54  ;;  %v192_v18 = vpop.f32.mrf.mxu2 }
 0x2bf   :  { %1386 = vperm.xlu0 %1861, %v777_v59   ;;  %v2579_v44 = vadd.f32 %v1864_v3, %v192_v18  ;;  %v2604_v3 = vpop.permute.xlu2 %1093 }
 0x2c1   :  { %v198_v29 = vadd.f32 %v2579_v44, %v2577_v13 }
 0x2c8   :  { %v990_v63 = vpop.xlane.xlu0 %989 }
 0x2c9   :  { %v1032_v8 = vmul.f32 %v990_v63, %v2315_v34  ;;  %v978_v63 = vmul.f32 %v2562_v56, %v2562_v56 }
 0x2cb   :  { %v1144_v24 = vadd.f32 1e-05, %v1032_v8  ;;  %v1942_v8 = vmov 16.0  }
 0x2cd   :  { %1878 = vrsqrt.f32 %v1144_v24  ;;  %vm1184_vm10 = vweird.f32 %v1144_v24 }
 0x2d0   :  { %v993_v22 = vpop.xlane.xlu0 %992 }
 0x2d1   :  { %v1033_v49 = vmul.f32 %v993_v22, %v2315_v34 }
 0x2d3   :  { %v1879_v31 = vpop.eup %1878  ;;  %v1145_v36 = vadd.f32 1e-05, %v1033_v49 }
 0x2d4   :  { %v1179_v25 = vmul.f32 %v1879_v31, %v1144_v24  ;;  %vm1185_vm9 = vweird.f32 %v1879_v31 }
 0x2d5   :  { %1880 = vrsqrt.f32 %v1145_v36  ;;  %vm2566_vm11 = vmor %vm1184_vm10, %vm1185_vm9  ;;  %vm1194_vm2 = vweird.f32 %v1145_v36 }
 0x2d6   :  { %v1180_v33 = vmul.f32 %v1879_v31, %v1179_v25  ;;  %v1217_v25 = vsel %vm2583_vm15, %v2554_v14, %v1213_v41 }
 0x2d8   :  { %v1181_v53 = vmul.f32 0.5, %v1180_v33  ;;  %v996_v39 = vpop.xlane.xlu0 %995  ;;  %v199_v33 = vrot.slane %v198_v29, 4 }
 0x2d9   :  { %v1034_v40 = vmul.f32 %v996_v39, %v2315_v34 }
 0x2da   :  { %v1182_v6 = vsub.f32 1.5, %v1181_v53  ;;  %v1131_v53 = vmul.f32 %v2303_v23, %v2429_v21  ;;  %v1130_v21 = vmul.f32 %v2293_v10, %v2469_v1 }
 0x2db   :  { %v1146_v46 = vadd.f32 1e-05, %v1034_v40  ;;  %v1881_v47 = vpop.eup %1880 }
 0x2dc   :  { %v1189_v15 = vmul.f32 %v1881_v47, %v1145_v36  ;;  %v1183_v61 = vmul.f32 %v1879_v31, %v1182_v6  ;;  %vm1195_vm13 = vweird.f32 %v1881_v47  ;;  %v1018_v36 = vsel %vm661_vm1, %v978_v63, 0.0 }
 0x2dd   :  { %1882 = vrsqrt.f32 %v1146_v46  ;;  %vm1196_vm3 = vmor %vm1194_vm2, %vm1195_vm13  ;;  %v200_v6 = vadd.f32 %v199_v33, %v198_v29  ;;  %vm1204_vm5 = vweird.f32 %v1146_v46 }
 0x2de   :  { %v1190_v52 = vmul.f32 %v1881_v47, %v1189_v15  ;;  %v1187_v0 = vsel %vm2566_vm11, %v1879_v31, %v1183_v61  ;;  %1884 = vrcp.f32 %v1942_v8  ;;  %v1129_v31 = vmul.f32 %v2283_v2, %v2460_v51  ;;  %v2598_v51 = vpop.permute.xlu1 %1103 }
 0x2df   :  { %v1320_v49 = vmul.f32 %v1187_v0, %v1128_v57  ;;  %v201_v15 = vrot.slane %v200_v6, 2 }
 0x2e0   :  { %v1191_v7 = vmul.f32 0.5, %v1190_v52 }
 0x2e1   :  { %v1416_v38 = vadd.f32 %v2257_v48, %v1320_v49  ;;  %v202_v48 = vadd.f32 %v201_v15, %v200_v6  ;;  %v1842_v15 = vld [vmem:[%s2900_s25 + $0x38] sm:$0xff] }
 0x2e2   :  { %v1192_v5 = vsub.f32 1.5, %v1191_v7  ;;  %319 = vmatpush.bf16.msra.mxu2 %v1842_v15 }
 0x2e3   :  { %v1883_v59 = vpop.eup %1882  ;;  %v1432_v52 = vmax.f32 %v1416_v38, 0.0  ;;  %v203_v0 = vrot.slane %v202_v48, 1 }
 0x2e4   :  { %v1199_v17 = vmul.f32 %v1883_v59, %v1146_v46  ;;  %v1193_v22 = vmul.f32 %v1881_v47, %v1192_v5  ;;  %v1885_v2 = vpop.eup %1884  ;;  %vm1205_vm4 = vweird.f32 %v1883_v59 }
 0x2e5   :  { %v206_v54 = vmul.f32 16.0, %v1885_v2  ;;  %vm1206_vm6 = vmor %vm1204_vm5, %vm1205_vm4  ;;  %vm210_vm7 = vweird.f32 %v1885_v2  ;;  %v204_v5 = vadd.f32 %v203_v0, %v202_v48  ;;  %v766_v0 = vld [vmem:[%s2872_s17 + $0x78] sm:$0xff] }
 0x2e6   :  { %v1200_v19 = vmul.f32 %v1883_v59, %v1199_v17  ;;  %v1197_v58 = vsel %vm1196_vm3, %v1881_v47, %v1193_v22  ;;  %v1323_v47 = vmul.f32 %v1217_v25, %v1131_v53  ;;  %v1005_v1 = vpop.xlane.xlu1 %1004 }
 0x2e7   :  { %v1321_v40 = vmul.f32 %v1197_v58, %v1129_v31  ;;  %v207_v57 = vsub.f32 1.0, %v206_v54  ;;  %v1037_v54 = vmul.f32 %v1005_v1, %v2315_v34 }
 0x2e8   :  { %v1201_v39 = vmul.f32 0.5, %v1200_v19  ;;  %v1419_v7 = vadd.f32 %v2313_v32, %v1323_v47  ;;  %v195_v32 = vld [vmem:[%s2899_s29] sm:$0x1]  ;;  %s2901_s29 = sld [smem:[#allocation10_spill]] }
 0x2e9   :  { %1019 = vadd.xlane.f32.xlu0 %v1018_v36  ;;  %v1417_v14 = vadd.f32 %v2307_v26, %v1321_v40  ;;  %v208_v18 = vmul.f32 %v1885_v2, %v207_v57  ;;  %v1011_v49 = vpop.xlane.xlu2 %1010  ;;  %v1841_v57 = vld [vmem:[%s2900_s25 + $0x30] sm:$0xff] }
 0x2ea   :  { %v1202_v43 = vsub.f32 1.5, %v1201_v39  ;;  %v1435_v63 = vmax.f32 %v1419_v7, 0.0  ;;  %320 = vmatpush.bf16.msra.mxu2 %v1841_v57 }
 0x2eb   :  { %v1433_v23 = vmax.f32 %v1417_v14, 0.0  ;;  %v209_v10 = vadd.f32 %v1885_v2, %v208_v18  ;;  %v1839_v18 = vld [vmem:[%s2900_s25 + $0x20] sm:$0xff] }
 0x2ec   :  { %v1203_v61 = vmul.f32 %v1883_v59, %v1202_v43 }
 0x2ed   :  { %v1447_v41 = vpack.c.bf16 %v1433_v23, %v1432_v52  ;;  %v780_v23 = vld [vmem:[%s2873_s18 + $0x68] sm:$0xff]  ;;  %v2644_v52 = vpop.permute.xlu0 %1376 }
 0x2ee   :  { %v1207_v60 = vsel %vm1206_vm6, %v1883_v59, %v1203_v61  ;;  %v2611_v59 = vsel %vm210_vm7, %v1885_v2, %v209_v10  ;;  %v1008_v25 = vpop.xlane.xlu1 %1007 }
 0x2ef   :  { %v1322_v26 = vmul.f32 %v1207_v60, %v1130_v21  ;;  %1814 = vmatmul.msk.bf16.gmra.mxu0 %vm661_vm1, %v1447_v41  ;;  %v212_v8 = vmul.f32 %v2611_v59, %v204_v5  ;;  %v2651_v60 = vadd.f32 1e-05, %v1037_v54  ;;  %v1840_v41 = vld [vmem:[%s2900_s25 + $0x28] sm:$0xff] }
 0x2f0   :  { %321 = vmatpush.bf16.msra.mxu2 %v1840_v41 }
 0x2f1   :  { %v1418_v46 = vadd.f32 %v2265_v55, %v1322_v26  ;;  %v213_v22 = vmul.f32 %v212_v8, %v195_v32  ;;  %v764_v55 = vld [vmem:[%s2872_s17 + $0x68] sm:$0xff]  ;;  %v1017_v36 = vpop.xlane.xlu2 %1016  ;;  %v1039_v32 = vmul.f32 %v1011_v49, %v2315_v34  ;;  %v782_v49 = vld [vmem:[%s2873_s18 + $0x78] sm:$0xff]  ;;  %vm1234_vm3 = vweird.f32 %v2651_v60 }
 0x2f2   :  { %v1041_v38 = vmul.f32 %v1017_v36, %v2315_v34 }
 0x2f3   :  { %v1434_v17 = vmax.f32 %v1418_v46, 0.0  ;;  %v215_v29 = vperm.slane %v213_v22, 0 }
 0x2f4   :  { %v2633_v14 = vadd.f32 1e-05, %v1041_v38  ;;  %322 = vmatpush.bf16.msra.mxu2 %v1839_v18 }
 0x2f5   :  { %v1448_v24 = vpack.c.bf16 %v1435_v63, %v1434_v17  ;;  %v2618_v31 = vsub.f32 %v2577_v13, %v215_v29  ;;  %v2621_v19 = vsub.f32 %v2579_v44, %v215_v29  ;;  %v779_v13 = vld [vmem:[%s2873_s18 + $0x60] sm:$0xff]  ;;  %v2670_v1 = vpop.permute.xlu0 %1381  ;;  %v1838_v17 = vld [vmem:[%s2900_s25 + $0x18] sm:$0xff] }
 0x2f6   :  { %v1014_v44 = vpop.xlane.xlu1 %1013  ;;  %1886 = vrsqrt.f32 %v2633_v14  ;;  %vm1274_vm12 = vweird.f32 %v2633_v14 }
 0x2f7   :  { %v219_v58 = vmul.f32 %v2618_v31, %v2618_v31  ;;  %v220_v33 = vmul.f32 %v2621_v19, %v2621_v19  ;;  %v1040_v43 = vmul.f32 %v1014_v44, %v2315_v34 }
 0x2f8   :  { %323 = vmatpush.bf16.msra.mxu2 %v1838_v17 }
 0x2f9   :  { %v221_v53 = vadd.f32 %v220_v33, %v219_v58  ;;  %v2642_v21 = vadd.f32 1e-05, %v1040_v43  ;;  %v1038_v58 = vmul.f32 %v1008_v25, %v2315_v34  ;;  %v1865_v33 = vld [vmem:[%s2901_s29] ss:$0 sm:$0xff]  ;;  %s2905_s29 = sld [smem:[#allocation13_spill]] }
 0x2fb   :  { %v222_v39 = vrot.slane %v221_v53, 4  ;;  %1888 = vrsqrt.f32 %v2642_v21  ;;  %v2697_v38 = vadd.f32 1e-05, %v1038_v58  ;;  %vm1264_vm2 = vweird.f32 %v2642_v21 }
 0x2fc   :  { %v2658_v26 = vpop.eup %1886 }
 0x2fd   :  { %1113 = vperm.xlu0 %1861, %v764_v55   ;;  %v223_v40 = vadd.f32 %v222_v39, %v221_v53  ;;  %v1269_v5 = vmul.f32 %v2658_v26, %v2633_v14  ;;  %v1837_v53 = vld [vmem:[%s2900_s25 + $0x10] sm:$0xff]  ;;  %v2693_v39 = vadd.f32 1e-05, %v1039_v32  ;;  %vm1275_vm11 = vweird.f32 %v2658_v26 }
 0x2fe   :  { %324 = vmatpush.bf16.msra.mxu2 %v1837_v53  ;;  %vm2722_vm13 = vmor %vm1274_vm12, %vm1275_vm11 }
 0x2ff   :  { %1815 = vmatmul.msk.bf16.gmra.mxu0 %vm661_vm1, %v1448_v24  ;;  %v224_v6 = vrot.slane %v223_v40, 2  ;;  %v1270_v22 = vmul.f32 %v2658_v26, %v1269_v5 }
 0x301   :  { %v225_v2 = vadd.f32 %v224_v6, %v223_v40  ;;  %v2666_v46 = vpop.eup %1888  ;;  %v1271_v40 = vmul.f32 0.5, %v1270_v22  ;;  %v232_v6 = vmul.f32 %v1865_v33, %v2618_v31 }
 0x302   :  { %v1259_v24 = vmul.f32 %v2666_v46, %v2642_v21  ;;  %vm1265_vm14 = vweird.f32 %v2666_v46  ;;  %v1133_v21 = vmul.f32 %v2287_v4, %v2435_v30 }
 0x303   :  { %v226_v47 = vrot.slane %v225_v2, 1  ;;  %v1272_v31 = vsub.f32 1.5, %v1271_v40  ;;  %vm1266_vm4 = vmor %vm1264_vm2, %vm1265_vm14 }
 0x304   :  { %v1260_v25 = vmul.f32 %v2666_v46, %v1259_v24 }
 0x305   :  { %1396 = vperm.xlu0 %1861, %v779_v13   ;;  %v227_v61 = vadd.f32 %v226_v47, %v225_v2  ;;  %v233_v2 = vmul.f32 %v1865_v33, %v2621_v19  ;;  %v1836_v47 = vld [vmem:[%s2900_s25 + $0x8] sm:$0xff] }
 0x306   :  { %325 = vmatpush.bf16.msra.mxu2 %v1836_v47 }
 0x307   :  { %v228_v48 = vmul.f32 %v227_v61, %v2611_v59  ;;  %v1261_v61 = vmul.f32 0.5, %v1260_v25 }
 0x309   :  { %v234_v7 = vadd.f32 1e-05, %v228_v48  ;;  %v1262_v18 = vsub.f32 1.5, %v1261_v61 }
 0x30b   :  { %1890 = vrsqrt.f32 %v234_v7  ;;  %vm241_vm8 = vweird.f32 %v234_v7  ;;  %v1263_v33 = vmul.f32 %v2666_v46, %v1262_v18 }
 0x30c   :  { %1892 = vrsqrt.f32 %v2651_v60 }
 0x30d   :  { %1401 = vperm.xlu0 %1861, %v780_v23   ;;  %1894 = vrsqrt.f32 %v2693_v39  ;;  %v1866_v23 = vld [vmem:[%s2902_s4] ss:$0 sm:$0xff]  ;;  %s1667_s4 = sshll.u32 %s2879_s24, 4  ;;  %s1668_s4 = int_to_ptr.hbm [resolvable:$true] %s1667_s4 }
 0x30e   :  { %1896 = vrsqrt.f32 %v2697_v38 }
 0x311   :  { %v1891_v10 = vpop.eup %1890 }
 0x312   :  { %v2675_v63 = vpop.eup %1892  ;;  %v236_v8 = vmul.f32 %v1891_v10, %v234_v7  ;;  %vm242_vm9 = vweird.f32 %v1891_v10 }
 0x313   :  { %v1229_v55 = vmul.f32 %v2675_v63, %v2651_v60  ;;  %vm243_vm10 = vmor %vm241_vm8, %vm242_vm9  ;;  %v2713_v32 = vpop.eup %1894  ;;  %vm1235_vm15 = vweird.f32 %v2675_v63  ;;  %v1392_v60 = vpop.permute.xlu1 %1391 }
 0x314   :  { %v237_v29 = vmul.f32 %v1891_v10, %v236_v8  ;;  %v1273_v8 = vmul.f32 %v2658_v26, %v1272_v31  ;;  %vm1236_vm5 = vmor %vm1234_vm3, %vm1235_vm15  ;;  %vm1255_vm9 = vweird.f32 %v2713_v32 }
 0x315   :  { %1123 = vperm.xlu0 %1861, %v766_v0   ;;  %v1230_v44 = vmul.f32 %v2675_v63, %v1229_v55  ;;  %v1835_v0 = vld [vmem:[%s2900_s25] sm:$0xff]  ;;  %v1249_v55 = vmul.f32 %v2713_v32, %v2693_v39 }
 0x316   :  { %v238_v36 = vmul.f32 0.5, %v237_v29  ;;  %326 = vmatpush.bf16.msra.mxu2 %v1835_v0  ;;  %v2718_v29 = vpop.eup %1896  ;;  %v1277_v14 = vsel %vm2722_vm13, %v2658_v26, %v1273_v8  ;;  %vm1244_vm13 = vweird.f32 %v2697_v38 }
 0x317   :  { %v1231_v57 = vmul.f32 0.5, %v1230_v44  ;;  %v1267_v44 = vsel %vm1266_vm4, %v2666_v46, %v1263_v33  ;;  %vm1245_vm12 = vweird.f32 %v2718_v29  ;;  %v1134_v33 = vmul.f32 %v2309_v27, %v2441_v28 }
 0x318   :  { %v239_v13 = vsub.f32 1.5, %v238_v36  ;;  %v1137_v36 = vmul.f32 %v2598_v51, %v2487_v11  ;;  %v1250_v11 = vmul.f32 %v2713_v32, %v1249_v55  ;;  %v1328_v47 = vmul.f32 %v1267_v44, %v2502_v42  ;;  %vm1246_vm14 = vmor %vm1244_vm13, %vm1245_vm12 }
 0x31a   :  { %v240_v15 = vmul.f32 %v1891_v10, %v239_v13  ;;  %v1239_v13 = vmul.f32 %v2718_v29, %v2697_v38  ;;  %v1329_v26 = vmul.f32 %v1277_v14, %v1137_v36  ;;  %v1023_v38 = vpop.xlane.xlu2 %1022 }
 0x31b   :  { %v1043_v14 = vmul.f32 %v1023_v38, %v2315_v34 }
 0x31c   :  { %v244_v48 = vsel %vm243_vm10, %v1891_v10, %v240_v15  ;;  %v1232_v10 = vsub.f32 1.5, %v1231_v57  ;;  %v1251_v15 = vmul.f32 0.5, %v1250_v11  ;;  %v1425_v61 = vadd.f32 %v1392_v60, %v1329_v26 }
 0x31d   :  { %1411 = vperm.xlu0 %1861, %v782_v49   ;;  %v245_v7 = vmul.f32 %v244_v48, %v232_v6  ;;  %v246_v41 = vmul.f32 %v244_v48, %v233_v2  ;;  %vm1254_vm10 = vweird.f32 %v2693_v39 }
 0x31e   :  { %v1002_v43 = vpop.xlane.xlu0 %1001  ;;  %v1233_v25 = vmul.f32 %v2675_v63, %v1232_v10  ;;  %v1252_v4 = vsub.f32 1.5, %v1251_v15  ;;  %vm1256_vm11 = vmor %vm1254_vm10, %vm1255_vm9 }
 0x31f   :  { %v1036_v54 = vmul.f32 %v1002_v43, %v2315_v34  ;;  %v251_v5 = vadd.f32 %v1866_v23, %v246_v41  ;;  %v250_v17 = vadd.f32 %v1866_v23, %v245_v7  ;;  %v1240_v43 = vmul.f32 %v2718_v29, %v1239_v13 }
 0x320   :  { %v1237_v6 = vsel %vm1236_vm5, %v2675_v63, %v1233_v25  ;;  %v1132_v63 = vmul.f32 %v2277_v62, %v2521_v20  ;;  %v1441_v41 = vmax.f32 %v1425_v61, 0.0  ;;  %v1155_v25 = vadd.f32 1e-05, %v1043_v14 }
 0x321   :  { %v1148_v19 = vadd.f32 1e-05, %v1036_v54  ;;  %v253_v24 = vmax.f32 %v251_v5, 0.0  ;;  %v252_v22 = vmax.f32 %v250_v17, 0.0  ;;  %v1325_v31 = vmul.f32 %v1237_v6, %v1133_v21 }
 0x322   :  { %v1241_v57 = vmul.f32 0.5, %v1240_v43  ;;  %v1026_v27 = vpop.xlane.xlu2 %1025  ;;  %vm1294_vm5 = vweird.f32 %v1155_v25 }
 0x323   :  { %1898 = vrsqrt.f32 %v1148_v19  ;;  %v254_v49 = vpack.c.bf16 %v253_v24, %v252_v22  ;;  %vm1224_vm7 = vweird.f32 %v1148_v19  ;;  %v1421_v18 = vadd.f32 %v2297_v16, %v1325_v31 }
 0x324   :  { %v1242_v8 = vsub.f32 1.5, %v1241_v57  ;;  %1900 = vrsqrt.f32 %v1155_v25 }
 0x325   :  { %327 = vmatmul.bf16.vlgmr.msra.gmra.mxu2 %v254_v49  ;;  %v1437_v20 = vmax.f32 %v1421_v18, 0.0 }
 0x326   :  { %v1243_v24 = vmul.f32 %v2718_v29, %v1242_v8 }
 0x328   :  { %v1247_v58 = vsel %vm1246_vm14, %v2718_v29, %v1243_v24 }
 0x329   :  { %v1899_v53 = vpop.eup %1898 }
 0x32a   :  { %v1219_v40 = vmul.f32 %v1899_v53, %v1148_v19  ;;  %vm1225_vm6 = vweird.f32 %v1899_v53  ;;  %v1253_v19 = vmul.f32 %v2713_v32, %v1252_v4  ;;  %v1901_v13 = vpop.eup %1900 }
 0x32b   :  { %vm1226_vm8 = vmor %vm1224_vm7, %vm1225_vm6  ;;  %v1289_v6 = vmul.f32 %v1901_v13, %v1155_v25  ;;  %vm1295_vm4 = vweird.f32 %v1901_v13 }
 0x32c   :  { %v1220_v51 = vmul.f32 %v1899_v53, %v1219_v40  ;;  %v1257_v16 = vsel %vm1256_vm11, %v2713_v32, %v1253_v19  ;;  %v1326_v32 = vmul.f32 %v1247_v58, %v1134_v33  ;;  %vm1296_vm6 = vmor %vm1294_vm5, %vm1295_vm4 }
 0x32d   :  { %v1290_v43 = vmul.f32 %v1901_v13, %v1289_v6 }
 0x32e   :  { %v1221_v2 = vmul.f32 0.5, %v1220_v51 }
 0x32f   :  { %v1291_v61 = vmul.f32 0.5, %v1290_v43 }
 0x330   :  { %v1222_v54 = vsub.f32 1.5, %v1221_v2 }
 0x331   :  { %v1387_v23 = vpop.permute.xlu0 %1386 }
 0x332   :  { %v1223_v46 = vmul.f32 %v1899_v53, %v1222_v54  ;;  %v1424_v48 = vadd.f32 %v1387_v23, %v1328_v47 }
 0x334   :  { %v1227_v30 = vsel %vm1226_vm8, %v1899_v53, %v1223_v46  ;;  %v1440_v7 = vmax.f32 %v1424_v48, 0.0  ;;  %v1292_v46 = vsub.f32 1.5, %v1291_v61 }
 0x335   :  { %v2748_v0 = vpop.f32.mrf.mxu0  ;;  %v1324_v42 = vmul.f32 %v1227_v30, %v1132_v63  ;;  %v1109_v30 = vpop.permute.xlu2 %1108 }
 0x336   :  { %v1451_v5 = vpack.c.bf16 %v1441_v41, %v1440_v7 }
 0x337   :  { %v1420_v17 = vadd.f32 %v2317_v37, %v1324_v42  ;;  %v1135_v37 = vmul.f32 %v2604_v3, %v2477_v12  ;;  %v1422_v12 = vadd.f32 %v2644_v52, %v1326_v32  ;;  %v1044_v52 = vmul.f32 %v1026_v27, %v2315_v34 }
 0x339   :  { %v1436_v62 = vmax.f32 %v1420_v17, 0.0  ;;  %v1327_v55 = vmul.f32 %v1257_v16, %v1135_v37  ;;  %v1438_v53 = vmax.f32 %v1422_v12, 0.0  ;;  %v1156_v11 = vadd.f32 1e-05, %v1044_v52 }
 0x33a   :  { %v1138_v17 = vmul.f32 %v1109_v30, %v2562_v56 }
 0x33b   :  { %v1449_v10 = vpack.c.bf16 %v1437_v20, %v1436_v62  ;;  %v1423_v49 = vadd.f32 %v2670_v1, %v1327_v55  ;;  %v1029_v1 = vpop.xlane.xlu1 %1028  ;;  %vm1304_vm8 = vweird.f32 %v1156_v11 }
 0x33c   :  { %v1045_v44 = vmul.f32 %v1029_v1, %v2315_v34 }
 0x33d   :  { %v2760_v22 = vpop.f32.mrf.mxu0  ;;  %1816 = vmatmul.msk.bf16.gmra.mxu0 %vm661_vm1, %v1449_v10  ;;  %v1439_v3 = vmax.f32 %v1423_v49, 0.0  ;;  %v1119_v32 = vpop.permute.xlu2 %1118 }
 0x33e   :  { %v1529_v39 = vpack.c.bf16 %v2760_v22, %v2748_v0  ;;  %v1157_v21 = vadd.f32 1e-05, %v1045_v44  ;;  %v1572_v0 = vld [vmem:[%s2877_s22 + $0x8] sm:$0xff]  ;;  %v1571_v22 = vld [vmem:[%s2877_s22] sm:$0xff] }
 0x33f   :  { %v1450_v36 = vpack.c.bf16 %v1439_v3, %v1438_v53 }
 0x340   :  { %vm1314_vm11 = vweird.f32 %v1157_v21 }
 0x345   :  { %v1407_v52 = vpop.permute.xlu2 %1406 }
 0x34d   :  { %1817 = vmatmul.msk.bf16.gmra.mxu0 %vm661_vm1, %v1450_v36 }
 0x35c   :  { %v1020_v40 = vpop.xlane.xlu0 %1019 }
 0x35d   :  { %v1042_v29 = vmul.f32 %v1020_v40, %v2315_v34  ;;  %1818 = vmatmul.msk.bf16.gmra.mxu0 %vm661_vm1, %v1451_v5  ;;  %v1293_v5 = vmul.f32 %v1901_v13, %v1292_v46  ;;  %v1140_v40 = vmul.f32 %v1119_v32, %v2507_v45 }
 0x35f   :  { %v1154_v28 = vadd.f32 1e-05, %v1042_v29  ;;  %v1297_v10 = vsel %vm1296_vm6, %v1901_v13, %v1293_v5 }
 0x361   :  { %1902 = vrsqrt.f32 %v1154_v28  ;;  %vm1284_vm2 = vweird.f32 %v1154_v28 }
 0x362   :  { %1904 = vrsqrt.f32 %v1156_v11 }
 0x363   :  { %1906 = vrsqrt.f32 %v1157_v21 }
 0x367   :  { %v1903_v51 = vpop.eup %1902 }
 0x368   :  { %v1279_v26 = vmul.f32 %v1903_v51, %v1154_v28  ;;  %v1905_v54 = vpop.eup %1904  ;;  %vm1285_vm15 = vweird.f32 %v1903_v51 }
 0x369   :  { %v1299_v31 = vmul.f32 %v1905_v54, %v1156_v11  ;;  %v1907_v63 = vpop.eup %1906  ;;  %vm1286_vm3 = vmor %vm1284_vm2, %vm1285_vm15  ;;  %vm1305_vm7 = vweird.f32 %v1905_v54 }
 0x36a   :  { %v1280_v2 = vmul.f32 %v1903_v51, %v1279_v26  ;;  %v1309_v42 = vmul.f32 %v1907_v63, %v1157_v21  ;;  %vm1306_vm9 = vmor %vm1304_vm8, %vm1305_vm7  ;;  %vm1315_vm10 = vweird.f32 %v1907_v63 }
 0x36b   :  { %v1300_v4 = vmul.f32 %v1905_v54, %v1299_v31  ;;  %vm1316_vm12 = vmor %vm1314_vm11, %vm1315_vm10 }
 0x36c   :  { %v1281_v60 = vmul.f32 0.5, %v1280_v2  ;;  %v2777_v47 = vpop.f32.mrf.mxu0  ;;  %v1310_v20 = vmul.f32 %v1907_v63, %v1309_v42 }
 0x36d   :  { %v1301_v19 = vmul.f32 0.5, %v1300_v4 }
 0x36e   :  { %v1282_v23 = vsub.f32 1.5, %v1281_v60  ;;  %v1311_v49 = vmul.f32 0.5, %v1310_v20 }
 0x36f   :  { %v1114_v15 = vpop.permute.xlu0 %1113  ;;  %v1302_v55 = vsub.f32 1.5, %v1301_v19 }
 0x370   :  { %v1283_v48 = vmul.f32 %v1903_v51, %v1282_v23  ;;  %v1139_v8 = vmul.f32 %v1114_v15, %v2496_v35  ;;  %v1312_v35 = vsub.f32 1.5, %v1311_v49 }
 0x371   :  { %v1303_v53 = vmul.f32 %v1905_v54, %v1302_v55 }
 0x372   :  { %v1287_v18 = vsel %vm1286_vm3, %v1903_v51, %v1283_v48  ;;  %v1331_v37 = vmul.f32 %v1297_v10, %v1139_v8  ;;  %v1313_v29 = vmul.f32 %v1907_v63, %v1312_v35  ;;  %v1542_v8 = vpop.permute.xlu1 %1541  ;;  %v1547_v10 = vpop.permute.xlu2 %1546 }
 0x373   :  { %v1330_v62 = vmul.f32 %v1287_v18, %v1138_v17  ;;  %v1307_v38 = vsel %vm1306_vm9, %v1905_v54, %v1303_v53 }
 0x374   :  { %v2779_v57 = vpop.f32.mrf.mxu0  ;;  %v1332_v27 = vmul.f32 %v1307_v38, %v1140_v40  ;;  %v1317_v1 = vsel %vm1316_vm12, %v1907_v63, %v1313_v29 }
 0x375   :  { %v1530_v7 = vpack.c.bf16 %v2779_v57, %v2777_v47 }
 0x376   :  { %v1428_v13 = vadd.f32 %v1407_v52, %v1332_v27  ;;  %v1574_v52 = vld [vmem:[%s2878_s23 + $0x8] sm:$0xff] }
 0x377   :  { %v1397_v41 = vpop.permute.xlu0 %1396 }
 0x378   :  { %v1426_v24 = vadd.f32 %v1397_v41, %v1330_v62  ;;  %v1444_v26 = vmax.f32 %v1428_v13, 0.0 }
 0x37a   :  { %v1442_v12 = vmax.f32 %v1426_v24, 0.0  ;;  %v1569_v24 = vld [vmem:[%s2876_s21] sm:$0xff] }
 0x37c   :  { %v1497_v16 = vpop.f32.mrf.mxu0 }
 0x37f   :  { %v1402_v58 = vpop.permute.xlu0 %1401 }
 0x380   :  { %v1427_v33 = vadd.f32 %v1402_v58, %v1331_v37  ;;  %v1570_v58 = vld [vmem:[%s2876_s21 + $0x8] sm:$0xff] }
 0x382   :  { %v1443_v3 = vmax.f32 %v1427_v33, 0.0 }
 0x384   :  { %v1452_v56 = vpack.c.bf16 %v1443_v3, %v1442_v12  ;;  %v1499_v36 = vpop.f32.mrf.mxu0 }
 0x385   :  { %v1531_v14 = vpack.c.bf16 %v1499_v36, %v1497_v16 }
 0x386   :  { %1819 = vmatmul.msk.bf16.gmra.mxu0 %vm661_vm1, %v1452_v56 }
 0x387   :  { %v1124_v25 = vpop.permute.xlu0 %1123 }
 0x388   :  { %v1141_v28 = vmul.f32 %v1124_v25, %v2516_v9  ;;  %v1867_v25 = vld [vmem:[%s2905_s29] ss:$0 sm:$0xff] }
 0x38a   :  { %v1333_v11 = vmul.f32 %v1317_v1, %v1141_v28 }
 0x38f   :  { %v1412_v51 = vpop.permute.xlu0 %1411 }
 0x390   :  { %v1429_v44 = vadd.f32 %v1412_v51, %v1333_v11 }
 0x392   :  { %v1445_v6 = vmax.f32 %v1429_v44, 0.0 }
 0x394   :  { %v1453_v2 = vpack.c.bf16 %v1445_v6, %v1444_v26  ;;  %v352_v6 = vld [vmem:[%s2864_s9] sm:$0x1] }
 0x396   :  { %1820 = vmatmul.msk.bf16.gmra.mxu0 %vm661_vm1, %v1453_v2 }
 0x3a8   :  { %v328_v43 = vpop.f32.mrf.mxu2 }
 0x3b0   :  { %v330_v45 = vpop.f32.mrf.mxu2 }
 0x3b1   :  { %v333_v60 = vpack.c.bf16 %v330_v45, %v328_v43 }
 0x3b3   :  { %345 = vmatpush.bf16.msrb.mxu2 %v333_v60 }
 0x3b6   :  { %1752 = vmatmul.msk.bf16.vlgmr.msrb.gmra.mxu2 %vm177_vm0, %v2457_v50  ;;  %v1854_v50 = vld [vmem:[%s2874_s19] sm:$0xff] }
 0x3ba   :  { %v1502_v15 = vpop.f32.mrf.mxu0 }
 0x3c2   :  { %v1504_v9 = vpop.f32.mrf.mxu0 }
 0x3c3   :  { %v1532_v21 = vpack.c.bf16 %v1504_v9, %v1502_v15 }
 0x3ca   :  { %v1507_v54 = vpop.f32.mrf.mxu0 }
 0x3d2   :  { %v1509_v61 = vpop.f32.mrf.mxu0 }
 0x3d3   :  { %v1533_v18 = vpack.c.bf16 %v1509_v61, %v1507_v54 }
 0x3da   :  { %v1512_v23 = vpop.f32.mrf.mxu0 }
 0x3e2   :  { %v1514_v31 = vpop.f32.mrf.mxu0 }
 0x3e3   :  { %v1534_v42 = vpack.c.bf16 %v1514_v31, %v1512_v23 }
 0x403   :  { %v1517_v46 = vpop.f32.mrf.mxu0 }
 0x40b   :  { %v1519_v48 = vpop.f32.mrf.mxu0 }
 0x40c   :  { %v1535_v41 = vpack.c.bf16 %v1519_v48, %v1517_v46 }
 0x413   :  { %v1522_v63 = vpop.f32.mrf.mxu0 }
 0x41b   :  { %v1524_v4 = vpop.f32.mrf.mxu0 }
 0x41c   :  { %v1536_v30 = vpack.c.bf16 %v1524_v4, %v1522_v63 }
 0x41e   :  { %1555 = vmatpush.bf16.msra.mxu2 %v1536_v30 }
 0x422   :  { %1556 = vmatpush.bf16.msra.mxu2 %v1535_v41 }
 0x426   :  { %1557 = vmatpush.bf16.msra.mxu2 %v1534_v42 }
 0x42a   :  { %1558 = vmatpush.bf16.msra.mxu2 %v1533_v18 }
 0x42e   :  { %1559 = vmatpush.bf16.msra.mxu2 %v1532_v21 }
 0x432   :  { %1560 = vmatpush.bf16.msra.mxu2 %v1531_v14 }
 0x436   :  { %1561 = vmatpush.bf16.msra.mxu2 %v1530_v7 }
 0x439   :  { %v347_v5 = vpop.f32.mrf.mxu2 }
 0x43a   :  { %1562 = vmatpush.bf16.msra.mxu2 %v1529_v39  ;;  %v1573_v39 = vld [vmem:[%s2878_s23] sm:$0xff]  ;;  %v348_v40 = vadd.f32 %v1867_v25, %v347_v5 }
 0x43d   :  { %1563 = vmatmul.bf16.vlgmr.msra.gmra.mxu2 %v1854_v50 }
 0x441   :  { %v349_v17 = vpop.f32.mrf.mxu2 }
 0x442   :  { %v350_v29 = vadd.f32 %v1867_v25, %v349_v17 }
 0x444   :  { %v355_v27 = vadd.f32 %v350_v29, %v348_v40 }
 0x446   :  { %v356_v28 = vrot.slane %v355_v27, 4 }
 0x448   :  { %v357_v1 = vadd.f32 %v356_v28, %v355_v27 }
 0x44a   :  { %v358_v13 = vrot.slane %v357_v1, 2 }
 0x44c   :  { %v359_v11 = vadd.f32 %v358_v13, %v357_v1 }
 0x44e   :  { %v360_v51 = vrot.slane %v359_v11, 1 }
 0x450   :  { %v361_v44 = vadd.f32 %v360_v51, %v359_v11 }
 0x452   :  { %v362_v26 = vmul.f32 %v361_v44, %v2611_v59 }
 0x454   :  { %v363_v2 = vmul.f32 %v362_v26, %v352_v6 }
 0x456   :  { %v365_v43 = vperm.slane %v363_v2, 0 }
 0x458   :  { %v367_v45 = vsub.f32 %v348_v40, %v365_v43  ;;  %v368_v60 = vsub.f32 %v350_v29, %v365_v43 }
 0x45a   :  { %v369_v15 = vmul.f32 %v367_v45, %v367_v45  ;;  %v370_v9 = vmul.f32 %v368_v60, %v368_v60 }
 0x45c   :  { %v371_v21 = vadd.f32 %v370_v9, %v369_v15 }
 0x45e   :  { %v372_v54 = vrot.slane %v371_v21, 4 }
 0x460   :  { %v373_v61 = vadd.f32 %v372_v54, %v371_v21 }
 0x462   :  { %v374_v23 = vrot.slane %v373_v61, 2 }
 0x464   :  { %v375_v31 = vadd.f32 %v374_v23, %v373_v61 }
 0x466   :  { %v376_v46 = vrot.slane %v375_v31, 1 }
 0x468   :  { %v377_v48 = vadd.f32 %v376_v46, %v375_v31 }
 0x46a   :  { %v378_v63 = vmul.f32 %v377_v48, %v2611_v59  ;;  %v1868_v59 = vld [vmem:[%s2865_s10] ss:$0 sm:$0xff]  ;;  %s1943_s10 = smov [#allocation2]  }
 0x46c   :  { %v384_v4 = vadd.f32 1e-05, %v378_v63 }
 0x46e   :  { %1908 = vrsqrt.f32 %v384_v4  ;;  %vm391_vm0 = vweird.f32 %v384_v4 }
 0x474   :  { %v1909_v30 = vpop.eup %1908 }
 0x475   :  { %v386_v41 = vmul.f32 %v1909_v30, %v384_v4  ;;  %vm392_vm13 = vweird.f32 %v1909_v30 }
 0x476   :  { %vm393_vm14 = vmor %vm391_vm0, %vm392_vm13 }
 0x477   :  { %v387_v42 = vmul.f32 %v1909_v30, %v386_v41 }
 0x4c0   :  { %v1564_v19 = vpop.f32.mrf.mxu2 }
 0x4c1   :  { %v1565_v62 = vadd.f32 %v1564_v19, %v1542_v8  ;;  %v388_v8 = vmul.f32 0.5, %v387_v42 }
 0x4c3   :  { %v1575_v20 = vsel %vm661_vm1, %v1565_v62, 0.0  ;;  %v389_v19 = vsub.f32 1.5, %v388_v8 }
 0x4c4   :  { %1576 = vadd.xlane.f32.xlu0 %v1575_v20 }
 0x4c8   :  { %v1566_v47 = vpop.f32.mrf.mxu2 }
 0x4c9   :  { %v1567_v57 = vadd.f32 %v1566_v47, %v1547_v10 }
 0x4cb   :  { %v1578_v7 = vsel %vm661_vm1, %v1567_v57, 0.0 }
 0x4cc   :  { %1579 = vadd.xlane.f32.xlu2 %v1578_v7 }
 0x4d8   :  { %1614 = vperm.xlu0 %1861, %v1572_v0  }
 0x4e4   :  { %1609 = vperm.xlu2 %1863, %v1571_v22  }
 0x4ec   :  { %1645 = vperm.xlu2 %1863, %v1573_v39   ;;  %v382_v39 = vmul.f32 %v1868_v59, %v367_v45 }
 0x537   :  { %v1577_v16 = vpop.xlane.xlu0 %1576 }
 0x538   :  { %v1581_v37 = vmul.f32 %v1577_v16, %v2315_v34 }
 0x53a   :  { %v1583_v55 = vmul.f32 %v1581_v37, %v1569_v24 }
 0x53c   :  { %1587 = vperm.xlu1 %1862, %v1583_v55  }
 0x53f   :  { %v1580_v33 = vpop.xlane.xlu2 %1579 }
 0x540   :  { %v1582_v32 = vmul.f32 %v1580_v33, %v2315_v34 }
 0x542   :  { %v1584_v49 = vmul.f32 %v1582_v32, %v1570_v58  ;;  %v1869_v58 = vld [vmem:[%s2866_s11] ss:$0 sm:$0xff]  ;;  %s1665_s11 = sshll.u32 %s1943_s10, 4  ;;  %s1666_s11 = int_to_ptr.vmem [resolvable:$true] %s1665_s11 }
 0x544   :  { %1592 = vperm.xlu1 %1862, %v1584_v49  }
 0x547   :  { %v1610_v0 = vpop.permute.xlu2 %1609 }
 0x54a   :  { %v1615_v18 = vpop.permute.xlu0 %1614 }
 0x5ae   :  { %v1588_v12 = vpop.permute.xlu1 %1587 }
 0x5af   :  { %v2819_v3 = vsub.f32 %v1565_v62, %v1588_v12 }
 0x5b1   :  { %v1597_v53 = vmul.f32 %v2819_v3, %v2819_v3  ;;  %v1617_v49 = vmul.f32 %v1610_v0, %v2819_v3 }
 0x5b3   :  { %v1599_v56 = vsel %vm661_vm1, %v1597_v53, 0.0 }
 0x5b4   :  { %1600 = vadd.xlane.f32.xlu1 %v1599_v56  ;;  %v383_v56 = vmul.f32 %v1868_v59, %v368_v60 }
 0x5b6   :  { %v1593_v35 = vpop.permute.xlu1 %1592 }
 0x5b7   :  { %v2824_v36 = vsub.f32 %v1567_v57, %v1593_v35  ;;  %v390_v57 = vmul.f32 %v1909_v30, %v389_v19 }
 0x5b9   :  { %v1598_v38 = vmul.f32 %v2824_v36, %v2824_v36  ;;  %v394_v24 = vsel %vm393_vm14, %v1909_v30, %v390_v57  ;;  %v1618_v13 = vmul.f32 %v1615_v18, %v2824_v36 }
 0x5ba   :  { %v395_v55 = vmul.f32 %v394_v24, %v382_v39  ;;  %v396_v27 = vmul.f32 %v394_v24, %v383_v56 }
 0x5bb   :  { %v1602_v14 = vsel %vm661_vm1, %v1598_v38, 0.0 }
 0x5bc   :  { %1603 = vadd.xlane.f32.xlu0 %v1602_v14  ;;  %v400_v38 = vadd.f32 %v1869_v58, %v395_v55  ;;  %v1646_v14 = vpop.permute.xlu2 %1645  ;;  %v401_v44 = vadd.f32 %v1869_v58, %v396_v27 }
 0x5be   :  { %v403_v2 = vmax.f32 %v401_v44, 0.0 }
 0x5d0   :  { %1650 = vperm.xlu0 %1861, %v1574_v52   ;;  %v402_v52 = vmax.f32 %v400_v38, 0.0 }
 0x627   :  { %v1601_v50 = vpop.xlane.xlu1 %1600 }
 0x628   :  { %v1605_v5 = vmul.f32 %v1601_v50, %v2315_v34 }
 0x62a   :  { %v1619_v17 = vadd.f32 1e-05, %v1605_v5 }
 0x62c   :  { %1910 = vrsqrt.f32 %v1619_v17  ;;  %vm1627_vm2 = vweird.f32 %v1619_v17 }
 0x62f   :  { %v1604_v62 = vpop.xlane.xlu0 %1603 }
 0x630   :  { %v1606_v20 = vmul.f32 %v1604_v62, %v2315_v34 }
 0x632   :  { %v1911_v10 = vpop.eup %1910  ;;  %v1620_v47 = vadd.f32 1e-05, %v1606_v20 }
 0x633   :  { %v1622_v7 = vmul.f32 %v1911_v10, %v1619_v17  ;;  %vm1628_vm15 = vweird.f32 %v1911_v10 }
 0x634   :  { %1912 = vrsqrt.f32 %v1620_v47  ;;  %vm1629_vm3 = vmor %vm1627_vm2, %vm1628_vm15  ;;  %vm1637_vm5 = vweird.f32 %v1620_v47 }
 0x635   :  { %v1623_v22 = vmul.f32 %v1911_v10, %v1622_v7 }
 0x637   :  { %v1624_v16 = vmul.f32 0.5, %v1623_v22 }
 0x639   :  { %v1625_v37 = vsub.f32 1.5, %v1624_v16 }
 0x63a   :  { %v1913_v34 = vpop.eup %1912 }
 0x63b   :  { %v1626_v33 = vmul.f32 %v1911_v10, %v1625_v37  ;;  %v1632_v32 = vmul.f32 %v1913_v34, %v1620_v47  ;;  %vm1638_vm4 = vweird.f32 %v1913_v34 }
 0x63c   :  { %vm1639_vm6 = vmor %vm1637_vm5, %vm1638_vm4 }
 0x63d   :  { %v1630_v12 = vsel %vm1629_vm3, %v1911_v10, %v1626_v33  ;;  %v1633_v53 = vmul.f32 %v1913_v34, %v1632_v32 }
 0x63e   :  { %v1641_v35 = vmul.f32 %v1630_v12, %v1617_v49 }
 0x63f   :  { %v1634_v25 = vmul.f32 0.5, %v1633_v53 }
 0x640   :  { %v1653_v40 = vadd.f32 %v1646_v14, %v1641_v35 }
 0x641   :  { %v1635_v29 = vsub.f32 1.5, %v1634_v25 }
 0x642   :  { %v1655_v28 = vmax.f32 %v1653_v40, 0.0  ;;  %v1651_v26 = vpop.permute.xlu0 %1650 }
 0x643   :  { %v1636_v1 = vmul.f32 %v1913_v34, %v1635_v29 }
 0x644   :  { %v1657_v3 = vadd.f32 %v1655_v28, %v402_v52 }
 0x645   :  { %v1640_v11 = vsel %vm1639_vm6, %v1913_v34, %v1636_v1 }
 0x646   :  { %v1642_v51 = vmul.f32 %v1640_v11, %v1618_v13  ;;  %1659 = vst.msk [vmem:[#allocation2] sm:$0xff] %vm661_vm1, %v1657_v3 }
 0x648   :  { %v1654_v6 = vadd.f32 %v1651_v26, %v1642_v51 }
 0x64a   :  { %v1656_v43 = vmax.f32 %v1654_v6, 0.0 }
 0x64c   :  { %v1658_v36 = vadd.f32 %v1656_v43, %v403_v2 }
 0x64e   :  { %1660 = vst.msk [vmem:[#allocation2 + $0x8] sm:$0xff] %vm661_vm1, %v1658_v36 }
 0x64f   :  { %1673 = dma.vmem_to_hbm [thread:$0]  %s1666_s11, 256, %s1668_s4, [#allocation3], %s1944_s1, %s1944_s1, %s1945_s5  }
 0x650   :  { %1938 = dma.done.wait [#allocation3], 256  }
 0x651   :  { %1939 = vsyncadd [#allocation3], 4294967040 }
 0x652   :  { %1678 = vsyncpa [#allocation3], 1 }

</bundles_post_ra>
